<compile_context>
chip_gen: v6e
topology: v6e:2x2x1
jax: 0.10.0
libtpu: 0.0.40
codegen_flags: <defaults>
</compile_context>

<pallas_src>
import functools

import jax
import jax.numpy as jnp
from jax.experimental import pallas as pl
from jax.experimental.pallas import tpu as pltpu

EPS = 1e-5


def _compiler_params():
    # Every grid here iterates over independent blocks -> "parallel" lets v7x
    # shard the grid across both TensorCores; harmless on v5e/v6e.
    return pltpu.CompilerParams(
        dimension_semantics=("parallel",),
        vmem_limit_bytes=48 * 1024 * 1024,
    )


# ----------------------------------------------------------------------------
# Pallas kernels
# ----------------------------------------------------------------------------
def _mm_stats_kernel(x_ref, w_ref, y_ref, sum_ref, ssq_ref):
    # y = x @ w on the MXU (bf16 operands, f32 accumulation) plus per-tile
    # per-channel sum / sum-of-squares for the following BatchNorm.
    y = jnp.dot(x_ref[...], w_ref[...], preferred_element_type=jnp.float32)
    y_ref[...] = y
    sum_ref[...] = jnp.sum(y, axis=0, keepdims=True)[None]
    ssq_ref[...] = jnp.sum(y * y, axis=0, keepdims=True)[None]


def _bn_relu_mm_stats_kernel(x_ref, s_ref, b_ref, w_ref, y_ref, sum_ref, ssq_ref):
    # y = relu(x*s + b) @ w  -- BN+ReLU of the previous stage fused onto the
    # input tile, stats for the next BN fused onto the output.
    a = jnp.maximum(x_ref[...] * s_ref[...] + b_ref[...], 0.0).astype(jnp.bfloat16)
    y = jnp.dot(a, w_ref[...], preferred_element_type=jnp.float32)
    y_ref[...] = y
    sum_ref[...] = jnp.sum(y, axis=0, keepdims=True)[None]
    ssq_ref[...] = jnp.sum(y * y, axis=0, keepdims=True)[None]


def _make_conv3x3_kernel(sh, sw, Ho, Wo, Cn):
    """3x3 conv (stride (sh, sw), pad 1) for one batch element.

    a_ref block = (1, sh*sw, Hpp, Wpp, Cn): the BN1+ReLU activation, zero
    padded and split into stride phases (glue side).  The 9-tap im2col patch
    matrix is built in a VMEM scratch (never touches HBM) and consumed by a
    single (Ho*Wo, 9*Cn) @ (9*Cn, Cout) MXU matmul.
    """
    taps = []
    for kh in range(3):
        for kw in range(3):
            taps.append((kh * 3 + kw,                 # tap id
                         (kh % sh) * sw + (kw % sw),  # stride-phase plane
                         kh // sh, kw // sw))         # static offsets in plane

    def kernel(a_ref, w_ref, y_ref, sum_ref, ssq_ref, col_ref):
        for t, p, oh, ow in taps:
            for i in range(Ho):  # static, unrolled: pure VMEM window copies
                col_ref[i * Wo:(i + 1) * Wo, t * Cn:(t + 1) * Cn] = (
                    a_ref[0, p, oh + i, ow:ow + Wo, :])
        y = jnp.dot(col_ref[...], w_ref[...], preferred_element_type=jnp.float32)
        y_ref[0] = y
        sum_ref[...] = jnp.sum(y, axis=0, keepdims=True)[None]
        ssq_ref[...] = jnp.sum(y * y, axis=0, keepdims=True)[None]

    return kernel


def _bn_add_bn_relu_kernel(y_ref, s_ref, b_ref, r_ref, sr_ref, br_ref, o_ref):
    # relu( (y*s + b) + (r*sr + br) )  -- BN3 + residual(+its BN) + final ReLU.
    main = y_ref[...] * s_ref[...] + b_ref[...]
    res = r_ref[...] * sr_ref[...] + br_ref[...]
    o_ref[...] = jnp.maximum(main + res, 0.0)


# ----------------------------------------------------------------------------
# pallas_call wrappers
# ----------------------------------------------------------------------------
def _round_up(x, m):
    return ((x + m - 1) // m) * m


def _pick_tm(M):
    for t in (512, 256, 128, 64, 32, 16, 8):
        if t <= M and M % t == 0:
            return t
    return M


def _pad_rows(x, m_target, pad_value=0.0):
    M = x.shape[0]
    if M == m_target:
        return x
    pv = jnp.asarray(pad_value, dtype=x.dtype)
    pad = jnp.broadcast_to(pv, (m_target - M,) + x.shape[1:])
    return jnp.concatenate([x, pad], axis=0)


def _scale_shift(total_sum, total_ssq, count, gamma, beta, eps=EPS):
    # Training-mode BatchNorm (biased variance) from fused sum / sum-of-squares.
    mean = total_sum / count
    var = jnp.maximum(total_ssq / count - mean * mean, 0.0)
    scale = gamma / jnp.sqrt(var + eps)
    shift = beta - mean * scale
    return scale, shift


def _conv1x1_stats(x, w_bf16, scale=None, shift=None):
    """1x1 conv as a channel matmul, per-channel stats fused as extra outputs.

    If scale/shift are given, relu(x*scale + shift) (previous stage's BN+ReLU)
    is applied to the input tile inside the kernel.
    """
    Mp, K = x.shape
    C = w_bf16.shape[1]
    tm = _pick_tm(Mp)
    nt = Mp // tm
    out_shape = (jax.ShapeDtypeStruct((Mp, C), jnp.float32),
                 jax.ShapeDtypeStruct((nt, 1, C), jnp.float32),
                 jax.ShapeDtypeStruct((nt, 1, C), jnp.float32))
    out_specs = (pl.BlockSpec((tm, C), lambda i: (i, 0)),
                 pl.BlockSpec((1, 1, C), lambda i: (i, 0, 0)),
                 pl.BlockSpec((1, 1, C), lambda i: (i, 0, 0)))
    if scale is None:
        y, ps, pq = pl.pallas_call(
            _mm_stats_kernel,
            out_shape=out_shape,
            grid=(nt,),
            in_specs=[pl.BlockSpec((tm, K), lambda i: (i, 0)),
                      pl.BlockSpec((K, C), lambda i: (0, 0))],
            out_specs=out_specs,
            compiler_params=_compiler_params(),
        )(x, w_bf16)
    else:
        y, ps, pq = pl.pallas_call(
            _bn_relu_mm_stats_kernel,
            out_shape=out_shape,
            grid=(nt,),
            in_specs=[pl.BlockSpec((tm, K), lambda i: (i, 0)),
                      pl.BlockSpec((1, K), lambda i: (0, 0)),
                      pl.BlockSpec((1, K), lambda i: (0, 0)),
                      pl.BlockSpec((K, C), lambda i: (0, 0))],
            out_specs=out_specs,
            compiler_params=_compiler_params(),
        )(x, scale.reshape(1, K), shift.reshape(1, K), w_bf16)
    return y, jnp.sum(ps, axis=(0, 1)), jnp.sum(pq, axis=(0, 1))


def _conv3x3_stats(planes, w2_flat, Ho, Wo, strides):
    sh, sw = strides
    N, P, Hpp, Wpp, Cn = planes.shape
    Cout = w2_flat.shape[1]
    Mo = Ho * Wo
    kernel = _make_conv3x3_kernel(sh, sw, Ho, Wo, Cn)
    y, ps, pq = pl.pallas_call(
        kernel,
        out_shape=(jax.ShapeDtypeStruct((N, Mo, Cout), jnp.float32),
                   jax.ShapeDtypeStruct((N, 1, Cout), jnp.float32),
                   jax.ShapeDtypeStruct((N, 1, Cout), jnp.float32)),
        grid=(N,),
        in_specs=[pl.BlockSpec((1, P, Hpp, Wpp, Cn), lambda n: (n, 0, 0, 0, 0)),
                  pl.BlockSpec((9 * Cn, Cout), lambda n: (0, 0))],
        out_specs=(pl.BlockSpec((1, Mo, Cout), lambda n: (n, 0, 0)),
                   pl.BlockSpec((1, 1, Cout), lambda n: (n, 0, 0)),
                   pl.BlockSpec((1, 1, Cout), lambda n: (n, 0, 0))),
        scratch_shapes=[pltpu.VMEM((Mo, 9 * Cn), jnp.bfloat16)],
        compiler_params=_compiler_params(),
    )(planes, w2_flat)
    return y, jnp.sum(ps, axis=(0, 1)), jnp.sum(pq, axis=(0, 1))


def _bn_add_bn_relu(y, s, b, r, sr, br):
    Mp, C = y.shape
    tm = _pick_tm(Mp)
    return pl.pallas_call(
        _bn_add_bn_relu_kernel,
        out_shape=jax.ShapeDtypeStruct((Mp, C), jnp.float32),
        grid=(Mp // tm,),
        in_specs=[pl.BlockSpec((tm, C), lambda i: (i, 0)),
                  pl.BlockSpec((1, C), lambda i: (0, 0)),
                  pl.BlockSpec((1, C), lambda i: (0, 0)),
                  pl.BlockSpec((tm, C), lambda i: (i, 0)),
                  pl.BlockSpec((1, C), lambda i: (0, 0)),
                  pl.BlockSpec((1, C), lambda i: (0, 0))],
        out_specs=pl.BlockSpec((tm, C), lambda i: (i, 0)),
        compiler_params=_compiler_params(),
    )(y, s.reshape(1, C), b.reshape(1, C), r, sr.reshape(1, C), br.reshape(1, C))


# ----------------------------------------------------------------------------
# BottleNeck_Block forward (Pallas)
# ----------------------------------------------------------------------------
@functools.partial(jax.jit, static_argnames=("strides", "has_downsample"))
def bottleneck_forward(x_nchw, params, strides, has_downsample):
    N, Cin, H, W = x_nchw.shape
    sh, sw = strides
    x = jnp.transpose(x_nchw, (0, 2, 3, 1)).astype(jnp.float32)  # NHWC

    # weights: PyTorch OIHW -> channel-matmul form, cast once to bf16
    w1 = params["w1"][:, :, 0, 0].T.astype(jnp.bfloat16)                 # (Cin, Cn)
    Cn = w1.shape[1]
    w2 = jnp.transpose(params["w2"], (2, 3, 1, 0)).reshape(9 * Cn, Cn)   # (9Cn, Cn)
    w2 = w2.astype(jnp.bfloat16)
    w3 = params["w3"][:, :, 0, 0].T.astype(jnp.bfloat16)                 # (Cn, Cout)
    Cout = w3.shape[1]

    Ho = (H + 2 - 3) // sh + 1
    Wo = (W + 2 - 3) // sw + 1
    M1, M2 = N * H * W, N * Ho * Wo

    # --- conv1 (1x1) + fused channel stats -----------------------------------
    M1p = _round_up(M1, 8)
    x_flat = _pad_rows(x.reshape(M1, Cin), M1p).astype(jnp.bfloat16)
    y1, sum1, ssq1 = _conv1x1_stats(x_flat, w1)                 # (M1p, Cn) f32
    s1, b1 = _scale_shift(sum1, ssq1, M1, params["g1"], params["b1"])

    # --- BN1 + ReLU + zero pad + stride-phase split (one fused XLA pass) -----
    a1 = jnp.maximum(y1[:M1] * s1[None, :] + b1[None, :], 0.0)
    a1 = a1.astype(jnp.bfloat16).reshape(N, H, W, Cn)
    Hpp = max(-(-(H + 2) // sh), 2 // sh + Ho)
    Wpp = max(-(-(W + 2) // sw), 2 // sw + Wo)
    buf = jnp.zeros((N, sh * Hpp, sw * Wpp, Cn), jnp.bfloat16)
    buf = buf.at[:, 1:H + 1, 1:W + 1, :].set(a1)
    planes = buf.reshape(N, Hpp, sh, Wpp, sw, Cn)
    planes = planes.transpose(0, 2, 4, 1, 3, 5).reshape(N, sh * sw, Hpp, Wpp, Cn)

    # --- conv2 (3x3, stride, pad 1): in-kernel VMEM im2col + fused stats -----
    y2, sum2, ssq2 = _conv3x3_stats(planes, w2, Ho, Wo, strides)  # (N, Ho*Wo, Cn)
    s2, b2 = _scale_shift(sum2, ssq2, M2, params["g2"], params["b2"])

    # --- conv3 (1x1) with BN2+ReLU fused on the input + fused stats ----------
    M2p = _round_up(M2, 8)
    safe_s2 = jnp.where(s2 != 0, s2, 1.0)
    pad2 = jnp.where(s2 != 0, -b2 / safe_s2, 0.0)  # rows BN2+ReLU maps to zero
    y2_flat = _pad_rows(y2.reshape(M2, Cn), M2p, pad2)
    y3, sum3, ssq3 = _conv1x1_stats(y2_flat, w3, scale=s2, shift=b2)   # (M2p, Cout)
    s3, b3 = _scale_shift(sum3, ssq3, M2, params["g3"], params["b3"])

    # --- residual path --------------------------------------------------------
    if has_downsample:
        wd = params["wd"][:, :, 0, 0].T.astype(jnp.bfloat16)             # (Cin, Cout)
        xd = x[:, ::sh, ::sw, :].reshape(M2, Cin)
        xd = _pad_rows(xd, M2p).astype(jnp.bfloat16)
        res, sumd, ssqd = _conv1x1_stats(xd, wd)
        sr, br = _scale_shift(sumd, ssqd, M2, params["gd"], params["bd"])
    else:
        # identity shortcut (only valid for stride (1,1) and Cin == Cout)
        res = _pad_rows(x.reshape(M1, Cout), M2p)
        sr = jnp.ones((Cout,), jnp.float32)
        br = jnp.zeros((Cout,), jnp.float32)

    # --- BN3 + residual (with its BN) + final ReLU ----------------------------
    out = _bn_add_bn_relu(y3, s3, b3, res, sr, br)[:M2]
    return jnp.transpose(out.reshape(N, Ho, Wo, Cout), (0, 3, 1, 2))  # NCHW


# ----------------------------------------------------------------------------
# Pure-JAX reference (NCHW, mirrors the PyTorch module)
# ----------------------------------------------------------------------------
def reference_forward(x, params, strides, has_downsample, conv_dtype=jnp.float32):
    """conv_dtype=float32: exact PyTorch-semantics reference.
    conv_dtype=bfloat16: same structure with the kernel's MXU input precision."""
    prec = (jax.lax.Precision.HIGHEST
            if conv_dtype == jnp.float32 else jax.lax.Precision.DEFAULT)

    def conv(x, w, stride=(1, 1), pad=(0, 0)):
        return jax.lax.conv_general_dilated(
            x.astype(conv_dtype), w.astype(conv_dtype),
            window_strides=stride,
            padding=[(pad[0], pad[0]), (pad[1], pad[1])],
            dimension_numbers=("NCHW", "OIHW", "NCHW"),
            preferred_element_type=jnp.float32,
            precision=prec)

    def bn(y, gamma, beta):
        mean = jnp.mean(y, axis=(0, 2, 3), keepdims=True)
        var = jnp.var(y, axis=(0, 2, 3), keepdims=True)  # biased, like PyTorch
        yhat = (y - mean) / jnp.sqrt(var + EPS)
        return yhat * gamma[None, :, None, None] + beta[None, :, None, None]

    out = jax.nn.relu(bn(conv(x, params["w1"]), params["g1"], params["b1"]))
    out = jax.nn.relu(bn(conv(out, params["w2"], stride=strides, pad=(1, 1)),
                         params["g2"], params["b2"]))
    out = bn(conv(out, params["w3"]), params["g3"], params["b3"])
    if has_downsample:
        idn = bn(conv(x, params["wd"], stride=strides), params["gd"], params["bd"])
    else:
        idn = x
    return jax.nn.relu(out + idn)


# ----------------------------------------------------------------------------
# Main
# ----------------------------------------------------------------------------
if __name__ == "__main__":
    key = jax.random.PRNGKey(0)
    N, Cin, H, W = 2, 8, 16, 16
    Cneck = 4
    Cout = 4 * Cneck
    strides = (2, 2)
    has_downsample = (strides != (1, 1)) or (Cin != Cout)

    ks = jax.random.split(key, 16)
    x = jax.random.normal(ks[0], (N, Cin, H, W), jnp.float32)

    params = {
        "w1": 0.2 * jax.random.normal(ks[1], (Cneck, Cin, 1, 1), jnp.float32),
        "w2": 0.2 * jax.random.normal(ks[2], (Cneck, Cneck, 3, 3), jnp.float32),
        "w3": 0.2 * jax.random.normal(ks[3], (Cout, Cneck, 1, 1), jnp.float32),
        "g1": 1.0 + 0.1 * jax.random.normal(ks[4], (Cneck,), jnp.float32),
        "b1": 0.1 * jax.random.normal(ks[5], (Cneck,), jnp.float32),
        "g2": 1.0 + 0.1 * jax.random.normal(ks[6], (Cneck,), jnp.float32),
        "b2": 0.1 * jax.random.normal(ks[7], (Cneck,), jnp.float32),
        "g3": 1.0 + 0.1 * jax.random.normal(ks[8], (Cout,), jnp.float32),
        "b3": 0.1 * jax.random.normal(ks[9], (Cout,), jnp.float32),
    }
    if has_downsample:
        params["wd"] = 0.2 * jax.random.normal(ks[10], (Cout, Cin, 1, 1), jnp.float32)
        params["gd"] = 1.0 + 0.1 * jax.random.normal(ks[11], (Cout,), jnp.float32)
        params["bd"] = 0.1 * jax.random.normal(ks[12], (Cout,), jnp.float32)

    out = jax.block_until_ready(
        bottleneck_forward(x, params, strides, has_downsample))
    assert out.shape == (N, Cout, H // strides[0], W // strides[1]), out.shape

    # tight check vs a reference using the same bf16 MXU input precision
    ref_bf16 = jax.block_until_ready(
        reference_forward(x, params, strides, has_downsample,
                          conv_dtype=jnp.bfloat16))
    err_bf16 = float(jnp.max(jnp.abs(out - ref_bf16)))
    assert err_bf16 < 3e-2, f"max abs error vs bf16-matched reference: {err_bf16}"

    # sanity check vs the exact f32 (PyTorch-semantics) reference
    ref_f32 = jax.block_until_ready(
        reference_forward(x, params, strides, has_downsample,
                          conv_dtype=jnp.float32))
    err_f32 = float(jnp.max(jnp.abs(out - ref_f32)))
    assert err_f32 < 0.15, f"max abs error vs f32 reference: {err_f32}"

    print("KERNEL_OK")
</pallas_src>

<mosaic_0001>
module attributes {stable_mosaic.version = 11 : i64} {
  func.func @_mm_stats_kernel(%arg0: i32, %arg1: memref<512x8xbf16, #tpu.memory_space<vmem>>, %arg2: memref<8x4xbf16, #tpu.memory_space<vmem>>, %arg3: memref<512x4xf32, #tpu.memory_space<vmem>>, %arg4: memref<1x1x4xf32, #tpu.memory_space<vmem>>, %arg5: memref<1x1x4xf32, #tpu.memory_space<vmem>>) attributes {dimension_semantics = [#tpu.dimension_semantics<parallel>], iteration_bounds = array<i64: 1>, scalar_prefetch = 0 : i64, scratch_operands = 0 : i64, tpu.core_type = #tpu.core_type<tc>, window_params = [{transform_indices = @transform_0, window_bounds = array<i64: 512, 8>}, {pipeline_mode = #tpu.pipeline_mode<synchronous>, transform_indices = @transform_1, window_bounds = array<i64: 8, 4>}, {transform_indices = @transform_2, window_bounds = array<i64: 512, 4>}, {transform_indices = @transform_3, window_bounds = array<i64: 1, 1, 4>}, {transform_indices = @transform_4, window_bounds = array<i64: 1, 1, 4>}]} {
    %c0 = arith.constant 0 : index
    %c0_0 = arith.constant 0 : index
    %0 = vector.load %arg1[%c0, %c0_0] : memref<512x8xbf16, #tpu.memory_space<vmem>>, vector<512x8xbf16>
    %c0_1 = arith.constant 0 : index
    %c0_2 = arith.constant 0 : index
    %1 = vector.load %arg2[%c0_1, %c0_2] : memref<8x4xbf16, #tpu.memory_space<vmem>>, vector<8x4xbf16>
    %cst = arith.constant dense<0.000000e+00> : vector<512x4xf32>
    %2 = tpu.matmul %0, %1, %cst {dimension_numbers = #tpu.dot_dimension_numbers<[1], [0], [0], [1], [0, 0, 1, 1], [], []>} : vector<512x8xbf16>, vector<8x4xbf16>, vector<512x4xf32> -> vector<512x4xf32>
    %c0_3 = arith.constant 0 : index
    %c0_4 = arith.constant 0 : index
    %3 = vector.load %arg3[%c0_3, %c0_4] : memref<512x4xf32, #tpu.memory_space<vmem>>, vector<512x4xf32>
    tpu.vector_store %arg3[%c0_3, %c0_4], %2 {strides = array<i32>} : memref<512x4xf32, #tpu.memory_space<vmem>>, vector<512x4xf32>,
    %cst_5 = arith.constant dense<0.000000e+00> : vector<4xf32>
    %4 = vector.multi_reduction <add>, %2, %cst_5 [0] : vector<512x4xf32> to vector<4xf32>
    %5 = vector.shape_cast %4 : vector<4xf32> to vector<1x4xf32>
    %6 = vector.shape_cast %5 : vector<1x4xf32> to vector<1x1x4xf32>
    %c0_6 = arith.constant 0 : index
    %c0_7 = arith.constant 0 : index
    %c0_8 = arith.constant 0 : index
    %7 = vector.load %arg4[%c0_6, %c0_7, %c0_8] : memref<1x1x4xf32, #tpu.memory_space<vmem>>, vector<1x1x4xf32>
    tpu.vector_store %arg4[%c0_6, %c0_7, %c0_8], %6 {strides = array<i32>} : memref<1x1x4xf32, #tpu.memory_space<vmem>>, vector<1x1x4xf32>,
    %8 = arith.mulf %2, %2 : vector<512x4xf32>
    %cst_9 = arith.constant dense<0.000000e+00> : vector<4xf32>
    %9 = vector.multi_reduction <add>, %8, %cst_9 [0] : vector<512x4xf32> to vector<4xf32>
    %10 = vector.shape_cast %9 : vector<4xf32> to vector<1x4xf32>
    %11 = vector.shape_cast %10 : vector<1x4xf32> to vector<1x1x4xf32>
    %c0_10 = arith.constant 0 : index
    %c0_11 = arith.constant 0 : index
    %c0_12 = arith.constant 0 : index
    %12 = vector.load %arg5[%c0_10, %c0_11, %c0_12] : memref<1x1x4xf32, #tpu.memory_space<vmem>>, vector<1x1x4xf32>
    tpu.vector_store %arg5[%c0_10, %c0_11, %c0_12], %11 {strides = array<i32>} : memref<1x1x4xf32, #tpu.memory_space<vmem>>, vector<1x1x4xf32>,
    return
  }
  func.func @transform_0(%arg0: i32) -> (i32, i32) {
    %c0_i32 = arith.constant 0 : i32
    %c0_i32_0 = arith.constant 0 : i32
    return %arg0, %c0_i32 : i32, i32
  }
  func.func @transform_1(%arg0: i32) -> (i32, i32) {
    %c0_i32 = arith.constant 0 : i32
    %c0_i32_0 = arith.constant 0 : i32
    %c0_i32_1 = arith.constant 0 : i32
    return %c0_i32, %c0_i32_0 : i32, i32
  }
  func.func @transform_2(%arg0: i32) -> (i32, i32) {
    %c0_i32 = arith.constant 0 : i32
    %c0_i32_0 = arith.constant 0 : i32
    return %arg0, %c0_i32 : i32, i32
  }
  func.func @transform_3(%arg0: i32) -> (i32, i32, i32) {
    %c0_i32 = arith.constant 0 : i32
    %c0_i32_0 = arith.constant 0 : i32
    %c0_i32_1 = arith.constant 0 : i32
    return %arg0, %c0_i32, %c0_i32_0 : i32, i32, i32
  }
  func.func @transform_4(%arg0: i32) -> (i32, i32, i32) {
    %c0_i32 = arith.constant 0 : i32
    %c0_i32_0 = arith.constant 0 : i32
    %c0_i32_1 = arith.constant 0 : i32
    return %arg0, %c0_i32, %c0_i32_0 : i32, i32, i32
  }
}

module attributes {stable_mosaic.version = 11 : i64} {
  func.func @_bn_relu_mm_stats_kernel(%arg0: i32, %arg1: memref<128x4xf32, #tpu.memory_space<vmem>>, %arg2: memref<1x4xf32, #tpu.memory_space<vmem>>, %arg3: memref<1x4xf32, #tpu.memory_space<vmem>>, %arg4: memref<4x16xbf16, #tpu.memory_space<vmem>>, %arg5: memref<128x16xf32, #tpu.memory_space<vmem>>, %arg6: memref<1x1x16xf32, #tpu.memory_space<vmem>>, %arg7: memref<1x1x16xf32, #tpu.memory_space<vmem>>) attributes {dimension_semantics = [#tpu.dimension_semantics<parallel>], iteration_bounds = array<i64: 1>, scalar_prefetch = 0 : i64, scratch_operands = 0 : i64, tpu.core_type = #tpu.core_type<tc>, window_params = [{transform_indices = @transform_0, window_bounds = array<i64: 128, 4>}, {pipeline_mode = #tpu.pipeline_mode<synchronous>, transform_indices = @transform_1, window_bounds = array<i64: 1, 4>}, {pipeline_mode = #tpu.pipeline_mode<synchronous>, transform_indices = @transform_2, window_bounds = array<i64: 1, 4>}, {pipeline_mode = #tpu.pipeline_mode<synchronous>, transform_indices = @transform_3, window_bounds = array<i64: 4, 16>}, {transform_indices = @transform_4, window_bounds = array<i64: 128, 16>}, {transform_indices = @transform_5, window_bounds = array<i64: 1, 1, 16>}, {transform_indices = @transform_6, window_bounds = array<i64: 1, 1, 16>}]} {
    %c0 = arith.constant 0 : index
    %c0_0 = arith.constant 0 : index
    %0 = vector.load %arg1[%c0, %c0_0] : memref<128x4xf32, #tpu.memory_space<vmem>>, vector<128x4xf32>
    %c0_1 = arith.constant 0 : index
    %c0_2 = arith.constant 0 : index
    %1 = vector.load %arg2[%c0_1, %c0_2] : memref<1x4xf32, #tpu.memory_space<vmem>>, vector<1x4xf32>
    %2 = vector.broadcast %1 : vector<1x4xf32> to vector<128x4xf32>
    %3 = arith.mulf %0, %2 : vector<128x4xf32>
    %c0_3 = arith.constant 0 : index
    %c0_4 = arith.constant 0 : index
    %4 = vector.load %arg3[%c0_3, %c0_4] : memref<1x4xf32, #tpu.memory_space<vmem>>, vector<1x4xf32>
    %5 = vector.broadcast %4 : vector<1x4xf32> to vector<128x4xf32>
    %6 = arith.addf %3, %5 : vector<128x4xf32>
    %cst = arith.constant 0.000000e+00 : f32
    %7 = vector.broadcast %cst : f32 to vector<128x4xf32>
    %8 = arith.maximumf %6, %7 : vector<128x4xf32>
    %9 = arith.truncf %8 : vector<128x4xf32> to vector<128x4xbf16>
    %c0_5 = arith.constant 0 : index
    %c0_6 = arith.constant 0 : index
    %10 = vector.load %arg4[%c0_5, %c0_6] : memref<4x16xbf16, #tpu.memory_space<vmem>>, vector<4x16xbf16>
    %cst_7 = arith.constant dense<0.000000e+00> : vector<128x16xf32>
    %11 = tpu.matmul %9, %10, %cst_7 {dimension_numbers = #tpu.dot_dimension_numbers<[1], [0], [0], [1], [0, 0, 1, 1], [], []>} : vector<128x4xbf16>, vector<4x16xbf16>, vector<128x16xf32> -> vector<128x16xf32>
    %c0_8 = arith.constant 0 : index
    %c0_9 = arith.constant 0 : index
    %12 = vector.load %arg5[%c0_8, %c0_9] : memref<128x16xf32, #tpu.memory_space<vmem>>, vector<128x16xf32>
    tpu.vector_store %arg5[%c0_8, %c0_9], %11 {strides = array<i32>} : memref<128x16xf32, #tpu.memory_space<vmem>>, vector<128x16xf32>,
    %cst_10 = arith.constant dense<0.000000e+00> : vector<16xf32>
    %13 = vector.multi_reduction <add>, %11, %cst_10 [0] : vector<128x16xf32> to vector<16xf32>
    %14 = vector.shape_cast %13 : vector<16xf32> to vector<1x16xf32>
    %15 = vector.shape_cast %14 : vector<1x16xf32> to vector<1x1x16xf32>
    %c0_11 = arith.constant 0 : index
    %c0_12 = arith.constant 0 : index
    %c0_13 = arith.constant 0 : index
    %16 = vector.load %arg6[%c0_11, %c0_12, %c0_13] : memref<1x1x16xf32, #tpu.memory_space<vmem>>, vector<1x1x16xf32>
    tpu.vector_store %arg6[%c0_11, %c0_12, %c0_13], %15 {strides = array<i32>} : memref<1x1x16xf32, #tpu.memory_space<vmem>>, vector<1x1x16xf32>,
    %17 = arith.mulf %11, %11 : vector<128x16xf32>
    %cst_14 = arith.constant dense<0.000000e+00> : vector<16xf32>
    %18 = vector.multi_reduction <add>, %17, %cst_14 [0] : vector<128x16xf32> to vector<16xf32>
    %19 = vector.shape_cast %18 : vector<16xf32> to vector<1x16xf32>
    %20 = vector.shape_cast %19 : vector<1x16xf32> to vector<1x1x16xf32>
    %c0_15 = arith.constant 0 : index
    %c0_16 = arith.constant 0 : index
    %c0_17 = arith.constant 0 : index
    %21 = vector.load %arg7[%c0_15, %c0_16, %c0_17] : memref<1x1x16xf32, #tpu.memory_space<vmem>>, vector<1x1x16xf32>
    tpu.vector_store %arg7[%c0_15, %c0_16, %c0_17], %20 {strides = array<i32>} : memref<1x1x16xf32, #tpu.memory_space<vmem>>, vector<1x1x16xf32>,
    return
  }
  func.func @transform_0(%arg0: i32) -> (i32, i32) {
    %c0_i32 = arith.constant 0 : i32
    %c0_i32_0 = arith.constant 0 : i32
    return %arg0, %c0_i32 : i32, i32
  }
  func.func @transform_1(%arg0: i32) -> (i32, i32) {
    %c0_i32 = arith.constant 0 : i32
    %c0_i32_0 = arith.constant 0 : i32
    %c0_i32_1 = arith.constant 0 : i32
    return %c0_i32, %c0_i32_0 : i32, i32
  }
  func.func @transform_2(%arg0: i32) -> (i32, i32) {
    %c0_i32 = arith.constant 0 : i32
    %c0_i32_0 = arith.constant 0 : i32
    %c0_i32_1 = arith.constant 0 : i32
    return %c0_i32, %c0_i32_0 : i32, i32
  }
  func.func @transform_3(%arg0: i32) -> (i32, i32) {
    %c0_i32 = arith.constant 0 : i32
    %c0_i32_0 = arith.constant 0 : i32
    %c0_i32_1 = arith.constant 0 : i32
    return %c0_i32, %c0_i32_0 : i32, i32
  }
  func.func @transform_4(%arg0: i32) -> (i32, i32) {
    %c0_i32 = arith.constant 0 : i32
    %c0_i32_0 = arith.constant 0 : i32
    return %arg0, %c0_i32 : i32, i32
  }
  func.func @transform_5(%arg0: i32) -> (i32, i32, i32) {
    %c0_i32 = arith.constant 0 : i32
    %c0_i32_0 = arith.constant 0 : i32
    %c0_i32_1 = arith.constant 0 : i32
    return %arg0, %c0_i32, %c0_i32_0 : i32, i32, i32
  }
  func.func @transform_6(%arg0: i32) -> (i32, i32, i32) {
    %c0_i32 = arith.constant 0 : i32
    %c0_i32_0 = arith.constant 0 : i32
    %c0_i32_1 = arith.constant 0 : i32
    return %arg0, %c0_i32, %c0_i32_0 : i32, i32, i32
  }
}

module attributes {stable_mosaic.version = 11 : i64} {
  func.func @kernel(%arg0: i32, %arg1: memref<1x4x9x9x4xbf16, #tpu.memory_space<vmem>>, %arg2: memref<36x4xbf16, #tpu.memory_space<vmem>>, %arg3: memref<1x64x4xf32, #tpu.memory_space<vmem>>, %arg4: memref<1x1x4xf32, #tpu.memory_space<vmem>>, %arg5: memref<1x1x4xf32, #tpu.memory_space<vmem>>, %arg6: memref<64x36xbf16, #tpu.memory_space<vmem>>) attributes {dimension_semantics = [#tpu.dimension_semantics<parallel>], iteration_bounds = array<i64: 2>, scalar_prefetch = 0 : i64, scratch_operands = 1 : i64, tpu.core_type = #tpu.core_type<tc>, window_params = [{transform_indices = @transform_0, window_bounds = array<i64: 1, 4, 9, 9, 4>}, {pipeline_mode = #tpu.pipeline_mode<synchronous>, transform_indices = @transform_1, window_bounds = array<i64: 36, 4>}, {transform_indices = @transform_2, window_bounds = array<i64: 1, 64, 4>}, {transform_indices = @transform_3, window_bounds = array<i64: 1, 1, 4>}, {transform_indices = @transform_4, window_bounds = array<i64: 1, 1, 4>}]} {
    %c0 = arith.constant 0 : index
    %c0_0 = arith.constant 0 : index
    %c0_1 = arith.constant 0 : index
    %c0_2 = arith.constant 0 : index
    %c0_3 = arith.constant 0 : index
    %0 = vector.load %arg1[%c0, %c0_0, %c0_1, %c0_2, %c0_3] : memref<1x4x9x9x4xbf16, #tpu.memory_space<vmem>>, vector<1x1x1x8x4xbf16>
    %1 = vector.shape_cast %0 : vector<1x1x1x8x4xbf16> to vector<8x4xbf16>
    %c0_4 = arith.constant 0 : index
    %c0_5 = arith.constant 0 : index
    %2 = vector.load %arg6[%c0_4, %c0_5] : memref<64x36xbf16, #tpu.memory_space<vmem>>, vector<8x4xbf16>
    tpu.vector_store %arg6[%c0_4, %c0_5], %1 {strides = array<i32>} : memref<64x36xbf16, #tpu.memory_space<vmem>>, vector<8x4xbf16>,
    %c0_6 = arith.constant 0 : index
    %c0_7 = arith.constant 0 : index
    %c1 = arith.constant 1 : index
    %c0_8 = arith.constant 0 : index
    %c0_9 = arith.constant 0 : index
    %3 = vector.load %arg1[%c0_6, %c0_7, %c1, %c0_8, %c0_9] : memref<1x4x9x9x4xbf16, #tpu.memory_space<vmem>>, vector<1x1x1x8x4xbf16>
    %4 = vector.shape_cast %3 : vector<1x1x1x8x4xbf16> to vector<8x4xbf16>
    %c8 = arith.constant 8 : index
    %c0_10 = arith.constant 0 : index
    %5 = vector.load %arg6[%c8, %c0_10] : memref<64x36xbf16, #tpu.memory_space<vmem>>, vector<8x4xbf16>
    tpu.vector_store %arg6[%c8, %c0_10], %4 {strides = array<i32>} : memref<64x36xbf16, #tpu.memory_space<vmem>>, vector<8x4xbf16>,
    %c0_11 = arith.constant 0 : index
    %c0_12 = arith.constant 0 : index
    %c2 = arith.constant 2 : index
    %c0_13 = arith.constant 0 : index
    %c0_14 = arith.constant 0 : index
    %6 = vector.load %arg1[%c0_11, %c0_12, %c2, %c0_13, %c0_14] : memref<1x4x9x9x4xbf16, #tpu.memory_space<vmem>>, vector<1x1x1x8x4xbf16>
    %7 = vector.shape_cast %6 : vector<1x1x1x8x4xbf16> to vector<8x4xbf16>
    %c16 = arith.constant 16 : index
    %c0_15 = arith.constant 0 : index
    %8 = vector.load %arg6[%c16, %c0_15] : memref<64x36xbf16, #tpu.memory_space<vmem>>, vector<8x4xbf16>
    tpu.vector_store %arg6[%c16, %c0_15], %7 {strides = array<i32>} : memref<64x36xbf16, #tpu.memory_space<vmem>>, vector<8x4xbf16>,
    %c0_16 = arith.constant 0 : index
    %c0_17 = arith.constant 0 : index
    %c3 = arith.constant 3 : index
    %c0_18 = arith.constant 0 : index
    %c0_19 = arith.constant 0 : index
    %9 = vector.load %arg1[%c0_16, %c0_17, %c3, %c0_18, %c0_19] : memref<1x4x9x9x4xbf16, #tpu.memory_space<vmem>>, vector<1x1x1x8x4xbf16>
    %10 = vector.shape_cast %9 : vector<1x1x1x8x4xbf16> to vector<8x4xbf16>
    %c24 = arith.constant 24 : index
    %c0_20 = arith.constant 0 : index
    %11 = vector.load %arg6[%c24, %c0_20] : memref<64x36xbf16, #tpu.memory_space<vmem>>, vector<8x4xbf16>
    tpu.vector_store %arg6[%c24, %c0_20], %10 {strides = array<i32>} : memref<64x36xbf16, #tpu.memory_space<vmem>>, vector<8x4xbf16>,
    %c0_21 = arith.constant 0 : index
    %c0_22 = arith.constant 0 : index
    %c4 = arith.constant 4 : index
    %c0_23 = arith.constant 0 : index
    %c0_24 = arith.constant 0 : index
    %12 = vector.load %arg1[%c0_21, %c0_22, %c4, %c0_23, %c0_24] : memref<1x4x9x9x4xbf16, #tpu.memory_space<vmem>>, vector<1x1x1x8x4xbf16>
    %13 = vector.shape_cast %12 : vector<1x1x1x8x4xbf16> to vector<8x4xbf16>
    %c32 = arith.constant 32 : index
    %c0_25 = arith.constant 0 : index
    %14 = vector.load %arg6[%c32, %c0_25] : memref<64x36xbf16, #tpu.memory_space<vmem>>, vector<8x4xbf16>
    tpu.vector_store %arg6[%c32, %c0_25], %13 {strides = array<i32>} : memref<64x36xbf16, #tpu.memory_space<vmem>>, vector<8x4xbf16>,
    %c0_26 = arith.constant 0 : index
    %c0_27 = arith.constant 0 : index
    %c5 = arith.constant 5 : index
    %c0_28 = arith.constant 0 : index
    %c0_29 = arith.constant 0 : index
    %15 = vector.load %arg1[%c0_26, %c0_27, %c5, %c0_28, %c0_29] : memref<1x4x9x9x4xbf16, #tpu.memory_space<vmem>>, vector<1x1x1x8x4xbf16>
    %16 = vector.shape_cast %15 : vector<1x1x1x8x4xbf16> to vector<8x4xbf16>
    %c40 = arith.constant 40 : index
    %c0_30 = arith.constant 0 : index
    %17 = vector.load %arg6[%c40, %c0_30] : memref<64x36xbf16, #tpu.memory_space<vmem>>, vector<8x4xbf16>
    tpu.vector_store %arg6[%c40, %c0_30], %16 {strides = array<i32>} : memref<64x36xbf16, #tpu.memory_space<vmem>>, vector<8x4xbf16>,
    %c0_31 = arith.constant 0 : index
    %c0_32 = arith.constant 0 : index
    %c6 = arith.constant 6 : index
    %c0_33 = arith.constant 0 : index
    %c0_34 = arith.constant 0 : index
    %18 = vector.load %arg1[%c0_31, %c0_32, %c6, %c0_33, %c0_34] : memref<1x4x9x9x4xbf16, #tpu.memory_space<vmem>>, vector<1x1x1x8x4xbf16>
    %19 = vector.shape_cast %18 : vector<1x1x1x8x4xbf16> to vector<8x4xbf16>
    %c48 = arith.constant 48 : index
    %c0_35 = arith.constant 0 : index
    %20 = vector.load %arg6[%c48, %c0_35] : memref<64x36xbf16, #tpu.memory_space<vmem>>, vector<8x4xbf16>
    tpu.vector_store %arg6[%c48, %c0_35], %19 {strides = array<i32>} : memref<64x36xbf16, #tpu.memory_space<vmem>>, vector<8x4xbf16>,
    %c0_36 = arith.constant 0 : index
    %c0_37 = arith.constant 0 : index
    %c7 = arith.constant 7 : index
    %c0_38 = arith.constant 0 : index
    %c0_39 = arith.constant 0 : index
    %21 = vector.load %arg1[%c0_36, %c0_37, %c7, %c0_38, %c0_39] : memref<1x4x9x9x4xbf16, #tpu.memory_space<vmem>>, vector<1x1x1x8x4xbf16>
    %22 = vector.shape_cast %21 : vector<1x1x1x8x4xbf16> to vector<8x4xbf16>
    %c56 = arith.constant 56 : index
    %c0_40 = arith.constant 0 : index
    %23 = vector.load %arg6[%c56, %c0_40] : memref<64x36xbf16, #tpu.memory_space<vmem>>, vector<8x4xbf16>
    tpu.vector_store %arg6[%c56, %c0_40], %22 {strides = array<i32>} : memref<64x36xbf16, #tpu.memory_space<vmem>>, vector<8x4xbf16>,
    %c0_41 = arith.constant 0 : index
    %c1_42 = arith.constant 1 : index
    %c0_43 = arith.constant 0 : index
    %c0_44 = arith.constant 0 : index
    %c0_45 = arith.constant 0 : index
    %24 = vector.load %arg1[%c0_41, %c1_42, %c0_43, %c0_44, %c0_45] : memref<1x4x9x9x4xbf16, #tpu.memory_space<vmem>>, vector<1x1x1x8x4xbf16>
    %25 = vector.shape_cast %24 : vector<1x1x1x8x4xbf16> to vector<8x4xbf16>
    %c0_46 = arith.constant 0 : index
    %c4_47 = arith.constant 4 : index
    %26 = vector.load %arg6[%c0_46, %c4_47] : memref<64x36xbf16, #tpu.memory_space<vmem>>, vector<8x4xbf16>
    tpu.vector_store %arg6[%c0_46, %c4_47], %25 {strides = array<i32>} : memref<64x36xbf16, #tpu.memory_space<vmem>>, vector<8x4xbf16>,
    %c0_48 = arith.constant 0 : index
    %c1_49 = arith.constant 1 : index
    %c1_50 = arith.constant 1 : index
    %c0_51 = arith.constant 0 : index
    %c0_52 = arith.constant 0 : index
    %27 = vector.load %arg1[%c0_48, %c1_49, %c1_50, %c0_51, %c0_52] : memref<1x4x9x9x4xbf16, #tpu.memory_space<vmem>>, vector<1x1x1x8x4xbf16>
    %28 = vector.shape_cast %27 : vector<1x1x1x8x4xbf16> to vector<8x4xbf16>
    %c8_53 = arith.constant 8 : index
    %c4_54 = arith.constant 4 : index
    %29 = vector.load %arg6[%c8_53, %c4_54] : memref<64x36xbf16, #tpu.memory_space<vmem>>, vector<8x4xbf16>
    tpu.vector_store %arg6[%c8_53, %c4_54], %28 {strides = array<i32>} : memref<64x36xbf16, #tpu.memory_space<vmem>>, vector<8x4xbf16>,
    %c0_55 = arith.constant 0 : index
    %c1_56 = arith.constant 1 : index
    %c2_57 = arith.constant 2 : index
    %c0_58 = arith.constant 0 : index
    %c0_59 = arith.constant 0 : index
    %30 = vector.load %arg1[%c0_55, %c1_56, %c2_57, %c0_58, %c0_59] : memref<1x4x9x9x4xbf16, #tpu.memory_space<vmem>>, vector<1x1x1x8x4xbf16>
    %31 = vector.shape_cast %30 : vector<1x1x1x8x4xbf16> to vector<8x4xbf16>
    %c16_60 = arith.constant 16 : index
    %c4_61 = arith.constant 4 : index
    %32 = vector.load %arg6[%c16_60, %c4_61] : memref<64x36xbf16, #tpu.memory_space<vmem>>, vector<8x4xbf16>
    tpu.vector_store %arg6[%c16_60, %c4_61], %31 {strides = array<i32>} : memref<64x36xbf16, #tpu.memory_space<vmem>>, vector<8x4xbf16>,
    %c0_62 = arith.constant 0 : index
    %c1_63 = arith.constant 1 : index
    %c3_64 = arith.constant 3 : index
    %c0_65 = arith.constant 0 : index
    %c0_66 = arith.constant 0 : index
    %33 = vector.load %arg1[%c0_62, %c1_63, %c3_64, %c0_65, %c0_66] : memref<1x4x9x9x4xbf16, #tpu.memory_space<vmem>>, vector<1x1x1x8x4xbf16>
    %34 = vector.shape_cast %33 : vector<1x1x1x8x4xbf16> to vector<8x4xbf16>
    %c24_67 = arith.constant 24 : index
    %c4_68 = arith.constant 4 : index
    %35 = vector.load %arg6[%c24_67, %c4_68] : memref<64x36xbf16, #tpu.memory_space<vmem>>, vector<8x4xbf16>
    tpu.vector_store %arg6[%c24_67, %c4_68], %34 {strides = array<i32>} : memref<64x36xbf16, #tpu.memory_space<vmem>>, vector<8x4xbf16>,
    %c0_69 = arith.constant 0 : index
    %c1_70 = arith.constant 1 : index
    %c4_71 = arith.constant 4 : index
    %c0_72 = arith.constant 0 : index
    %c0_73 = arith.constant 0 : index
    %36 = vector.load %arg1[%c0_69, %c1_70, %c4_71, %c0_72, %c0_73] : memref<1x4x9x9x4xbf16, #tpu.memory_space<vmem>>, vector<1x1x1x8x4xbf16>
    %37 = vector.shape_cast %36 : vector<1x1x1x8x4xbf16> to vector<8x4xbf16>
    %c32_74 = arith.constant 32 : index
    %c4_75 = arith.constant 4 : index
    %38 = vector.load %arg6[%c32_74, %c4_75] : memref<64x36xbf16, #tpu.memory_space<vmem>>, vector<8x4xbf16>
    tpu.vector_store %arg6[%c32_74, %c4_75], %37 {strides = array<i32>} : memref<64x36xbf16, #tpu.memory_space<vmem>>, vector<8x4xbf16>,
    %c0_76 = arith.constant 0 : index
    %c1_77 = arith.constant 1 : index
    %c5_78 = arith.constant 5 : index
    %c0_79 = arith.constant 0 : index
    %c0_80 = arith.constant 0 : index
    %39 = vector.load %arg1[%c0_76, %c1_77, %c5_78, %c0_79, %c0_80] : memref<1x4x9x9x4xbf16, #tpu.memory_space<vmem>>, vector<1x1x1x8x4xbf16>
    %40 = vector.shape_cast %39 : vector<1x1x1x8x4xbf16> to vector<8x4xbf16>
    %c40_81 = arith.constant 40 : index
    %c4_82 = arith.constant 4 : index
    %41 = vector.load %arg6[%c40_81, %c4_82] : memref<64x36xbf16, #tpu.memory_space<vmem>>, vector<8x4xbf16>
    tpu.vector_store %arg6[%c40_81, %c4_82], %40 {strides = array<i32>} : memref<64x36xbf16, #tpu.memory_space<vmem>>, vector<8x4xbf16>,
    %c0_83 = arith.constant 0 : index
    %c1_84 = arith.constant 1 : index
    %c6_85 = arith.constant 6 : index
    %c0_86 = arith.constant 0 : index
    %c0_87 = arith.constant 0 : index
    %42 = vector.load %arg1[%c0_83, %c1_84, %c6_85, %c0_86, %c0_87] : memref<1x4x9x9x4xbf16, #tpu.memory_space<vmem>>, vector<1x1x1x8x4xbf16>
    %43 = vector.shape_cast %42 : vector<1x1x1x8x4xbf16> to vector<8x4xbf16>
    %c48_88 = arith.constant 48 : index
    %c4_89 = arith.constant 4 : index
    %44 = vector.load %arg6[%c48_88, %c4_89] : memref<64x36xbf16, #tpu.memory_space<vmem>>, vector<8x4xbf16>
    tpu.vector_store %arg6[%c48_88, %c4_89], %43 {strides = array<i32>} : memref<64x36xbf16, #tpu.memory_space<vmem>>, vector<8x4xbf16>,
    %c0_90 = arith.constant 0 : index
    %c1_91 = arith.constant 1 : index
    %c7_92 = arith.constant 7 : index
    %c0_93 = arith.constant 0 : index
    %c0_94 = arith.constant 0 : index
    %45 = vector.load %arg1[%c0_90, %c1_91, %c7_92, %c0_93, %c0_94] : memref<1x4x9x9x4xbf16, #tpu.memory_space<vmem>>, vector<1x1x1x8x4xbf16>
    %46 = vector.shape_cast %45 : vector<1x1x1x8x4xbf16> to vector<8x4xbf16>
    %c56_95 = arith.constant 56 : index
    %c4_96 = arith.constant 4 : index
    %47 = vector.load %arg6[%c56_95, %c4_96] : memref<64x36xbf16, #tpu.memory_space<vmem>>, vector<8x4xbf16>
    tpu.vector_store %arg6[%c56_95, %c4_96], %46 {strides = array<i32>} : memref<64x36xbf16, #tpu.memory_space<vmem>>, vector<8x4xbf16>,
    %c0_97 = arith.constant 0 : index
    %c0_98 = arith.constant 0 : index
    %c0_99 = arith.constant 0 : index
    %c1_100 = arith.constant 1 : index
    %c0_101 = arith.constant 0 : index
    %48 = vector.load %arg1[%c0_97, %c0_98, %c0_99, %c1_100, %c0_101] : memref<1x4x9x9x4xbf16, #tpu.memory_space<vmem>>, vector<1x1x1x8x4xbf16>
    %49 = vector.shape_cast %48 : vector<1x1x1x8x4xbf16> to vector<8x4xbf16>
    %c0_102 = arith.constant 0 : index
    %c8_103 = arith.constant 8 : index
    %50 = vector.load %arg6[%c0_102, %c8_103] : memref<64x36xbf16, #tpu.memory_space<vmem>>, vector<8x4xbf16>
    tpu.vector_store %arg6[%c0_102, %c8_103], %49 {strides = array<i32>} : memref<64x36xbf16, #tpu.memory_space<vmem>>, vector<8x4xbf16>,
    %c0_104 = arith.constant 0 : index
    %c0_105 = arith.constant 0 : index
    %c1_106 = arith.constant 1 : index
    %c1_107 = arith.constant 1 : index
    %c0_108 = arith.constant 0 : index
    %51 = vector.load %arg1[%c0_104, %c0_105, %c1_106, %c1_107, %c0_108] : memref<1x4x9x9x4xbf16, #tpu.memory_space<vmem>>, vector<1x1x1x8x4xbf16>
    %52 = vector.shape_cast %51 : vector<1x1x1x8x4xbf16> to vector<8x4xbf16>
    %c8_109 = arith.constant 8 : index
    %c8_110 = arith.constant 8 : index
    %53 = vector.load %arg6[%c8_109, %c8_110] : memref<64x36xbf16, #tpu.memory_space<vmem>>, vector<8x4xbf16>
    tpu.vector_store %arg6[%c8_109, %c8_110], %52 {strides = array<i32>} : memref<64x36xbf16, #tpu.memory_space<vmem>>, vector<8x4xbf16>,
    %c0_111 = arith.constant 0 : index
    %c0_112 = arith.constant 0 : index
    %c2_113 = arith.constant 2 : index
    %c1_114 = arith.constant 1 : index
    %c0_115 = arith.constant 0 : index
    %54 = vector.load %arg1[%c0_111, %c0_112, %c2_113, %c1_114, %c0_115] : memref<1x4x9x9x4xbf16, #tpu.memory_space<vmem>>, vector<1x1x1x8x4xbf16>
    %55 = vector.shape_cast %54 : vector<1x1x1x8x4xbf16> to vector<8x4xbf16>
    %c16_116 = arith.constant 16 : index
    %c8_117 = arith.constant 8 : index
    %56 = vector.load %arg6[%c16_116, %c8_117] : memref<64x36xbf16, #tpu.memory_space<vmem>>, vector<8x4xbf16>
    tpu.vector_store %arg6[%c16_116, %c8_117], %55 {strides = array<i32>} : memref<64x36xbf16, #tpu.memory_space<vmem>>, vector<8x4xbf16>,
    %c0_118 = arith.constant 0 : index
    %c0_119 = arith.constant 0 : index
    %c3_120 = arith.constant 3 : index
    %c1_121 = arith.constant 1 : index
    %c0_122 = arith.constant 0 : index
    %57 = vector.load %arg1[%c0_118, %c0_119, %c3_120, %c1_121, %c0_122] : memref<1x4x9x9x4xbf16, #tpu.memory_space<vmem>>, vector<1x1x1x8x4xbf16>
    %58 = vector.shape_cast %57 : vector<1x1x1x8x4xbf16> to vector<8x4xbf16>
    %c24_123 = arith.constant 24 : index
    %c8_124 = arith.constant 8 : index
    %59 = vector.load %arg6[%c24_123, %c8_124] : memref<64x36xbf16, #tpu.memory_space<vmem>>, vector<8x4xbf16>
    tpu.vector_store %arg6[%c24_123, %c8_124], %58 {strides = array<i32>} : memref<64x36xbf16, #tpu.memory_space<vmem>>, vector<8x4xbf16>,
    %c0_125 = arith.constant 0 : index
    %c0_126 = arith.constant 0 : index
    %c4_127 = arith.constant 4 : index
    %c1_128 = arith.constant 1 : index
    %c0_129 = arith.constant 0 : index
    %60 = vector.load %arg1[%c0_125, %c0_126, %c4_127, %c1_128, %c0_129] : memref<1x4x9x9x4xbf16, #tpu.memory_space<vmem>>, vector<1x1x1x8x4xbf16>
    %61 = vector.shape_cast %60 : vector<1x1x1x8x4xbf16> to vector<8x4xbf16>
    %c32_130 = arith.constant 32 : index
    %c8_131 = arith.constant 8 : index
    %62 = vector.load %arg6[%c32_130, %c8_131] : memref<64x36xbf16, #tpu.memory_space<vmem>>, vector<8x4xbf16>
    tpu.vector_store %arg6[%c32_130, %c8_131], %61 {strides = array<i32>} : memref<64x36xbf16, #tpu.memory_space<vmem>>, vector<8x4xbf16>,
    %c0_132 = arith.constant 0 : index
    %c0_133 = arith.constant 0 : index
    %c5_134 = arith.constant 5 : index
    %c1_135 = arith.constant 1 : index
    %c0_136 = arith.constant 0 : index
    %63 = vector.load %arg1[%c0_132, %c0_133, %c5_134, %c1_135, %c0_136] : memref<1x4x9x9x4xbf16, #tpu.memory_space<vmem>>, vector<1x1x1x8x4xbf16>
    %64 = vector.shape_cast %63 : vector<1x1x1x8x4xbf16> to vector<8x4xbf16>
    %c40_137 = arith.constant 40 : index
    %c8_138 = arith.constant 8 : index
    %65 = vector.load %arg6[%c40_137, %c8_138] : memref<64x36xbf16, #tpu.memory_space<vmem>>, vector<8x4xbf16>
    tpu.vector_store %arg6[%c40_137, %c8_138], %64 {strides = array<i32>} : memref<64x36xbf16, #tpu.memory_space<vmem>>, vector<8x4xbf16>,
    %c0_139 = arith.constant 0 : index
    %c0_140 = arith.constant 0 : index
    %c6_141 = arith.constant 6 : index
    %c1_142 = arith.constant 1 : index
    %c0_143 = arith.constant 0 : index
    %66 = vector.load %arg1[%c0_139, %c0_140, %c6_141, %c1_142, %c0_143] : memref<1x4x9x9x4xbf16, #tpu.memory_space<vmem>>, vector<1x1x1x8x4xbf16>
    %67 = vector.shape_cast %66 : vector<1x1x1x8x4xbf16> to vector<8x4xbf16>
    %c48_144 = arith.constant 48 : index
    %c8_145 = arith.constant 8 : index
    %68 = vector.load %arg6[%c48_144, %c8_145] : memref<64x36xbf16, #tpu.memory_space<vmem>>, vector<8x4xbf16>
    tpu.vector_store %arg6[%c48_144, %c8_145], %67 {strides = array<i32>} : memref<64x36xbf16, #tpu.memory_space<vmem>>, vector<8x4xbf16>,
    %c0_146 = arith.constant 0 : index
    %c0_147 = arith.constant 0 : index
    %c7_148 = arith.constant 7 : index
    %c1_149 = arith.constant 1 : index
    %c0_150 = arith.constant 0 : index
    %69 = vector.load %arg1[%c0_146, %c0_147, %c7_148, %c1_149, %c0_150] : memref<1x4x9x9x4xbf16, #tpu.memory_space<vmem>>, vector<1x1x1x8x4xbf16>
    %70 = vector.shape_cast %69 : vector<1x1x1x8x4xbf16> to vector<8x4xbf16>
    %c56_151 = arith.constant 56 : index
    %c8_152 = arith.constant 8 : index
    %71 = vector.load %arg6[%c56_151, %c8_152] : memref<64x36xbf16, #tpu.memory_space<vmem>>, vector<8x4xbf16>
    tpu.vector_store %arg6[%c56_151, %c8_152], %70 {strides = array<i32>} : memref<64x36xbf16, #tpu.memory_space<vmem>>, vector<8x4xbf16>,
    %c0_153 = arith.constant 0 : index
    %c2_154 = arith.constant 2 : index
    %c0_155 = arith.constant 0 : index
    %c0_156 = arith.constant 0 : index
    %c0_157 = arith.constant 0 : index
    %72 = vector.load %arg1[%c0_153, %c2_154, %c0_155, %c0_156, %c0_157] : memref<1x4x9x9x4xbf16, #tpu.memory_space<vmem>>, vector<1x1x1x8x4xbf16>
    %73 = vector.shape_cast %72 : vector<1x1x1x8x4xbf16> to vector<8x4xbf16>
    %c0_158 = arith.constant 0 : index
    %c12 = arith.constant 12 : index
    %74 = vector.load %arg6[%c0_158, %c12] : memref<64x36xbf16, #tpu.memory_space<vmem>>, vector<8x4xbf16>
    tpu.vector_store %arg6[%c0_158, %c12], %73 {strides = array<i32>} : memref<64x36xbf16, #tpu.memory_space<vmem>>, vector<8x4xbf16>,
    %c0_159 = arith.constant 0 : index
    %c2_160 = arith.constant 2 : index
    %c1_161 = arith.constant 1 : index
    %c0_162 = arith.constant 0 : index
    %c0_163 = arith.constant 0 : index
    %75 = vector.load %arg1[%c0_159, %c2_160, %c1_161, %c0_162, %c0_163] : memref<1x4x9x9x4xbf16, #tpu.memory_space<vmem>>, vector<1x1x1x8x4xbf16>
    %76 = vector.shape_cast %75 : vector<1x1x1x8x4xbf16> to vector<8x4xbf16>
    %c8_164 = arith.constant 8 : index
    %c12_165 = arith.constant 12 : index
    %77 = vector.load %arg6[%c8_164, %c12_165] : memref<64x36xbf16, #tpu.memory_space<vmem>>, vector<8x4xbf16>
    tpu.vector_store %arg6[%c8_164, %c12_165], %76 {strides = array<i32>} : memref<64x36xbf16, #tpu.memory_space<vmem>>, vector<8x4xbf16>,
    %c0_166 = arith.constant 0 : index
    %c2_167 = arith.constant 2 : index
    %c2_168 = arith.constant 2 : index
    %c0_169 = arith.constant 0 : index
    %c0_170 = arith.constant 0 : index
    %78 = vector.load %arg1[%c0_166, %c2_167, %c2_168, %c0_169, %c0_170] : memref<1x4x9x9x4xbf16, #tpu.memory_space<vmem>>, vector<1x1x1x8x4xbf16>
    %79 = vector.shape_cast %78 : vector<1x1x1x8x4xbf16> to vector<8x4xbf16>
    %c16_171 = arith.constant 16 : index
    %c12_172 = arith.constant 12 : index
    %80 = vector.load %arg6[%c16_171, %c12_172] : memref<64x36xbf16, #tpu.memory_space<vmem>>, vector<8x4xbf16>
    tpu.vector_store %arg6[%c16_171, %c12_172], %79 {strides = array<i32>} : memref<64x36xbf16, #tpu.memory_space<vmem>>, vector<8x4xbf16>,
    %c0_173 = arith.constant 0 : index
    %c2_174 = arith.constant 2 : index
    %c3_175 = arith.constant 3 : index
    %c0_176 = arith.constant 0 : index
    %c0_177 = arith.constant 0 : index
    %81 = vector.load %arg1[%c0_173, %c2_174, %c3_175, %c0_176, %c0_177] : memref<1x4x9x9x4xbf16, #tpu.memory_space<vmem>>, vector<1x1x1x8x4xbf16>
    %82 = vector.shape_cast %81 : vector<1x1x1x8x4xbf16> to vector<8x4xbf16>
    %c24_178 = arith.constant 24 : index
    %c12_179 = arith.constant 12 : index
    %83 = vector.load %arg6[%c24_178, %c12_179] : memref<64x36xbf16, #tpu.memory_space<vmem>>, vector<8x4xbf16>
    tpu.vector_store %arg6[%c24_178, %c12_179], %82 {strides = array<i32>} : memref<64x36xbf16, #tpu.memory_space<vmem>>, vector<8x4xbf16>,
    %c0_180 = arith.constant 0 : index
    %c2_181 = arith.constant 2 : index
    %c4_182 = arith.constant 4 : index
    %c0_183 = arith.constant 0 : index
    %c0_184 = arith.constant 0 : index
    %84 = vector.load %arg1[%c0_180, %c2_181, %c4_182, %c0_183, %c0_184] : memref<1x4x9x9x4xbf16, #tpu.memory_space<vmem>>, vector<1x1x1x8x4xbf16>
    %85 = vector.shape_cast %84 : vector<1x1x1x8x4xbf16> to vector<8x4xbf16>
    %c32_185 = arith.constant 32 : index
    %c12_186 = arith.constant 12 : index
    %86 = vector.load %arg6[%c32_185, %c12_186] : memref<64x36xbf16, #tpu.memory_space<vmem>>, vector<8x4xbf16>
    tpu.vector_store %arg6[%c32_185, %c12_186], %85 {strides = array<i32>} : memref<64x36xbf16, #tpu.memory_space<vmem>>, vector<8x4xbf16>,
    %c0_187 = arith.constant 0 : index
    %c2_188 = arith.constant 2 : index
    %c5_189 = arith.constant 5 : index
    %c0_190 = arith.constant 0 : index
    %c0_191 = arith.constant 0 : index
    %87 = vector.load %arg1[%c0_187, %c2_188, %c5_189, %c0_190, %c0_191] : memref<1x4x9x9x4xbf16, #tpu.memory_space<vmem>>, vector<1x1x1x8x4xbf16>
    %88 = vector.shape_cast %87 : vector<1x1x1x8x4xbf16> to vector<8x4xbf16>
    %c40_192 = arith.constant 40 : index
    %c12_193 = arith.constant 12 : index
    %89 = vector.load %arg6[%c40_192, %c12_193] : memref<64x36xbf16, #tpu.memory_space<vmem>>, vector<8x4xbf16>
    tpu.vector_store %arg6[%c40_192, %c12_193], %88 {strides = array<i32>} : memref<64x36xbf16, #tpu.memory_space<vmem>>, vector<8x4xbf16>,
    %c0_194 = arith.constant 0 : index
    %c2_195 = arith.constant 2 : index
    %c6_196 = arith.constant 6 : index
    %c0_197 = arith.constant 0 : index
    %c0_198 = arith.constant 0 : index
    %90 = vector.load %arg1[%c0_194, %c2_195, %c6_196, %c0_197, %c0_198] : memref<1x4x9x9x4xbf16, #tpu.memory_space<vmem>>, vector<1x1x1x8x4xbf16>
    %91 = vector.shape_cast %90 : vector<1x1x1x8x4xbf16> to vector<8x4xbf16>
    %c48_199 = arith.constant 48 : index
    %c12_200 = arith.constant 12 : index
    %92 = vector.load %arg6[%c48_199, %c12_200] : memref<64x36xbf16, #tpu.memory_space<vmem>>, vector<8x4xbf16>
    tpu.vector_store %arg6[%c48_199, %c12_200], %91 {strides = array<i32>} : memref<64x36xbf16, #tpu.memory_space<vmem>>, vector<8x4xbf16>,
    %c0_201 = arith.constant 0 : index
    %c2_202 = arith.constant 2 : index
    %c7_203 = arith.constant 7 : index
    %c0_204 = arith.constant 0 : index
    %c0_205 = arith.constant 0 : index
    %93 = vector.load %arg1[%c0_201, %c2_202, %c7_203, %c0_204, %c0_205] : memref<1x4x9x9x4xbf16, #tpu.memory_space<vmem>>, vector<1x1x1x8x4xbf16>
    %94 = vector.shape_cast %93 : vector<1x1x1x8x4xbf16> to vector<8x4xbf16>
    %c56_206 = arith.constant 56 : index
    %c12_207 = arith.constant 12 : index
    %95 = vector.load %arg6[%c56_206, %c12_207] : memref<64x36xbf16, #tpu.memory_space<vmem>>, vector<8x4xbf16>
    tpu.vector_store %arg6[%c56_206, %c12_207], %94 {strides = array<i32>} : memref<64x36xbf16, #tpu.memory_space<vmem>>, vector<8x4xbf16>,
    %c0_208 = arith.constant 0 : index
    %c3_209 = arith.constant 3 : index
    %c0_210 = arith.constant 0 : index
    %c0_211 = arith.constant 0 : index
    %c0_212 = arith.constant 0 : index
    %96 = vector.load %arg1[%c0_208, %c3_209, %c0_210, %c0_211, %c0_212] : memref<1x4x9x9x4xbf16, #tpu.memory_space<vmem>>, vector<1x1x1x8x4xbf16>
    %97 = vector.shape_cast %96 : vector<1x1x1x8x4xbf16> to vector<8x4xbf16>
    %c0_213 = arith.constant 0 : index
    %c16_214 = arith.constant 16 : index
    %98 = vector.load %arg6[%c0_213, %c16_214] : memref<64x36xbf16, #tpu.memory_space<vmem>>, vector<8x4xbf16>
    tpu.vector_store %arg6[%c0_213, %c16_214], %97 {strides = array<i32>} : memref<64x36xbf16, #tpu.memory_space<vmem>>, vector<8x4xbf16>,
    %c0_215 = arith.constant 0 : index
    %c3_216 = arith.constant 3 : index
    %c1_217 = arith.constant 1 : index
    %c0_218 = arith.constant 0 : index
    %c0_219 = arith.constant 0 : index
    %99 = vector.load %arg1[%c0_215, %c3_216, %c1_217, %c0_218, %c0_219] : memref<1x4x9x9x4xbf16, #tpu.memory_space<vmem>>, vector<1x1x1x8x4xbf16>
    %100 = vector.shape_cast %99 : vector<1x1x1x8x4xbf16> to vector<8x4xbf16>
    %c8_220 = arith.constant 8 : index
    %c16_221 = arith.constant 16 : index
    %101 = vector.load %arg6[%c8_220, %c16_221] : memref<64x36xbf16, #tpu.memory_space<vmem>>, vector<8x4xbf16>
    tpu.vector_store %arg6[%c8_220, %c16_221], %100 {strides = array<i32>} : memref<64x36xbf16, #tpu.memory_space<vmem>>, vector<8x4xbf16>,
    %c0_222 = arith.constant 0 : index
    %c3_223 = arith.constant 3 : index
    %c2_224 = arith.constant 2 : index
    %c0_225 = arith.constant 0 : index
    %c0_226 = arith.constant 0 : index
    %102 = vector.load %arg1[%c0_222, %c3_223, %c2_224, %c0_225, %c0_226] : memref<1x4x9x9x4xbf16, #tpu.memory_space<vmem>>, vector<1x1x1x8x4xbf16>
    %103 = vector.shape_cast %102 : vector<1x1x1x8x4xbf16> to vector<8x4xbf16>
    %c16_227 = arith.constant 16 : index
    %c16_228 = arith.constant 16 : index
    %104 = vector.load %arg6[%c16_227, %c16_228] : memref<64x36xbf16, #tpu.memory_space<vmem>>, vector<8x4xbf16>
    tpu.vector_store %arg6[%c16_227, %c16_228], %103 {strides = array<i32>} : memref<64x36xbf16, #tpu.memory_space<vmem>>, vector<8x4xbf16>,
    %c0_229 = arith.constant 0 : index
    %c3_230 = arith.constant 3 : index
    %c3_231 = arith.constant 3 : index
    %c0_232 = arith.constant 0 : index
    %c0_233 = arith.constant 0 : index
    %105 = vector.load %arg1[%c0_229, %c3_230, %c3_231, %c0_232, %c0_233] : memref<1x4x9x9x4xbf16, #tpu.memory_space<vmem>>, vector<1x1x1x8x4xbf16>
    %106 = vector.shape_cast %105 : vector<1x1x1x8x4xbf16> to vector<8x4xbf16>
    %c24_234 = arith.constant 24 : index
    %c16_235 = arith.constant 16 : index
    %107 = vector.load %arg6[%c24_234, %c16_235] : memref<64x36xbf16, #tpu.memory_space<vmem>>, vector<8x4xbf16>
    tpu.vector_store %arg6[%c24_234, %c16_235], %106 {strides = array<i32>} : memref<64x36xbf16, #tpu.memory_space<vmem>>, vector<8x4xbf16>,
    %c0_236 = arith.constant 0 : index
    %c3_237 = arith.constant 3 : index
    %c4_238 = arith.constant 4 : index
    %c0_239 = arith.constant 0 : index
    %c0_240 = arith.constant 0 : index
    %108 = vector.load %arg1[%c0_236, %c3_237, %c4_238, %c0_239, %c0_240] : memref<1x4x9x9x4xbf16, #tpu.memory_space<vmem>>, vector<1x1x1x8x4xbf16>
    %109 = vector.shape_cast %108 : vector<1x1x1x8x4xbf16> to vector<8x4xbf16>
    %c32_241 = arith.constant 32 : index
    %c16_242 = arith.constant 16 : index
    %110 = vector.load %arg6[%c32_241, %c16_242] : memref<64x36xbf16, #tpu.memory_space<vmem>>, vector<8x4xbf16>
    tpu.vector_store %arg6[%c32_241, %c16_242], %109 {strides = array<i32>} : memref<64x36xbf16, #tpu.memory_space<vmem>>, vector<8x4xbf16>,
    %c0_243 = arith.constant 0 : index
    %c3_244 = arith.constant 3 : index
    %c5_245 = arith.constant 5 : index
    %c0_246 = arith.constant 0 : index
    %c0_247 = arith.constant 0 : index
    %111 = vector.load %arg1[%c0_243, %c3_244, %c5_245, %c0_246, %c0_247] : memref<1x4x9x9x4xbf16, #tpu.memory_space<vmem>>, vector<1x1x1x8x4xbf16>
    %112 = vector.shape_cast %111 : vector<1x1x1x8x4xbf16> to vector<8x4xbf16>
    %c40_248 = arith.constant 40 : index
    %c16_249 = arith.constant 16 : index
    %113 = vector.load %arg6[%c40_248, %c16_249] : memref<64x36xbf16, #tpu.memory_space<vmem>>, vector<8x4xbf16>
    tpu.vector_store %arg6[%c40_248, %c16_249], %112 {strides = array<i32>} : memref<64x36xbf16, #tpu.memory_space<vmem>>, vector<8x4xbf16>,
    %c0_250 = arith.constant 0 : index
    %c3_251 = arith.constant 3 : index
    %c6_252 = arith.constant 6 : index
    %c0_253 = arith.constant 0 : index
    %c0_254 = arith.constant 0 : index
    %114 = vector.load %arg1[%c0_250, %c3_251, %c6_252, %c0_253, %c0_254] : memref<1x4x9x9x4xbf16, #tpu.memory_space<vmem>>, vector<1x1x1x8x4xbf16>
    %115 = vector.shape_cast %114 : vector<1x1x1x8x4xbf16> to vector<8x4xbf16>
    %c48_255 = arith.constant 48 : index
    %c16_256 = arith.constant 16 : index
    %116 = vector.load %arg6[%c48_255, %c16_256] : memref<64x36xbf16, #tpu.memory_space<vmem>>, vector<8x4xbf16>
    tpu.vector_store %arg6[%c48_255, %c16_256], %115 {strides = array<i32>} : memref<64x36xbf16, #tpu.memory_space<vmem>>, vector<8x4xbf16>,
    %c0_257 = arith.constant 0 : index
    %c3_258 = arith.constant 3 : index
    %c7_259 = arith.constant 7 : index
    %c0_260 = arith.constant 0 : index
    %c0_261 = arith.constant 0 : index
    %117 = vector.load %arg1[%c0_257, %c3_258, %c7_259, %c0_260, %c0_261] : memref<1x4x9x9x4xbf16, #tpu.memory_space<vmem>>, vector<1x1x1x8x4xbf16>
    %118 = vector.shape_cast %117 : vector<1x1x1x8x4xbf16> to vector<8x4xbf16>
    %c56_262 = arith.constant 56 : index
    %c16_263 = arith.constant 16 : index
    %119 = vector.load %arg6[%c56_262, %c16_263] : memref<64x36xbf16, #tpu.memory_space<vmem>>, vector<8x4xbf16>
    tpu.vector_store %arg6[%c56_262, %c16_263], %118 {strides = array<i32>} : memref<64x36xbf16, #tpu.memory_space<vmem>>, vector<8x4xbf16>,
    %c0_264 = arith.constant 0 : index
    %c2_265 = arith.constant 2 : index
    %c0_266 = arith.constant 0 : index
    %c1_267 = arith.constant 1 : index
    %c0_268 = arith.constant 0 : index
    %120 = vector.load %arg1[%c0_264, %c2_265, %c0_266, %c1_267, %c0_268] : memref<1x4x9x9x4xbf16, #tpu.memory_space<vmem>>, vector<1x1x1x8x4xbf16>
    %121 = vector.shape_cast %120 : vector<1x1x1x8x4xbf16> to vector<8x4xbf16>
    %c0_269 = arith.constant 0 : index
    %c20 = arith.constant 20 : index
    %122 = vector.load %arg6[%c0_269, %c20] : memref<64x36xbf16, #tpu.memory_space<vmem>>, vector<8x4xbf16>
    tpu.vector_store %arg6[%c0_269, %c20], %121 {strides = array<i32>} : memref<64x36xbf16, #tpu.memory_space<vmem>>, vector<8x4xbf16>,
    %c0_270 = arith.constant 0 : index
    %c2_271 = arith.constant 2 : index
    %c1_272 = arith.constant 1 : index
    %c1_273 = arith.constant 1 : index
    %c0_274 = arith.constant 0 : index
    %123 = vector.load %arg1[%c0_270, %c2_271, %c1_272, %c1_273, %c0_274] : memref<1x4x9x9x4xbf16, #tpu.memory_space<vmem>>, vector<1x1x1x8x4xbf16>
    %124 = vector.shape_cast %123 : vector<1x1x1x8x4xbf16> to vector<8x4xbf16>
    %c8_275 = arith.constant 8 : index
    %c20_276 = arith.constant 20 : index
    %125 = vector.load %arg6[%c8_275, %c20_276] : memref<64x36xbf16, #tpu.memory_space<vmem>>, vector<8x4xbf16>
    tpu.vector_store %arg6[%c8_275, %c20_276], %124 {strides = array<i32>} : memref<64x36xbf16, #tpu.memory_space<vmem>>, vector<8x4xbf16>,
    %c0_277 = arith.constant 0 : index
    %c2_278 = arith.constant 2 : index
    %c2_279 = arith.constant 2 : index
    %c1_280 = arith.constant 1 : index
    %c0_281 = arith.constant 0 : index
    %126 = vector.load %arg1[%c0_277, %c2_278, %c2_279, %c1_280, %c0_281] : memref<1x4x9x9x4xbf16, #tpu.memory_space<vmem>>, vector<1x1x1x8x4xbf16>
    %127 = vector.shape_cast %126 : vector<1x1x1x8x4xbf16> to vector<8x4xbf16>
    %c16_282 = arith.constant 16 : index
    %c20_283 = arith.constant 20 : index
    %128 = vector.load %arg6[%c16_282, %c20_283] : memref<64x36xbf16, #tpu.memory_space<vmem>>, vector<8x4xbf16>
    tpu.vector_store %arg6[%c16_282, %c20_283], %127 {strides = array<i32>} : memref<64x36xbf16, #tpu.memory_space<vmem>>, vector<8x4xbf16>,
    %c0_284 = arith.constant 0 : index
    %c2_285 = arith.constant 2 : index
    %c3_286 = arith.constant 3 : index
    %c1_287 = arith.constant 1 : index
    %c0_288 = arith.constant 0 : index
    %129 = vector.load %arg1[%c0_284, %c2_285, %c3_286, %c1_287, %c0_288] : memref<1x4x9x9x4xbf16, #tpu.memory_space<vmem>>, vector<1x1x1x8x4xbf16>
    %130 = vector.shape_cast %129 : vector<1x1x1x8x4xbf16> to vector<8x4xbf16>
    %c24_289 = arith.constant 24 : index
    %c20_290 = arith.constant 20 : index
    %131 = vector.load %arg6[%c24_289, %c20_290] : memref<64x36xbf16, #tpu.memory_space<vmem>>, vector<8x4xbf16>
    tpu.vector_store %arg6[%c24_289, %c20_290], %130 {strides = array<i32>} : memref<64x36xbf16, #tpu.memory_space<vmem>>, vector<8x4xbf16>,
    %c0_291 = arith.constant 0 : index
    %c2_292 = arith.constant 2 : index
    %c4_293 = arith.constant 4 : index
    %c1_294 = arith.constant 1 : index
    %c0_295 = arith.constant 0 : index
    %132 = vector.load %arg1[%c0_291, %c2_292, %c4_293, %c1_294, %c0_295] : memref<1x4x9x9x4xbf16, #tpu.memory_space<vmem>>, vector<1x1x1x8x4xbf16>
    %133 = vector.shape_cast %132 : vector<1x1x1x8x4xbf16> to vector<8x4xbf16>
    %c32_296 = arith.constant 32 : index
    %c20_297 = arith.constant 20 : index
    %134 = vector.load %arg6[%c32_296, %c20_297] : memref<64x36xbf16, #tpu.memory_space<vmem>>, vector<8x4xbf16>
    tpu.vector_store %arg6[%c32_296, %c20_297], %133 {strides = array<i32>} : memref<64x36xbf16, #tpu.memory_space<vmem>>, vector<8x4xbf16>,
    %c0_298 = arith.constant 0 : index
    %c2_299 = arith.constant 2 : index
    %c5_300 = arith.constant 5 : index
    %c1_301 = arith.constant 1 : index
    %c0_302 = arith.constant 0 : index
    %135 = vector.load %arg1[%c0_298, %c2_299, %c5_300, %c1_301, %c0_302] : memref<1x4x9x9x4xbf16, #tpu.memory_space<vmem>>, vector<1x1x1x8x4xbf16>
    %136 = vector.shape_cast %135 : vector<1x1x1x8x4xbf16> to vector<8x4xbf16>
    %c40_303 = arith.constant 40 : index
    %c20_304 = arith.constant 20 : index
    %137 = vector.load %arg6[%c40_303, %c20_304] : memref<64x36xbf16, #tpu.memory_space<vmem>>, vector<8x4xbf16>
    tpu.vector_store %arg6[%c40_303, %c20_304], %136 {strides = array<i32>} : memref<64x36xbf16, #tpu.memory_space<vmem>>, vector<8x4xbf16>,
    %c0_305 = arith.constant 0 : index
    %c2_306 = arith.constant 2 : index
    %c6_307 = arith.constant 6 : index
    %c1_308 = arith.constant 1 : index
    %c0_309 = arith.constant 0 : index
    %138 = vector.load %arg1[%c0_305, %c2_306, %c6_307, %c1_308, %c0_309] : memref<1x4x9x9x4xbf16, #tpu.memory_space<vmem>>, vector<1x1x1x8x4xbf16>
    %139 = vector.shape_cast %138 : vector<1x1x1x8x4xbf16> to vector<8x4xbf16>
    %c48_310 = arith.constant 48 : index
    %c20_311 = arith.constant 20 : index
    %140 = vector.load %arg6[%c48_310, %c20_311] : memref<64x36xbf16, #tpu.memory_space<vmem>>, vector<8x4xbf16>
    tpu.vector_store %arg6[%c48_310, %c20_311], %139 {strides = array<i32>} : memref<64x36xbf16, #tpu.memory_space<vmem>>, vector<8x4xbf16>,
    %c0_312 = arith.constant 0 : index
    %c2_313 = arith.constant 2 : index
    %c7_314 = arith.constant 7 : index
    %c1_315 = arith.constant 1 : index
    %c0_316 = arith.constant 0 : index
    %141 = vector.load %arg1[%c0_312, %c2_313, %c7_314, %c1_315, %c0_316] : memref<1x4x9x9x4xbf16, #tpu.memory_space<vmem>>, vector<1x1x1x8x4xbf16>
    %142 = vector.shape_cast %141 : vector<1x1x1x8x4xbf16> to vector<8x4xbf16>
    %c56_317 = arith.constant 56 : index
    %c20_318 = arith.constant 20 : index
    %143 = vector.load %arg6[%c56_317, %c20_318] : memref<64x36xbf16, #tpu.memory_space<vmem>>, vector<8x4xbf16>
    tpu.vector_store %arg6[%c56_317, %c20_318], %142 {strides = array<i32>} : memref<64x36xbf16, #tpu.memory_space<vmem>>, vector<8x4xbf16>,
    %c0_319 = arith.constant 0 : index
    %c0_320 = arith.constant 0 : index
    %c1_321 = arith.constant 1 : index
    %c0_322 = arith.constant 0 : index
    %c0_323 = arith.constant 0 : index
    %144 = vector.load %arg1[%c0_319, %c0_320, %c1_321, %c0_322, %c0_323] : memref<1x4x9x9x4xbf16, #tpu.memory_space<vmem>>, vector<1x1x1x8x4xbf16>
    %145 = vector.shape_cast %144 : vector<1x1x1x8x4xbf16> to vector<8x4xbf16>
    %c0_324 = arith.constant 0 : index
    %c24_325 = arith.constant 24 : index
    %146 = vector.load %arg6[%c0_324, %c24_325] : memref<64x36xbf16, #tpu.memory_space<vmem>>, vector<8x4xbf16>
    tpu.vector_store %arg6[%c0_324, %c24_325], %145 {strides = array<i32>} : memref<64x36xbf16, #tpu.memory_space<vmem>>, vector<8x4xbf16>,
    %c0_326 = arith.constant 0 : index
    %c0_327 = arith.constant 0 : index
    %c2_328 = arith.constant 2 : index
    %c0_329 = arith.constant 0 : index
    %c0_330 = arith.constant 0 : index
    %147 = vector.load %arg1[%c0_326, %c0_327, %c2_328, %c0_329, %c0_330] : memref<1x4x9x9x4xbf16, #tpu.memory_space<vmem>>, vector<1x1x1x8x4xbf16>
    %148 = vector.shape_cast %147 : vector<1x1x1x8x4xbf16> to vector<8x4xbf16>
    %c8_331 = arith.constant 8 : index
    %c24_332 = arith.constant 24 : index
    %149 = vector.load %arg6[%c8_331, %c24_332] : memref<64x36xbf16, #tpu.memory_space<vmem>>, vector<8x4xbf16>
    tpu.vector_store %arg6[%c8_331, %c24_332], %148 {strides = array<i32>} : memref<64x36xbf16, #tpu.memory_space<vmem>>, vector<8x4xbf16>,
    %c0_333 = arith.constant 0 : index
    %c0_334 = arith.constant 0 : index
    %c3_335 = arith.constant 3 : index
    %c0_336 = arith.constant 0 : index
    %c0_337 = arith.constant 0 : index
    %150 = vector.load %arg1[%c0_333, %c0_334, %c3_335, %c0_336, %c0_337] : memref<1x4x9x9x4xbf16, #tpu.memory_space<vmem>>, vector<1x1x1x8x4xbf16>
    %151 = vector.shape_cast %150 : vector<1x1x1x8x4xbf16> to vector<8x4xbf16>
    %c16_338 = arith.constant 16 : index
    %c24_339 = arith.constant 24 : index
    %152 = vector.load %arg6[%c16_338, %c24_339] : memref<64x36xbf16, #tpu.memory_space<vmem>>, vector<8x4xbf16>
    tpu.vector_store %arg6[%c16_338, %c24_339], %151 {strides = array<i32>} : memref<64x36xbf16, #tpu.memory_space<vmem>>, vector<8x4xbf16>,
    %c0_340 = arith.constant 0 : index
    %c0_341 = arith.constant 0 : index
    %c4_342 = arith.constant 4 : index
    %c0_343 = arith.constant 0 : index
    %c0_344 = arith.constant 0 : index
    %153 = vector.load %arg1[%c0_340, %c0_341, %c4_342, %c0_343, %c0_344] : memref<1x4x9x9x4xbf16, #tpu.memory_space<vmem>>, vector<1x1x1x8x4xbf16>
    %154 = vector.shape_cast %153 : vector<1x1x1x8x4xbf16> to vector<8x4xbf16>
    %c24_345 = arith.constant 24 : index
    %c24_346 = arith.constant 24 : index
    %155 = vector.load %arg6[%c24_345, %c24_346] : memref<64x36xbf16, #tpu.memory_space<vmem>>, vector<8x4xbf16>
    tpu.vector_store %arg6[%c24_345, %c24_346], %154 {strides = array<i32>} : memref<64x36xbf16, #tpu.memory_space<vmem>>, vector<8x4xbf16>,
    %c0_347 = arith.constant 0 : index
    %c0_348 = arith.constant 0 : index
    %c5_349 = arith.constant 5 : index
    %c0_350 = arith.constant 0 : index
    %c0_351 = arith.constant 0 : index
    %156 = vector.load %arg1[%c0_347, %c0_348, %c5_349, %c0_350, %c0_351] : memref<1x4x9x9x4xbf16, #tpu.memory_space<vmem>>, vector<1x1x1x8x4xbf16>
    %157 = vector.shape_cast %156 : vector<1x1x1x8x4xbf16> to vector<8x4xbf16>
    %c32_352 = arith.constant 32 : index
    %c24_353 = arith.constant 24 : index
    %158 = vector.load %arg6[%c32_352, %c24_353] : memref<64x36xbf16, #tpu.memory_space<vmem>>, vector<8x4xbf16>
    tpu.vector_store %arg6[%c32_352, %c24_353], %157 {strides = array<i32>} : memref<64x36xbf16, #tpu.memory_space<vmem>>, vector<8x4xbf16>,
    %c0_354 = arith.constant 0 : index
    %c0_355 = arith.constant 0 : index
    %c6_356 = arith.constant 6 : index
    %c0_357 = arith.constant 0 : index
    %c0_358 = arith.constant 0 : index
    %159 = vector.load %arg1[%c0_354, %c0_355, %c6_356, %c0_357, %c0_358] : memref<1x4x9x9x4xbf16, #tpu.memory_space<vmem>>, vector<1x1x1x8x4xbf16>
    %160 = vector.shape_cast %159 : vector<1x1x1x8x4xbf16> to vector<8x4xbf16>
    %c40_359 = arith.constant 40 : index
    %c24_360 = arith.constant 24 : index
    %161 = vector.load %arg6[%c40_359, %c24_360] : memref<64x36xbf16, #tpu.memory_space<vmem>>, vector<8x4xbf16>
    tpu.vector_store %arg6[%c40_359, %c24_360], %160 {strides = array<i32>} : memref<64x36xbf16, #tpu.memory_space<vmem>>, vector<8x4xbf16>,
    %c0_361 = arith.constant 0 : index
    %c0_362 = arith.constant 0 : index
    %c7_363 = arith.constant 7 : index
    %c0_364 = arith.constant 0 : index
    %c0_365 = arith.constant 0 : index
    %162 = vector.load %arg1[%c0_361, %c0_362, %c7_363, %c0_364, %c0_365] : memref<1x4x9x9x4xbf16, #tpu.memory_space<vmem>>, vector<1x1x1x8x4xbf16>
    %163 = vector.shape_cast %162 : vector<1x1x1x8x4xbf16> to vector<8x4xbf16>
    %c48_366 = arith.constant 48 : index
    %c24_367 = arith.constant 24 : index
    %164 = vector.load %arg6[%c48_366, %c24_367] : memref<64x36xbf16, #tpu.memory_space<vmem>>, vector<8x4xbf16>
    tpu.vector_store %arg6[%c48_366, %c24_367], %163 {strides = array<i32>} : memref<64x36xbf16, #tpu.memory_space<vmem>>, vector<8x4xbf16>,
    %c0_368 = arith.constant 0 : index
    %c0_369 = arith.constant 0 : index
    %c8_370 = arith.constant 8 : index
    %c0_371 = arith.constant 0 : index
    %c0_372 = arith.constant 0 : index
    %165 = vector.load %arg1[%c0_368, %c0_369, %c8_370, %c0_371, %c0_372] : memref<1x4x9x9x4xbf16, #tpu.memory_space<vmem>>, vector<1x1x1x8x4xbf16>
    %166 = vector.shape_cast %165 : vector<1x1x1x8x4xbf16> to vector<8x4xbf16>
    %c56_373 = arith.constant 56 : index
    %c24_374 = arith.constant 24 : index
    %167 = vector.load %arg6[%c56_373, %c24_374] : memref<64x36xbf16, #tpu.memory_space<vmem>>, vector<8x4xbf16>
    tpu.vector_store %arg6[%c56_373, %c24_374], %166 {strides = array<i32>} : memref<64x36xbf16, #tpu.memory_space<vmem>>, vector<8x4xbf16>,
    %c0_375 = arith.constant 0 : index
    %c1_376 = arith.constant 1 : index
    %c1_377 = arith.constant 1 : index
    %c0_378 = arith.constant 0 : index
    %c0_379 = arith.constant 0 : index
    %168 = vector.load %arg1[%c0_375, %c1_376, %c1_377, %c0_378, %c0_379] : memref<1x4x9x9x4xbf16, #tpu.memory_space<vmem>>, vector<1x1x1x8x4xbf16>
    %169 = vector.shape_cast %168 : vector<1x1x1x8x4xbf16> to vector<8x4xbf16>
    %c0_380 = arith.constant 0 : index
    %c28 = arith.constant 28 : index
    %170 = vector.load %arg6[%c0_380, %c28] : memref<64x36xbf16, #tpu.memory_space<vmem>>, vector<8x4xbf16>
    tpu.vector_store %arg6[%c0_380, %c28], %169 {strides = array<i32>} : memref<64x36xbf16, #tpu.memory_space<vmem>>, vector<8x4xbf16>,
    %c0_381 = arith.constant 0 : index
    %c1_382 = arith.constant 1 : index
    %c2_383 = arith.constant 2 : index
    %c0_384 = arith.constant 0 : index
    %c0_385 = arith.constant 0 : index
    %171 = vector.load %arg1[%c0_381, %c1_382, %c2_383, %c0_384, %c0_385] : memref<1x4x9x9x4xbf16, #tpu.memory_space<vmem>>, vector<1x1x1x8x4xbf16>
    %172 = vector.shape_cast %171 : vector<1x1x1x8x4xbf16> to vector<8x4xbf16>
    %c8_386 = arith.constant 8 : index
    %c28_387 = arith.constant 28 : index
    %173 = vector.load %arg6[%c8_386, %c28_387] : memref<64x36xbf16, #tpu.memory_space<vmem>>, vector<8x4xbf16>
    tpu.vector_store %arg6[%c8_386, %c28_387], %172 {strides = array<i32>} : memref<64x36xbf16, #tpu.memory_space<vmem>>, vector<8x4xbf16>,
    %c0_388 = arith.constant 0 : index
    %c1_389 = arith.constant 1 : index
    %c3_390 = arith.constant 3 : index
    %c0_391 = arith.constant 0 : index
    %c0_392 = arith.constant 0 : index
    %174 = vector.load %arg1[%c0_388, %c1_389, %c3_390, %c0_391, %c0_392] : memref<1x4x9x9x4xbf16, #tpu.memory_space<vmem>>, vector<1x1x1x8x4xbf16>
    %175 = vector.shape_cast %174 : vector<1x1x1x8x4xbf16> to vector<8x4xbf16>
    %c16_393 = arith.constant 16 : index
    %c28_394 = arith.constant 28 : index
    %176 = vector.load %arg6[%c16_393, %c28_394] : memref<64x36xbf16, #tpu.memory_space<vmem>>, vector<8x4xbf16>
    tpu.vector_store %arg6[%c16_393, %c28_394], %175 {strides = array<i32>} : memref<64x36xbf16, #tpu.memory_space<vmem>>, vector<8x4xbf16>,
    %c0_395 = arith.constant 0 : index
    %c1_396 = arith.constant 1 : index
    %c4_397 = arith.constant 4 : index
    %c0_398 = arith.constant 0 : index
    %c0_399 = arith.constant 0 : index
    %177 = vector.load %arg1[%c0_395, %c1_396, %c4_397, %c0_398, %c0_399] : memref<1x4x9x9x4xbf16, #tpu.memory_space<vmem>>, vector<1x1x1x8x4xbf16>
    %178 = vector.shape_cast %177 : vector<1x1x1x8x4xbf16> to vector<8x4xbf16>
    %c24_400 = arith.constant 24 : index
    %c28_401 = arith.constant 28 : index
    %179 = vector.load %arg6[%c24_400, %c28_401] : memref<64x36xbf16, #tpu.memory_space<vmem>>, vector<8x4xbf16>
    tpu.vector_store %arg6[%c24_400, %c28_401], %178 {strides = array<i32>} : memref<64x36xbf16, #tpu.memory_space<vmem>>, vector<8x4xbf16>,
    %c0_402 = arith.constant 0 : index
    %c1_403 = arith.constant 1 : index
    %c5_404 = arith.constant 5 : index
    %c0_405 = arith.constant 0 : index
    %c0_406 = arith.constant 0 : index
    %180 = vector.load %arg1[%c0_402, %c1_403, %c5_404, %c0_405, %c0_406] : memref<1x4x9x9x4xbf16, #tpu.memory_space<vmem>>, vector<1x1x1x8x4xbf16>
    %181 = vector.shape_cast %180 : vector<1x1x1x8x4xbf16> to vector<8x4xbf16>
    %c32_407 = arith.constant 32 : index
    %c28_408 = arith.constant 28 : index
    %182 = vector.load %arg6[%c32_407, %c28_408] : memref<64x36xbf16, #tpu.memory_space<vmem>>, vector<8x4xbf16>
    tpu.vector_store %arg6[%c32_407, %c28_408], %181 {strides = array<i32>} : memref<64x36xbf16, #tpu.memory_space<vmem>>, vector<8x4xbf16>,
    %c0_409 = arith.constant 0 : index
    %c1_410 = arith.constant 1 : index
    %c6_411 = arith.constant 6 : index
    %c0_412 = arith.constant 0 : index
    %c0_413 = arith.constant 0 : index
    %183 = vector.load %arg1[%c0_409, %c1_410, %c6_411, %c0_412, %c0_413] : memref<1x4x9x9x4xbf16, #tpu.memory_space<vmem>>, vector<1x1x1x8x4xbf16>
    %184 = vector.shape_cast %183 : vector<1x1x1x8x4xbf16> to vector<8x4xbf16>
    %c40_414 = arith.constant 40 : index
    %c28_415 = arith.constant 28 : index
    %185 = vector.load %arg6[%c40_414, %c28_415] : memref<64x36xbf16, #tpu.memory_space<vmem>>, vector<8x4xbf16>
    tpu.vector_store %arg6[%c40_414, %c28_415], %184 {strides = array<i32>} : memref<64x36xbf16, #tpu.memory_space<vmem>>, vector<8x4xbf16>,
    %c0_416 = arith.constant 0 : index
    %c1_417 = arith.constant 1 : index
    %c7_418 = arith.constant 7 : index
    %c0_419 = arith.constant 0 : index
    %c0_420 = arith.constant 0 : index
    %186 = vector.load %arg1[%c0_416, %c1_417, %c7_418, %c0_419, %c0_420] : memref<1x4x9x9x4xbf16, #tpu.memory_space<vmem>>, vector<1x1x1x8x4xbf16>
    %187 = vector.shape_cast %186 : vector<1x1x1x8x4xbf16> to vector<8x4xbf16>
    %c48_421 = arith.constant 48 : index
    %c28_422 = arith.constant 28 : index
    %188 = vector.load %arg6[%c48_421, %c28_422] : memref<64x36xbf16, #tpu.memory_space<vmem>>, vector<8x4xbf16>
    tpu.vector_store %arg6[%c48_421, %c28_422], %187 {strides = array<i32>} : memref<64x36xbf16, #tpu.memory_space<vmem>>, vector<8x4xbf16>,
    %c0_423 = arith.constant 0 : index
    %c1_424 = arith.constant 1 : index
    %c8_425 = arith.constant 8 : index
    %c0_426 = arith.constant 0 : index
    %c0_427 = arith.constant 0 : index
    %189 = vector.load %arg1[%c0_423, %c1_424, %c8_425, %c0_426, %c0_427] : memref<1x4x9x9x4xbf16, #tpu.memory_space<vmem>>, vector<1x1x1x8x4xbf16>
    %190 = vector.shape_cast %189 : vector<1x1x1x8x4xbf16> to vector<8x4xbf16>
    %c56_428 = arith.constant 56 : index
    %c28_429 = arith.constant 28 : index
    %191 = vector.load %arg6[%c56_428, %c28_429] : memref<64x36xbf16, #tpu.memory_space<vmem>>, vector<8x4xbf16>
    tpu.vector_store %arg6[%c56_428, %c28_429], %190 {strides = array<i32>} : memref<64x36xbf16, #tpu.memory_space<vmem>>, vector<8x4xbf16>,
    %c0_430 = arith.constant 0 : index
    %c0_431 = arith.constant 0 : index
    %c1_432 = arith.constant 1 : index
    %c1_433 = arith.constant 1 : index
    %c0_434 = arith.constant 0 : index
    %192 = vector.load %arg1[%c0_430, %c0_431, %c1_432, %c1_433, %c0_434] : memref<1x4x9x9x4xbf16, #tpu.memory_space<vmem>>, vector<1x1x1x8x4xbf16>
    %193 = vector.shape_cast %192 : vector<1x1x1x8x4xbf16> to vector<8x4xbf16>
    %c0_435 = arith.constant 0 : index
    %c32_436 = arith.constant 32 : index
    %194 = vector.load %arg6[%c0_435, %c32_436] : memref<64x36xbf16, #tpu.memory_space<vmem>>, vector<8x4xbf16>
    tpu.vector_store %arg6[%c0_435, %c32_436], %193 {strides = array<i32>} : memref<64x36xbf16, #tpu.memory_space<vmem>>, vector<8x4xbf16>,
    %c0_437 = arith.constant 0 : index
    %c0_438 = arith.constant 0 : index
    %c2_439 = arith.constant 2 : index
    %c1_440 = arith.constant 1 : index
    %c0_441 = arith.constant 0 : index
    %195 = vector.load %arg1[%c0_437, %c0_438, %c2_439, %c1_440, %c0_441] : memref<1x4x9x9x4xbf16, #tpu.memory_space<vmem>>, vector<1x1x1x8x4xbf16>
    %196 = vector.shape_cast %195 : vector<1x1x1x8x4xbf16> to vector<8x4xbf16>
    %c8_442 = arith.constant 8 : index
    %c32_443 = arith.constant 32 : index
    %197 = vector.load %arg6[%c8_442, %c32_443] : memref<64x36xbf16, #tpu.memory_space<vmem>>, vector<8x4xbf16>
    tpu.vector_store %arg6[%c8_442, %c32_443], %196 {strides = array<i32>} : memref<64x36xbf16, #tpu.memory_space<vmem>>, vector<8x4xbf16>,
    %c0_444 = arith.constant 0 : index
    %c0_445 = arith.constant 0 : index
    %c3_446 = arith.constant 3 : index
    %c1_447 = arith.constant 1 : index
    %c0_448 = arith.constant 0 : index
    %198 = vector.load %arg1[%c0_444, %c0_445, %c3_446, %c1_447, %c0_448] : memref<1x4x9x9x4xbf16, #tpu.memory_space<vmem>>, vector<1x1x1x8x4xbf16>
    %199 = vector.shape_cast %198 : vector<1x1x1x8x4xbf16> to vector<8x4xbf16>
    %c16_449 = arith.constant 16 : index
    %c32_450 = arith.constant 32 : index
    %200 = vector.load %arg6[%c16_449, %c32_450] : memref<64x36xbf16, #tpu.memory_space<vmem>>, vector<8x4xbf16>
    tpu.vector_store %arg6[%c16_449, %c32_450], %199 {strides = array<i32>} : memref<64x36xbf16, #tpu.memory_space<vmem>>, vector<8x4xbf16>,
    %c0_451 = arith.constant 0 : index
    %c0_452 = arith.constant 0 : index
    %c4_453 = arith.constant 4 : index
    %c1_454 = arith.constant 1 : index
    %c0_455 = arith.constant 0 : index
    %201 = vector.load %arg1[%c0_451, %c0_452, %c4_453, %c1_454, %c0_455] : memref<1x4x9x9x4xbf16, #tpu.memory_space<vmem>>, vector<1x1x1x8x4xbf16>
    %202 = vector.shape_cast %201 : vector<1x1x1x8x4xbf16> to vector<8x4xbf16>
    %c24_456 = arith.constant 24 : index
    %c32_457 = arith.constant 32 : index
    %203 = vector.load %arg6[%c24_456, %c32_457] : memref<64x36xbf16, #tpu.memory_space<vmem>>, vector<8x4xbf16>
    tpu.vector_store %arg6[%c24_456, %c32_457], %202 {strides = array<i32>} : memref<64x36xbf16, #tpu.memory_space<vmem>>, vector<8x4xbf16>,
    %c0_458 = arith.constant 0 : index
    %c0_459 = arith.constant 0 : index
    %c5_460 = arith.constant 5 : index
    %c1_461 = arith.constant 1 : index
    %c0_462 = arith.constant 0 : index
    %204 = vector.load %arg1[%c0_458, %c0_459, %c5_460, %c1_461, %c0_462] : memref<1x4x9x9x4xbf16, #tpu.memory_space<vmem>>, vector<1x1x1x8x4xbf16>
    %205 = vector.shape_cast %204 : vector<1x1x1x8x4xbf16> to vector<8x4xbf16>
    %c32_463 = arith.constant 32 : index
    %c32_464 = arith.constant 32 : index
    %206 = vector.load %arg6[%c32_463, %c32_464] : memref<64x36xbf16, #tpu.memory_space<vmem>>, vector<8x4xbf16>
    tpu.vector_store %arg6[%c32_463, %c32_464], %205 {strides = array<i32>} : memref<64x36xbf16, #tpu.memory_space<vmem>>, vector<8x4xbf16>,
    %c0_465 = arith.constant 0 : index
    %c0_466 = arith.constant 0 : index
    %c6_467 = arith.constant 6 : index
    %c1_468 = arith.constant 1 : index
    %c0_469 = arith.constant 0 : index
    %207 = vector.load %arg1[%c0_465, %c0_466, %c6_467, %c1_468, %c0_469] : memref<1x4x9x9x4xbf16, #tpu.memory_space<vmem>>, vector<1x1x1x8x4xbf16>
    %208 = vector.shape_cast %207 : vector<1x1x1x8x4xbf16> to vector<8x4xbf16>
    %c40_470 = arith.constant 40 : index
    %c32_471 = arith.constant 32 : index
    %209 = vector.load %arg6[%c40_470, %c32_471] : memref<64x36xbf16, #tpu.memory_space<vmem>>, vector<8x4xbf16>
    tpu.vector_store %arg6[%c40_470, %c32_471], %208 {strides = array<i32>} : memref<64x36xbf16, #tpu.memory_space<vmem>>, vector<8x4xbf16>,
    %c0_472 = arith.constant 0 : index
    %c0_473 = arith.constant 0 : index
    %c7_474 = arith.constant 7 : index
    %c1_475 = arith.constant 1 : index
    %c0_476 = arith.constant 0 : index
    %210 = vector.load %arg1[%c0_472, %c0_473, %c7_474, %c1_475, %c0_476] : memref<1x4x9x9x4xbf16, #tpu.memory_space<vmem>>, vector<1x1x1x8x4xbf16>
    %211 = vector.shape_cast %210 : vector<1x1x1x8x4xbf16> to vector<8x4xbf16>
    %c48_477 = arith.constant 48 : index
    %c32_478 = arith.constant 32 : index
    %212 = vector.load %arg6[%c48_477, %c32_478] : memref<64x36xbf16, #tpu.memory_space<vmem>>, vector<8x4xbf16>
    tpu.vector_store %arg6[%c48_477, %c32_478], %211 {strides = array<i32>} : memref<64x36xbf16, #tpu.memory_space<vmem>>, vector<8x4xbf16>,
    %c0_479 = arith.constant 0 : index
    %c0_480 = arith.constant 0 : index
    %c8_481 = arith.constant 8 : index
    %c1_482 = arith.constant 1 : index
    %c0_483 = arith.constant 0 : index
    %213 = vector.load %arg1[%c0_479, %c0_480, %c8_481, %c1_482, %c0_483] : memref<1x4x9x9x4xbf16, #tpu.memory_space<vmem>>, vector<1x1x1x8x4xbf16>
    %214 = vector.shape_cast %213 : vector<1x1x1x8x4xbf16> to vector<8x4xbf16>
    %c56_484 = arith.constant 56 : index
    %c32_485 = arith.constant 32 : index
    %215 = vector.load %arg6[%c56_484, %c32_485] : memref<64x36xbf16, #tpu.memory_space<vmem>>, vector<8x4xbf16>
    tpu.vector_store %arg6[%c56_484, %c32_485], %214 {strides = array<i32>} : memref<64x36xbf16, #tpu.memory_space<vmem>>, vector<8x4xbf16>,
    %c0_486 = arith.constant 0 : index
    %c0_487 = arith.constant 0 : index
    %216 = vector.load %arg6[%c0_486, %c0_487] : memref<64x36xbf16, #tpu.memory_space<vmem>>, vector<64x36xbf16>
    %c0_488 = arith.constant 0 : index
    %c0_489 = arith.constant 0 : index
    %217 = vector.load %arg2[%c0_488, %c0_489] : memref<36x4xbf16, #tpu.memory_space<vmem>>, vector<36x4xbf16>
    %cst = arith.constant dense<0.000000e+00> : vector<64x4xf32>
    %218 = tpu.matmul %216, %217, %cst {dimension_numbers = #tpu.dot_dimension_numbers<[1], [0], [0], [1], [0, 0, 1, 1], [], []>} : vector<64x36xbf16>, vector<36x4xbf16>, vector<64x4xf32> -> vector<64x4xf32>
    %c0_490 = arith.constant 0 : index
    %c0_491 = arith.constant 0 : index
    %c0_492 = arith.constant 0 : index
    %219 = vector.load %arg3[%c0_490, %c0_491, %c0_492] : memref<1x64x4xf32, #tpu.memory_space<vmem>>, vector<1x64x4xf32>
    %220 = vector.shape_cast %219 : vector<1x64x4xf32> to vector<64x4xf32>
    %221 = vector.shape_cast %218 : vector<64x4xf32> to vector<1x64x4xf32>
    tpu.vector_store %arg3[%c0_490, %c0_491, %c0_492], %221 {strides = array<i32>} : memref<1x64x4xf32, #tpu.memory_space<vmem>>, vector<1x64x4xf32>,
    %cst_493 = arith.constant dense<0.000000e+00> : vector<4xf32>
    %222 = vector.multi_reduction <add>, %218, %cst_493 [0] : vector<64x4xf32> to vector<4xf32>
    %223 = vector.shape_cast %222 : vector<4xf32> to vector<1x4xf32>
    %224 = vector.shape_cast %223 : vector<1x4xf32> to vector<1x1x4xf32>
    %c0_494 = arith.constant 0 : index
    %c0_495 = arith.constant 0 : index
    %c0_496 = arith.constant 0 : index
    %225 = vector.load %arg4[%c0_494, %c0_495, %c0_496] : memref<1x1x4xf32, #tpu.memory_space<vmem>>, vector<1x1x4xf32>
    tpu.vector_store %arg4[%c0_494, %c0_495, %c0_496], %224 {strides = array<i32>} : memref<1x1x4xf32, #tpu.memory_space<vmem>>, vector<1x1x4xf32>,
    %226 = arith.mulf %218, %218 : vector<64x4xf32>
    %cst_497 = arith.constant dense<0.000000e+00> : vector<4xf32>
    %227 = vector.multi_reduction <add>, %226, %cst_497 [0] : vector<64x4xf32> to vector<4xf32>
    %228 = vector.shape_cast %227 : vector<4xf32> to vector<1x4xf32>
    %229 = vector.shape_cast %228 : vector<1x4xf32> to vector<1x1x4xf32>
    %c0_498 = arith.constant 0 : index
    %c0_499 = arith.constant 0 : index
    %c0_500 = arith.constant 0 : index
    %230 = vector.load %arg5[%c0_498, %c0_499, %c0_500] : memref<1x1x4xf32, #tpu.memory_space<vmem>>, vector<1x1x4xf32>
    tpu.vector_store %arg5[%c0_498, %c0_499, %c0_500], %229 {strides = array<i32>} : memref<1x1x4xf32, #tpu.memory_space<vmem>>, vector<1x1x4xf32>,
    return
  }
  func.func @transform_0(%arg0: i32) -> (i32, i32, i32, i32, i32) {
    %c0_i32 = arith.constant 0 : i32
    %c0_i32_0 = arith.constant 0 : i32
    %c0_i32_1 = arith.constant 0 : i32
    %c0_i32_2 = arith.constant 0 : i32
    %c0_i32_3 = arith.constant 0 : i32
    return %arg0, %c0_i32, %c0_i32_0, %c0_i32_1, %c0_i32_2 : i32, i32, i32, i32, i32
  }
  func.func @transform_1(%arg0: i32) -> (i32, i32) {
    %c0_i32 = arith.constant 0 : i32
    %c0_i32_0 = arith.constant 0 : i32
    %c0_i32_1 = arith.constant 0 : i32
    return %c0_i32, %c0_i32_0 : i32, i32
  }
  func.func @transform_2(%arg0: i32) -> (i32, i32, i32) {
    %c0_i32 = arith.constant 0 : i32
    %c0_i32_0 = arith.constant 0 : i32
    %c0_i32_1 = arith.constant 0 : i32
    return %arg0, %c0_i32, %c0_i32_0 : i32, i32, i32
  }
  func.func @transform_3(%arg0: i32) -> (i32, i32, i32) {
    %c0_i32 = arith.constant 0 : i32
    %c0_i32_0 = arith.constant 0 : i32
    %c0_i32_1 = arith.constant 0 : i32
    return %arg0, %c0_i32, %c0_i32_0 : i32, i32, i32
  }
  func.func @transform_4(%arg0: i32) -> (i32, i32, i32) {
    %c0_i32 = arith.constant 0 : i32
    %c0_i32_0 = arith.constant 0 : i32
    %c0_i32_1 = arith.constant 0 : i32
    return %arg0, %c0_i32, %c0_i32_0 : i32, i32, i32
  }
}

module attributes {stable_mosaic.version = 11 : i64} {
  func.func @_mm_stats_kernel(%arg0: i32, %arg1: memref<128x8xbf16, #tpu.memory_space<vmem>>, %arg2: memref<8x16xbf16, #tpu.memory_space<vmem>>, %arg3: memref<128x16xf32, #tpu.memory_space<vmem>>, %arg4: memref<1x1x16xf32, #tpu.memory_space<vmem>>, %arg5: memref<1x1x16xf32, #tpu.memory_space<vmem>>) attributes {dimension_semantics = [#tpu.dimension_semantics<parallel>], iteration_bounds = array<i64: 1>, scalar_prefetch = 0 : i64, scratch_operands = 0 : i64, tpu.core_type = #tpu.core_type<tc>, window_params = [{transform_indices = @transform_0, window_bounds = array<i64: 128, 8>}, {pipeline_mode = #tpu.pipeline_mode<synchronous>, transform_indices = @transform_1, window_bounds = array<i64: 8, 16>}, {transform_indices = @transform_2, window_bounds = array<i64: 128, 16>}, {transform_indices = @transform_3, window_bounds = array<i64: 1, 1, 16>}, {transform_indices = @transform_4, window_bounds = array<i64: 1, 1, 16>}]} {
    %c0 = arith.constant 0 : index
    %c0_0 = arith.constant 0 : index
    %0 = vector.load %arg1[%c0, %c0_0] : memref<128x8xbf16, #tpu.memory_space<vmem>>, vector<128x8xbf16>
    %c0_1 = arith.constant 0 : index
    %c0_2 = arith.constant 0 : index
    %1 = vector.load %arg2[%c0_1, %c0_2] : memref<8x16xbf16, #tpu.memory_space<vmem>>, vector<8x16xbf16>
    %cst = arith.constant dense<0.000000e+00> : vector<128x16xf32>
    %2 = tpu.matmul %0, %1, %cst {dimension_numbers = #tpu.dot_dimension_numbers<[1], [0], [0], [1], [0, 0, 1, 1], [], []>} : vector<128x8xbf16>, vector<8x16xbf16>, vector<128x16xf32> -> vector<128x16xf32>
    %c0_3 = arith.constant 0 : index
    %c0_4 = arith.constant 0 : index
    %3 = vector.load %arg3[%c0_3, %c0_4] : memref<128x16xf32, #tpu.memory_space<vmem>>, vector<128x16xf32>
    tpu.vector_store %arg3[%c0_3, %c0_4], %2 {strides = array<i32>} : memref<128x16xf32, #tpu.memory_space<vmem>>, vector<128x16xf32>,
    %cst_5 = arith.constant dense<0.000000e+00> : vector<16xf32>
    %4 = vector.multi_reduction <add>, %2, %cst_5 [0] : vector<128x16xf32> to vector<16xf32>
    %5 = vector.shape_cast %4 : vector<16xf32> to vector<1x16xf32>
    %6 = vector.shape_cast %5 : vector<1x16xf32> to vector<1x1x16xf32>
    %c0_6 = arith.constant 0 : index
    %c0_7 = arith.constant 0 : index
    %c0_8 = arith.constant 0 : index
    %7 = vector.load %arg4[%c0_6, %c0_7, %c0_8] : memref<1x1x16xf32, #tpu.memory_space<vmem>>, vector<1x1x16xf32>
    tpu.vector_store %arg4[%c0_6, %c0_7, %c0_8], %6 {strides = array<i32>} : memref<1x1x16xf32, #tpu.memory_space<vmem>>, vector<1x1x16xf32>,
    %8 = arith.mulf %2, %2 : vector<128x16xf32>
    %cst_9 = arith.constant dense<0.000000e+00> : vector<16xf32>
    %9 = vector.multi_reduction <add>, %8, %cst_9 [0] : vector<128x16xf32> to vector<16xf32>
    %10 = vector.shape_cast %9 : vector<16xf32> to vector<1x16xf32>
    %11 = vector.shape_cast %10 : vector<1x16xf32> to vector<1x1x16xf32>
    %c0_10 = arith.constant 0 : index
    %c0_11 = arith.constant 0 : index
    %c0_12 = arith.constant 0 : index
    %12 = vector.load %arg5[%c0_10, %c0_11, %c0_12] : memref<1x1x16xf32, #tpu.memory_space<vmem>>, vector<1x1x16xf32>
    tpu.vector_store %arg5[%c0_10, %c0_11, %c0_12], %11 {strides = array<i32>} : memref<1x1x16xf32, #tpu.memory_space<vmem>>, vector<1x1x16xf32>,
    return
  }
  func.func @transform_0(%arg0: i32) -> (i32, i32) {
    %c0_i32 = arith.constant 0 : i32
    %c0_i32_0 = arith.constant 0 : i32
    return %arg0, %c0_i32 : i32, i32
  }
  func.func @transform_1(%arg0: i32) -> (i32, i32) {
    %c0_i32 = arith.constant 0 : i32
    %c0_i32_0 = arith.constant 0 : i32
    %c0_i32_1 = arith.constant 0 : i32
    return %c0_i32, %c0_i32_0 : i32, i32
  }
  func.func @transform_2(%arg0: i32) -> (i32, i32) {
    %c0_i32 = arith.constant 0 : i32
    %c0_i32_0 = arith.constant 0 : i32
    return %arg0, %c0_i32 : i32, i32
  }
  func.func @transform_3(%arg0: i32) -> (i32, i32, i32) {
    %c0_i32 = arith.constant 0 : i32
    %c0_i32_0 = arith.constant 0 : i32
    %c0_i32_1 = arith.constant 0 : i32
    return %arg0, %c0_i32, %c0_i32_0 : i32, i32, i32
  }
  func.func @transform_4(%arg0: i32) -> (i32, i32, i32) {
    %c0_i32 = arith.constant 0 : i32
    %c0_i32_0 = arith.constant 0 : i32
    %c0_i32_1 = arith.constant 0 : i32
    return %arg0, %c0_i32, %c0_i32_0 : i32, i32, i32
  }
}

module attributes {stable_mosaic.version = 11 : i64} {
  func.func @_bn_add_bn_relu_kernel(%arg0: i32, %arg1: memref<128x16xf32, #tpu.memory_space<vmem>>, %arg2: memref<1x16xf32, #tpu.memory_space<vmem>>, %arg3: memref<1x16xf32, #tpu.memory_space<vmem>>, %arg4: memref<128x16xf32, #tpu.memory_space<vmem>>, %arg5: memref<1x16xf32, #tpu.memory_space<vmem>>, %arg6: memref<1x16xf32, #tpu.memory_space<vmem>>, %arg7: memref<128x16xf32, #tpu.memory_space<vmem>>) attributes {dimension_semantics = [#tpu.dimension_semantics<parallel>], iteration_bounds = array<i64: 1>, scalar_prefetch = 0 : i64, scratch_operands = 0 : i64, tpu.core_type = #tpu.core_type<tc>, window_params = [{transform_indices = @transform_0, window_bounds = array<i64: 128, 16>}, {pipeline_mode = #tpu.pipeline_mode<synchronous>, transform_indices = @transform_1, window_bounds = array<i64: 1, 16>}, {pipeline_mode = #tpu.pipeline_mode<synchronous>, transform_indices = @transform_2, window_bounds = array<i64: 1, 16>}, {transform_indices = @transform_3, window_bounds = array<i64: 128, 16>}, {pipeline_mode = #tpu.pipeline_mode<synchronous>, transform_indices = @transform_4, window_bounds = array<i64: 1, 16>}, {pipeline_mode = #tpu.pipeline_mode<synchronous>, transform_indices = @transform_5, window_bounds = array<i64: 1, 16>}, {transform_indices = @transform_6, window_bounds = array<i64: 128, 16>}]} {
    %c0 = arith.constant 0 : index
    %c0_0 = arith.constant 0 : index
    %0 = vector.load %arg1[%c0, %c0_0] : memref<128x16xf32, #tpu.memory_space<vmem>>, vector<128x16xf32>
    %c0_1 = arith.constant 0 : index
    %c0_2 = arith.constant 0 : index
    %1 = vector.load %arg2[%c0_1, %c0_2] : memref<1x16xf32, #tpu.memory_space<vmem>>, vector<1x16xf32>
    %2 = vector.broadcast %1 : vector<1x16xf32> to vector<128x16xf32>
    %3 = arith.mulf %0, %2 : vector<128x16xf32>
    %c0_3 = arith.constant 0 : index
    %c0_4 = arith.constant 0 : index
    %4 = vector.load %arg3[%c0_3, %c0_4] : memref<1x16xf32, #tpu.memory_space<vmem>>, vector<1x16xf32>
    %5 = vector.broadcast %4 : vector<1x16xf32> to vector<128x16xf32>
    %6 = arith.addf %3, %5 : vector<128x16xf32>
    %c0_5 = arith.constant 0 : index
    %c0_6 = arith.constant 0 : index
    %7 = vector.load %arg4[%c0_5, %c0_6] : memref<128x16xf32, #tpu.memory_space<vmem>>, vector<128x16xf32>
    %c0_7 = arith.constant 0 : index
    %c0_8 = arith.constant 0 : index
    %8 = vector.load %arg5[%c0_7, %c0_8] : memref<1x16xf32, #tpu.memory_space<vmem>>, vector<1x16xf32>
    %9 = vector.broadcast %8 : vector<1x16xf32> to vector<128x16xf32>
    %10 = arith.mulf %7, %9 : vector<128x16xf32>
    %c0_9 = arith.constant 0 : index
    %c0_10 = arith.constant 0 : index
    %11 = vector.load %arg6[%c0_9, %c0_10] : memref<1x16xf32, #tpu.memory_space<vmem>>, vector<1x16xf32>
    %12 = vector.broadcast %11 : vector<1x16xf32> to vector<128x16xf32>
    %13 = arith.addf %10, %12 : vector<128x16xf32>
    %14 = arith.addf %6, %13 : vector<128x16xf32>
    %cst = arith.constant 0.000000e+00 : f32
    %15 = vector.broadcast %cst : f32 to vector<128x16xf32>
    %16 = arith.maximumf %14, %15 : vector<128x16xf32>
    %c0_11 = arith.constant 0 : index
    %c0_12 = arith.constant 0 : index
    %17 = vector.load %arg7[%c0_11, %c0_12] : memref<128x16xf32, #tpu.memory_space<vmem>>, vector<128x16xf32>
    tpu.vector_store %arg7[%c0_11, %c0_12], %16 {strides = array<i32>} : memref<128x16xf32, #tpu.memory_space<vmem>>, vector<128x16xf32>,
    return
  }
  func.func @transform_0(%arg0: i32) -> (i32, i32) {
    %c0_i32 = arith.constant 0 : i32
    %c0_i32_0 = arith.constant 0 : i32
    return %arg0, %c0_i32 : i32, i32
  }
  func.func @transform_1(%arg0: i32) -> (i32, i32) {
    %c0_i32 = arith.constant 0 : i32
    %c0_i32_0 = arith.constant 0 : i32
    %c0_i32_1 = arith.constant 0 : i32
    return %c0_i32, %c0_i32_0 : i32, i32
  }
  func.func @transform_2(%arg0: i32) -> (i32, i32) {
    %c0_i32 = arith.constant 0 : i32
    %c0_i32_0 = arith.constant 0 : i32
    %c0_i32_1 = arith.constant 0 : i32
    return %c0_i32, %c0_i32_0 : i32, i32
  }
  func.func @transform_3(%arg0: i32) -> (i32, i32) {
    %c0_i32 = arith.constant 0 : i32
    %c0_i32_0 = arith.constant 0 : i32
    return %arg0, %c0_i32 : i32, i32
  }
  func.func @transform_4(%arg0: i32) -> (i32, i32) {
    %c0_i32 = arith.constant 0 : i32
    %c0_i32_0 = arith.constant 0 : i32
    %c0_i32_1 = arith.constant 0 : i32
    return %c0_i32, %c0_i32_0 : i32, i32
  }
  func.func @transform_5(%arg0: i32) -> (i32, i32) {
    %c0_i32 = arith.constant 0 : i32
    %c0_i32_0 = arith.constant 0 : i32
    %c0_i32_1 = arith.constant 0 : i32
    return %c0_i32, %c0_i32_0 : i32, i32
  }
  func.func @transform_6(%arg0: i32) -> (i32, i32) {
    %c0_i32 = arith.constant 0 : i32
    %c0_i32_0 = arith.constant 0 : i32
    return %arg0, %c0_i32 : i32, i32
  }
}

</mosaic_0001>

<bundles_post_ra>
// kernel: bottleneck_forward.5
= control target key start
LH: loop header
LB: loop body
LE: loop exit
PB: predicated region body
PF: predicated region fallthrough
CT: control target
= control target key end

     0   :  { %vm337_vm0 = vcmask 1043456   ;;  %vm240_vm1 = vcmask 64512   ;;  %vm630_vm2 = vcmask 31744   ;;  %vm828_vm3 = vcmask 24576   ;;  %s1977_s1 = inlined_call_operand.vmem [shape: bf16[8,4], index: 1, kind: input, shape index: {}]   ;;  %s1978_s0 = inlined_call_operand.vmem [shape: bf16[512,8], index: 0, kind: input, shape index: {}]   ;;  %s1979_s2 = inlined_call_operand.vmem [shape: f32[512,4], index: 2, kind: output, shape index: {0}]   ;;  %s1980_s3 = inlined_call_operand.vmem [shape: f32[1,1,4], index: 3, kind: output, shape index: {1}]   ;;  %s1981_s4 = inlined_call_operand.vmem [shape: f32[1,1,4], index: 4, kind: output, shape index: {2}]  }
   0x1   :  { %v79_v0 = vld [vmem:[%s1977_s1] sm:$0xf]  ;;  %v1208_v3 = vld [vmem:[%s1978_s0 + $0x8] sm:$0xff]   ;;  %v1209_v4 = vld [vmem:[%s1978_s0 + $0x10] sm:$0xff]  }
   0x2   :  { %1205 = vmatprep.subr.msk.bf16.mxu0 %vm337_vm0, %v79_v0  ;;  %v339_v1 = vsel %vm337_vm0, %v79_v0, 0  ;;  %v1207_v2 = vld [vmem:[%s1978_s0] sm:$0xff]   ;;  %1206 = vmatprep.subr.msk.bf16.mxu1 %vm337_vm0, %v79_v0  ;;  %v1210_v5 = vld [vmem:[%s1978_s0 + $0x18] sm:$0xff]   ;;  %v1212_v7 = vld [vmem:[%s1978_s0 + $0x28] sm:$0xff]  }
   0x3   :  { %1138 = vmatpush3.bf16.msra.mxu0 %v339_v1  ;;  %1204 = vmatpush3.bf16.msra.mxu1 %v339_v1  ;;  %v1211_v6 = vld [vmem:[%s1978_s0 + $0x20] sm:$0xff]   ;;  %v1213_v8 = vld [vmem:[%s1978_s0 + $0x30] sm:$0xff]   ;;  %v1224_v10 = vld [vmem:[%s1978_s0 + $0x88] sm:$0xff]  }
   0x4   :  { %1139 = vmatprep.mubr.msk.bf16.mxu0 %vm240_vm1, %v1207_v2  ;;  %v1223_v9 = vld [vmem:[%s1978_s0 + $0x80] sm:$0xff]   ;;  %v1225_v11 = vld [vmem:[%s1978_s0 + $0x90] sm:$0xff]   ;;  %v1214_v12 = vld [vmem:[%s1978_s0 + $0x38] sm:$0xff]  }
   0x5   :  { %1171 = vmatprep.mubr.msk.bf16.mxu1 %vm240_vm1, %v1223_v9  ;;  %v1226_v13 = vld [vmem:[%s1978_s0 + $0x98] sm:$0xff]   ;;  %v1227_v14 = vld [vmem:[%s1978_s0 + $0xa0] sm:$0xff]   ;;  %v1228_v16 = vld [vmem:[%s1978_s0 + $0xa8] sm:$0xff]  }
   0x6   :  { %1140 = vmatmul.mubr.msk.bf16.vlgmr.msra.gmra.mxu0 %vm240_vm1, %v1208_v3  ;;  %1172 = vmatmul.mubr.msk.bf16.vlgmr.msra.gmra.mxu1 %vm240_vm1, %v1224_v10  ;;  %v1215_v15 = vld [vmem:[%s1978_s0 + $0x40] sm:$0xff]   ;;  %v1216_v17 = vld [vmem:[%s1978_s0 + $0x48] sm:$0xff]   ;;  %v1229_v18 = vld [vmem:[%s1978_s0 + $0xb0] sm:$0xff]  }
   0x7   :  { %1143 = vmatprep.mubr.msk.bf16.mxu0 %vm240_vm1, %v1209_v4  ;;  %1175 = vmatprep.mubr.msk.bf16.mxu1 %vm240_vm1, %v1225_v11  ;;  %v1217_v19 = vld [vmem:[%s1978_s0 + $0x50] sm:$0xff]   ;;  %v1230_v20 = vld [vmem:[%s1978_s0 + $0xb8] sm:$0xff]   ;;  %v1231_v22 = vld [vmem:[%s1978_s0 + $0xc0] sm:$0xff]  }
   0x8   :  { %v1218_v21 = vld [vmem:[%s1978_s0 + $0x58] sm:$0xff]   ;;  %v1219_v23 = vld [vmem:[%s1978_s0 + $0x60] sm:$0xff]   ;;  %v1232_v24 = vld [vmem:[%s1978_s0 + $0xc8] sm:$0xff]  }
   0x9   :  { %v1220_v25 = vld [vmem:[%s1978_s0 + $0x68] sm:$0xff]   ;;  %v1233_v26 = vld [vmem:[%s1978_s0 + $0xd0] sm:$0xff]   ;;  %v1234_v28 = vld [vmem:[%s1978_s0 + $0xd8] sm:$0xff]  }
   0xa   :  { %v1221_v27 = vld [vmem:[%s1978_s0 + $0x70] sm:$0xff]   ;;  %v1222_v29 = vld [vmem:[%s1978_s0 + $0x78] sm:$0xff]   ;;  %v1235_v30 = vld [vmem:[%s1978_s0 + $0xe0] sm:$0xff]  }
   0xb   :  { %v1236_v31 = vld [vmem:[%s1978_s0 + $0xe8] sm:$0xff]   ;;  %v1237_v32 = vld [vmem:[%s1978_s0 + $0xf0] sm:$0xff]   ;;  %v1238_v33 = vld [vmem:[%s1978_s0 + $0xf8] sm:$0xff]  }
   0xe   :  { %1144 = vmatmul.mubr.msk.bf16.gmra.mxu0 %vm240_vm1, %v1210_v5  ;;  %1176 = vmatmul.mubr.msk.bf16.gmra.mxu1 %vm240_vm1, %v1226_v13 }
   0xf   :  { %1147 = vmatprep.mubr.msk.bf16.mxu0 %vm240_vm1, %v1211_v6  ;;  %1179 = vmatprep.mubr.msk.bf16.mxu1 %vm240_vm1, %v1227_v14 }
  0x16   :  { %1148 = vmatmul.mubr.msk.bf16.gmra.mxu0 %vm240_vm1, %v1212_v7  ;;  %1180 = vmatmul.mubr.msk.bf16.gmra.mxu1 %vm240_vm1, %v1228_v16 }
  0x17   :  { %1151 = vmatprep.mubr.msk.bf16.mxu0 %vm240_vm1, %v1213_v8  ;;  %1183 = vmatprep.mubr.msk.bf16.mxu1 %vm240_vm1, %v1229_v18 }
  0x1e   :  { %1152 = vmatmul.mubr.msk.bf16.gmra.mxu0 %vm240_vm1, %v1214_v12  ;;  %1184 = vmatmul.mubr.msk.bf16.gmra.mxu1 %vm240_vm1, %v1230_v20 }
  0x1f   :  { %1155 = vmatprep.mubr.msk.bf16.mxu0 %vm240_vm1, %v1215_v15  ;;  %1187 = vmatprep.mubr.msk.bf16.mxu1 %vm240_vm1, %v1231_v22 }
  0x26   :  { %1156 = vmatmul.mubr.msk.bf16.gmra.mxu0 %vm240_vm1, %v1216_v17  ;;  %1188 = vmatmul.mubr.msk.bf16.gmra.mxu1 %vm240_vm1, %v1232_v24 }
  0x27   :  { %1159 = vmatprep.mubr.msk.bf16.mxu0 %vm240_vm1, %v1217_v19  ;;  %1191 = vmatprep.mubr.msk.bf16.mxu1 %vm240_vm1, %v1233_v26 }
  0x2e   :  { %1160 = vmatmul.mubr.msk.bf16.gmra.mxu0 %vm240_vm1, %v1218_v21  ;;  %1192 = vmatmul.mubr.msk.bf16.gmra.mxu1 %vm240_vm1, %v1234_v28 }
  0x2f   :  { %1163 = vmatprep.mubr.msk.bf16.mxu0 %vm240_vm1, %v1219_v23  ;;  %1195 = vmatprep.mubr.msk.bf16.mxu1 %vm240_vm1, %v1235_v30 }
  0x36   :  { %1164 = vmatmul.mubr.msk.bf16.gmra.mxu0 %vm240_vm1, %v1220_v25  ;;  %1196 = vmatmul.mubr.msk.bf16.gmra.mxu1 %vm240_vm1, %v1236_v31 }
  0x37   :  { %1167 = vmatprep.mubr.msk.bf16.mxu0 %vm240_vm1, %v1221_v27  ;;  %1199 = vmatprep.mubr.msk.bf16.mxu1 %vm240_vm1, %v1237_v32 }
  0x3e   :  { %1168 = vmatmul.mubr.msk.bf16.gmra.mxu0 %vm240_vm1, %v1222_v29  ;;  %1200 = vmatmul.mubr.msk.bf16.gmra.mxu1 %vm240_vm1, %v1238_v33 }
  0xc6   :  { %v1141_v34 = vpop.f32.mrf.mxu0  ;;  %v1438_v3 = vpop.f32.mrf.mxu1 }
  0xc7   :  { %633 = vst.msk [vmem:[%s1979_s2 + $0x10] sm:$0xff] %vm630_vm2, %v1141_v34  ;;  %v832_v39 = vmul.f32 %v1141_v34, %v1141_v34  ;;  %v698_v45 = vsel %vm630_vm2, %v1141_v34, 0.0  ;;  %665 = vst.msk [vmem:[%s1979_s2 + $0x110] sm:$0xff] %vm630_vm2, %v1438_v3 }
  0xc8   :  { %v375_v35 = vpop.f32.mrf.mxu0  ;;  %v1451_v10 = vpop.f32.mrf.mxu1 }
  0xc9   :  { %631 = vst.msk [vmem:[%s1979_s2] sm:$0xff] %vm630_vm2, %v375_v35  ;;  %v830_v37 = vmul.f32 %v375_v35, %v375_v35  ;;  %v695_v40 = vsel %vm630_vm2, %v375_v35, 0.0  ;;  %v897_v52 = vsel %vm630_vm2, %v832_v39, 0.0  ;;  %663 = vst.msk [vmem:[%s1979_s2 + $0x100] sm:$0xff] %vm630_vm2, %v1451_v10 }
  0xca   :  { %v1142_v36 = vpop.f32.mrf.mxu0  ;;  %v1464_v17 = vpop.f32.mrf.mxu1 }
  0xcb   :  { %634 = vst.msk [vmem:[%s1979_s2 + $0x18] sm:$0xff] %vm630_vm2, %v1142_v36  ;;  %v894_v46 = vsel %vm630_vm2, %v830_v37, 0.0  ;;  %v833_v47 = vmul.f32 %v1142_v36, %v1142_v36  ;;  %v700_v53 = vsel %vm630_vm2, %v1142_v36, 0.0  ;;  %666 = vst.msk [vmem:[%s1979_s2 + $0x118] sm:$0xff] %vm630_vm2, %v1464_v17 }
  0xcc   :  { %v378_v38 = vpop.f32.mrf.mxu0  ;;  %v1477_v23 = vpop.f32.mrf.mxu1 }
  0xcd   :  { %632 = vst.msk [vmem:[%s1979_s2 + $0x8] sm:$0xff] %vm630_vm2, %v378_v38  ;;  %v696_v41 = vsel %vm630_vm2, %v378_v38, 0.0  ;;  %v831_v42 = vmul.f32 %v378_v38, %v378_v38  ;;  %v899_v58 = vsel %vm630_vm2, %v833_v47, 0.0  ;;  %664 = vst.msk [vmem:[%s1979_s2 + $0x108] sm:$0xff] %vm630_vm2, %v1477_v23 }
  0xce   :  { %v697_v43 = vadd.f32 %v696_v41, %v695_v40  ;;  %v1145_v44 = vpop.f32.mrf.mxu0  ;;  %v1490_v31 = vpop.f32.mrf.mxu1 }
  0xcf   :  { %v895_v48 = vsel %vm630_vm2, %v831_v42, 0.0  ;;  %637 = vst.msk [vmem:[%s1979_s2 + $0x30] sm:$0xff] %vm630_vm2, %v1145_v44  ;;  %v836_v63 = vmul.f32 %v1145_v44, %v1145_v44  ;;  %v706_v7 = vsel %vm630_vm2, %v1145_v44, 0.0  ;;  %669 = vst.msk [vmem:[%s1979_s2 + $0x130] sm:$0xff] %vm630_vm2, %v1490_v31 }
  0xd0   :  { %v699_v49 = vadd.f32 %v698_v45, %v697_v43  ;;  %v896_v50 = vadd.f32 %v895_v48, %v894_v46  ;;  %v391_v51 = vpop.f32.mrf.mxu0  ;;  %v1503_v38 = vpop.f32.mrf.mxu1 }
  0xd1   :  { %635 = vst.msk [vmem:[%s1979_s2 + $0x20] sm:$0xff] %vm630_vm2, %v391_v51  ;;  %v834_v54 = vmul.f32 %v391_v51, %v391_v51  ;;  %v702_v59 = vsel %vm630_vm2, %v391_v51, 0.0  ;;  %v905_v14 = vsel %vm630_vm2, %v836_v63, 0.0  ;;  %667 = vst.msk [vmem:[%s1979_s2 + $0x120] sm:$0xff] %vm630_vm2, %v1503_v38 }
  0xd2   :  { %v898_v55 = vadd.f32 %v897_v52, %v896_v50  ;;  %v701_v56 = vadd.f32 %v700_v53, %v699_v49  ;;  %v1146_v57 = vpop.f32.mrf.mxu0  ;;  %v1516_v45 = vpop.f32.mrf.mxu1 }
  0xd3   :  { %638 = vst.msk [vmem:[%s1979_s2 + $0x38] sm:$0xff] %vm630_vm2, %v1146_v57  ;;  %v901_v0 = vsel %vm630_vm2, %v834_v54, 0.0  ;;  %v837_v8 = vmul.f32 %v1146_v57, %v1146_v57  ;;  %v708_v15 = vsel %vm630_vm2, %v1146_v57, 0.0  ;;  %670 = vst.msk [vmem:[%s1979_s2 + $0x138] sm:$0xff] %vm630_vm2, %v1516_v45 }
  0xd4   :  { %v703_v60 = vadd.f32 %v702_v59, %v701_v56  ;;  %v900_v61 = vadd.f32 %v899_v58, %v898_v55  ;;  %v394_v62 = vpop.f32.mrf.mxu0  ;;  %v1529_v51 = vpop.f32.mrf.mxu1 }
  0xd5   :  { %636 = vst.msk [vmem:[%s1979_s2 + $0x28] sm:$0xff] %vm630_vm2, %v394_v62  ;;  %v704_v1 = vsel %vm630_vm2, %v394_v62, 0.0  ;;  %v835_v2 = vmul.f32 %v394_v62, %v394_v62  ;;  %v907_v21 = vsel %vm630_vm2, %v837_v8, 0.0  ;;  %668 = vst.msk [vmem:[%s1979_s2 + $0x128] sm:$0xff] %vm630_vm2, %v1529_v51 }
  0xd6   :  { %v902_v4 = vadd.f32 %v901_v0, %v900_v61  ;;  %v705_v5 = vadd.f32 %v704_v1, %v703_v60  ;;  %v1149_v6 = vpop.f32.mrf.mxu0  ;;  %v1542_v59 = vpop.f32.mrf.mxu1 }
  0xd7   :  { %v903_v9 = vsel %vm630_vm2, %v835_v2, 0.0  ;;  %641 = vst.msk [vmem:[%s1979_s2 + $0x50] sm:$0xff] %vm630_vm2, %v1149_v6  ;;  %v840_v27 = vmul.f32 %v1149_v6, %v1149_v6  ;;  %v714_v35 = vsel %vm630_vm2, %v1149_v6, 0.0  ;;  %673 = vst.msk [vmem:[%s1979_s2 + $0x150] sm:$0xff] %vm630_vm2, %v1542_v59 }
  0xd8   :  { %v707_v11 = vadd.f32 %v706_v7, %v705_v5  ;;  %v904_v12 = vadd.f32 %v903_v9, %v902_v4  ;;  %v407_v13 = vpop.f32.mrf.mxu0  ;;  %v1555_v2 = vpop.f32.mrf.mxu1 }
  0xd9   :  { %639 = vst.msk [vmem:[%s1979_s2 + $0x40] sm:$0xff] %vm630_vm2, %v407_v13  ;;  %v838_v16 = vmul.f32 %v407_v13, %v407_v13  ;;  %v710_v22 = vsel %vm630_vm2, %v407_v13, 0.0  ;;  %v913_v42 = vsel %vm630_vm2, %v840_v27, 0.0  ;;  %671 = vst.msk [vmem:[%s1979_s2 + $0x140] sm:$0xff] %vm630_vm2, %v1555_v2 }
  0xda   :  { %v906_v18 = vadd.f32 %v905_v14, %v904_v12  ;;  %v709_v19 = vadd.f32 %v708_v15, %v707_v11  ;;  %v1150_v20 = vpop.f32.mrf.mxu0  ;;  %v1568_v11 = vpop.f32.mrf.mxu1 }
  0xdb   :  { %642 = vst.msk [vmem:[%s1979_s2 + $0x58] sm:$0xff] %vm630_vm2, %v1150_v20  ;;  %v909_v28 = vsel %vm630_vm2, %v838_v16, 0.0  ;;  %v841_v36 = vmul.f32 %v1150_v20, %v1150_v20  ;;  %v716_v43 = vsel %vm630_vm2, %v1150_v20, 0.0  ;;  %674 = vst.msk [vmem:[%s1979_s2 + $0x158] sm:$0xff] %vm630_vm2, %v1568_v11 }
  0xdc   :  { %v711_v24 = vadd.f32 %v710_v22, %v709_v19  ;;  %v908_v25 = vadd.f32 %v907_v21, %v906_v18  ;;  %v410_v26 = vpop.f32.mrf.mxu0  ;;  %v1581_v18 = vpop.f32.mrf.mxu1 }
  0xdd   :  { %640 = vst.msk [vmem:[%s1979_s2 + $0x48] sm:$0xff] %vm630_vm2, %v410_v26  ;;  %v712_v29 = vsel %vm630_vm2, %v410_v26, 0.0  ;;  %v839_v30 = vmul.f32 %v410_v26, %v410_v26  ;;  %v915_v49 = vsel %vm630_vm2, %v841_v36, 0.0  ;;  %672 = vst.msk [vmem:[%s1979_s2 + $0x148] sm:$0xff] %vm630_vm2, %v1581_v18 }
  0xde   :  { %v910_v32 = vadd.f32 %v909_v28, %v908_v25  ;;  %v713_v33 = vadd.f32 %v712_v29, %v711_v24  ;;  %v1153_v34 = vpop.f32.mrf.mxu0  ;;  %v1594_v27 = vpop.f32.mrf.mxu1 }
  0xdf   :  { %v911_v37 = vsel %vm630_vm2, %v839_v30, 0.0  ;;  %645 = vst.msk [vmem:[%s1979_s2 + $0x70] sm:$0xff] %vm630_vm2, %v1153_v34  ;;  %v844_v55 = vmul.f32 %v1153_v34, %v1153_v34  ;;  %v722_v63 = vsel %vm630_vm2, %v1153_v34, 0.0  ;;  %677 = vst.msk [vmem:[%s1979_s2 + $0x170] sm:$0xff] %vm630_vm2, %v1594_v27 }
  0xe0   :  { %v715_v39 = vadd.f32 %v714_v35, %v713_v33  ;;  %v912_v40 = vadd.f32 %v911_v37, %v910_v32  ;;  %v423_v41 = vpop.f32.mrf.mxu0  ;;  %v1607_v35 = vpop.f32.mrf.mxu1 }
  0xe1   :  { %643 = vst.msk [vmem:[%s1979_s2 + $0x60] sm:$0xff] %vm630_vm2, %v423_v41  ;;  %v842_v44 = vmul.f32 %v423_v41, %v423_v41  ;;  %v718_v50 = vsel %vm630_vm2, %v423_v41, 0.0  ;;  %v921_v7 = vsel %vm630_vm2, %v844_v55, 0.0  ;;  %675 = vst.msk [vmem:[%s1979_s2 + $0x160] sm:$0xff] %vm630_vm2, %v1607_v35 }
  0xe2   :  { %v914_v46 = vadd.f32 %v913_v42, %v912_v40  ;;  %v717_v47 = vadd.f32 %v716_v43, %v715_v39  ;;  %v1154_v48 = vpop.f32.mrf.mxu0  ;;  %v1620_v43 = vpop.f32.mrf.mxu1 }
  0xe3   :  { %646 = vst.msk [vmem:[%s1979_s2 + $0x78] sm:$0xff] %vm630_vm2, %v1154_v48  ;;  %v917_v56 = vsel %vm630_vm2, %v842_v44, 0.0  ;;  %v845_v0 = vmul.f32 %v1154_v48, %v1154_v48  ;;  %v724_v8 = vsel %vm630_vm2, %v1154_v48, 0.0  ;;  %678 = vst.msk [vmem:[%s1979_s2 + $0x178] sm:$0xff] %vm630_vm2, %v1620_v43 }
  0xe4   :  { %v719_v52 = vadd.f32 %v718_v50, %v717_v47  ;;  %v916_v53 = vadd.f32 %v915_v49, %v914_v46  ;;  %v426_v54 = vpop.f32.mrf.mxu0  ;;  %v1633_v50 = vpop.f32.mrf.mxu1 }
  0xe5   :  { %644 = vst.msk [vmem:[%s1979_s2 + $0x68] sm:$0xff] %vm630_vm2, %v426_v54  ;;  %v720_v57 = vsel %vm630_vm2, %v426_v54, 0.0  ;;  %v843_v58 = vmul.f32 %v426_v54, %v426_v54  ;;  %v923_v15 = vsel %vm630_vm2, %v845_v0, 0.0  ;;  %676 = vst.msk [vmem:[%s1979_s2 + $0x168] sm:$0xff] %vm630_vm2, %v1633_v50 }
  0xe6   :  { %v918_v60 = vadd.f32 %v917_v56, %v916_v53  ;;  %v721_v61 = vadd.f32 %v720_v57, %v719_v52  ;;  %v1157_v62 = vpop.f32.mrf.mxu0 }
  0xe7   :  { %v919_v1 = vsel %vm630_vm2, %v843_v58, 0.0  ;;  %649 = vst.msk [vmem:[%s1979_s2 + $0x90] sm:$0xff] %vm630_vm2, %v1157_v62  ;;  %v848_v22 = vmul.f32 %v1157_v62, %v1157_v62  ;;  %v730_v32 = vsel %vm630_vm2, %v1157_v62, 0.0 }
  0xe8   :  { %v723_v4 = vadd.f32 %v722_v63, %v721_v61  ;;  %v920_v5 = vadd.f32 %v919_v1, %v918_v60  ;;  %v439_v6 = vpop.f32.mrf.mxu0  ;;  %v1646_v60 = vpop.f32.mrf.mxu1 }
  0xe9   :  { %647 = vst.msk [vmem:[%s1979_s2 + $0x80] sm:$0xff] %vm630_vm2, %v439_v6  ;;  %v846_v9 = vmul.f32 %v439_v6, %v439_v6  ;;  %v726_v16 = vsel %vm630_vm2, %v439_v6, 0.0  ;;  %v929_v40 = vsel %vm630_vm2, %v848_v22, 0.0  ;;  %681 = vst.msk [vmem:[%s1979_s2 + $0x190] sm:$0xff] %vm630_vm2, %v1646_v60 }
  0xea   :  { %v922_v12 = vadd.f32 %v921_v7, %v920_v5  ;;  %v725_v13 = vadd.f32 %v724_v8, %v723_v4  ;;  %v1158_v14 = vpop.f32.mrf.mxu0  ;;  %v1659_v5 = vpop.f32.mrf.mxu1 }
  0xeb   :  { %650 = vst.msk [vmem:[%s1979_s2 + $0x98] sm:$0xff] %vm630_vm2, %v1158_v14  ;;  %v925_v24 = vsel %vm630_vm2, %v846_v9, 0.0  ;;  %v849_v33 = vmul.f32 %v1158_v14, %v1158_v14  ;;  %v732_v41 = vsel %vm630_vm2, %v1158_v14, 0.0  ;;  %679 = vst.msk [vmem:[%s1979_s2 + $0x180] sm:$0xff] %vm630_vm2, %v1659_v5 }
  0xec   :  { %v727_v19 = vadd.f32 %v726_v16, %v725_v13  ;;  %v924_v20 = vadd.f32 %v923_v15, %v922_v12  ;;  %v442_v21 = vpop.f32.mrf.mxu0  ;;  %v1672_v14 = vpop.f32.mrf.mxu1 }
  0xed   :  { %648 = vst.msk [vmem:[%s1979_s2 + $0x88] sm:$0xff] %vm630_vm2, %v442_v21  ;;  %v728_v25 = vsel %vm630_vm2, %v442_v21, 0.0  ;;  %v847_v26 = vmul.f32 %v442_v21, %v442_v21  ;;  %v931_v48 = vsel %vm630_vm2, %v849_v33, 0.0  ;;  %682 = vst.msk [vmem:[%s1979_s2 + $0x198] sm:$0xff] %vm630_vm2, %v1672_v14 }
  0xee   :  { %v926_v28 = vadd.f32 %v925_v24, %v924_v20  ;;  %v729_v29 = vadd.f32 %v728_v25, %v727_v19  ;;  %v1161_v30 = vpop.f32.mrf.mxu0  ;;  %v1685_v22 = vpop.f32.mrf.mxu1 }
  0xef   :  { %v927_v34 = vsel %vm630_vm2, %v847_v26, 0.0  ;;  %653 = vst.msk [vmem:[%s1979_s2 + $0xb0] sm:$0xff] %vm630_vm2, %v1161_v30  ;;  %v852_v55 = vmul.f32 %v1161_v30, %v1161_v30  ;;  %v738_v0 = vsel %vm630_vm2, %v1161_v30, 0.0  ;;  %680 = vst.msk [vmem:[%s1979_s2 + $0x188] sm:$0xff] %vm630_vm2, %v1685_v22 }
  0xf0   :  { %v731_v36 = vadd.f32 %v730_v32, %v729_v29  ;;  %v928_v37 = vadd.f32 %v927_v34, %v926_v28  ;;  %v455_v39 = vpop.f32.mrf.mxu0  ;;  %v1698_v33 = vpop.f32.mrf.mxu1 }
  0xf1   :  { %651 = vst.msk [vmem:[%s1979_s2 + $0xa0] sm:$0xff] %vm630_vm2, %v455_v39  ;;  %v850_v42 = vmul.f32 %v455_v39, %v455_v39  ;;  %v734_v49 = vsel %vm630_vm2, %v455_v39, 0.0  ;;  %v937_v9 = vsel %vm630_vm2, %v852_v55, 0.0  ;;  %685 = vst.msk [vmem:[%s1979_s2 + $0x1b0] sm:$0xff] %vm630_vm2, %v1698_v33 }
  0xf2   :  { %v930_v44 = vadd.f32 %v929_v40, %v928_v37  ;;  %v733_v46 = vadd.f32 %v732_v41, %v731_v36  ;;  %v1162_v47 = vpop.f32.mrf.mxu0 }
  0xf3   :  { %654 = vst.msk [vmem:[%s1979_s2 + $0xb8] sm:$0xff] %vm630_vm2, %v1162_v47  ;;  %v933_v56 = vsel %vm630_vm2, %v850_v42, 0.0  ;;  %v853_v1 = vmul.f32 %v1162_v47, %v1162_v47  ;;  %v740_v12 = vsel %vm630_vm2, %v1162_v47, 0.0  ;;  %v1711_v42 = vpop.f32.mrf.mxu1 }
  0xf4   :  { %v735_v52 = vadd.f32 %v734_v49, %v733_v46  ;;  %v932_v53 = vadd.f32 %v931_v48, %v930_v44  ;;  %v458_v54 = vpop.f32.mrf.mxu0  ;;  %683 = vst.msk [vmem:[%s1979_s2 + $0x1a0] sm:$0xff] %vm630_vm2, %v1711_v42 }
  0xf5   :  { %652 = vst.msk [vmem:[%s1979_s2 + $0xa8] sm:$0xff] %vm630_vm2, %v458_v54  ;;  %v736_v57 = vsel %vm630_vm2, %v458_v54, 0.0  ;;  %v851_v58 = vmul.f32 %v458_v54, %v458_v54  ;;  %v939_v20 = vsel %vm630_vm2, %v853_v1, 0.0 }
  0xf6   :  { %v934_v61 = vadd.f32 %v933_v56, %v932_v53  ;;  %v737_v62 = vadd.f32 %v736_v57, %v735_v52  ;;  %v1165_v63 = vpop.f32.mrf.mxu0  ;;  %v1724_v53 = vpop.f32.mrf.mxu1 }
  0xf7   :  { %v935_v4 = vsel %vm630_vm2, %v851_v58, 0.0  ;;  %657 = vst.msk [vmem:[%s1979_s2 + $0xd0] sm:$0xff] %vm630_vm2, %v1165_v63  ;;  %v856_v28 = vmul.f32 %v1165_v63, %v1165_v63  ;;  %v746_v39 = vsel %vm630_vm2, %v1165_v63, 0.0  ;;  %686 = vst.msk [vmem:[%s1979_s2 + $0x1b8] sm:$0xff] %vm630_vm2, %v1724_v53 }
  0xf8   :  { %v739_v6 = vadd.f32 %v738_v0, %v737_v62  ;;  %v936_v7 = vadd.f32 %v935_v4, %v934_v61  ;;  %v471_v8 = vpop.f32.mrf.mxu0  ;;  %v1737_v61 = vpop.f32.mrf.mxu1 }
  0xf9   :  { %655 = vst.msk [vmem:[%s1979_s2 + $0xc0] sm:$0xff] %vm630_vm2, %v471_v8  ;;  %v854_v13 = vmul.f32 %v471_v8, %v471_v8  ;;  %v742_v21 = vsel %vm630_vm2, %v471_v8, 0.0  ;;  %v945_v48 = vsel %vm630_vm2, %v856_v28, 0.0  ;;  %684 = vst.msk [vmem:[%s1979_s2 + $0x1a8] sm:$0xff] %vm630_vm2, %v1737_v61 }
  0xfa   :  { %v938_v15 = vadd.f32 %v937_v9, %v936_v7  ;;  %v741_v16 = vadd.f32 %v740_v12, %v739_v6  ;;  %v1166_v19 = vpop.f32.mrf.mxu0  ;;  %v1750_v8 = vpop.f32.mrf.mxu1 }
  0xfb   :  { %658 = vst.msk [vmem:[%s1979_s2 + $0xd8] sm:$0xff] %vm630_vm2, %v1166_v19  ;;  %v941_v29 = vsel %vm630_vm2, %v854_v13, 0.0  ;;  %v857_v40 = vmul.f32 %v1166_v19, %v1166_v19  ;;  %v748_v49 = vsel %vm630_vm2, %v1166_v19, 0.0  ;;  %689 = vst.msk [vmem:[%s1979_s2 + $0x1d0] sm:$0xff] %vm630_vm2, %v1750_v8 }
  0xfc   :  { %v743_v24 = vadd.f32 %v742_v21, %v741_v16  ;;  %v940_v25 = vadd.f32 %v939_v20, %v938_v15  ;;  %v474_v26 = vpop.f32.mrf.mxu0  ;;  %v1759_v19 = vpop.f32.mrf.mxu1 }
  0xfd   :  { %656 = vst.msk [vmem:[%s1979_s2 + $0xc8] sm:$0xff] %vm630_vm2, %v474_v26  ;;  %v744_v30 = vsel %vm630_vm2, %v474_v26, 0.0  ;;  %v855_v32 = vmul.f32 %v474_v26, %v474_v26  ;;  %v947_v57 = vsel %vm630_vm2, %v857_v40, 0.0  ;;  %687 = vst.msk [vmem:[%s1979_s2 + $0x1c0] sm:$0xff] %vm630_vm2, %v1759_v19  ;;  %v862_v26 = vmul.f32 %v1451_v10, %v1451_v10 }
  0xfe   :  { %v942_v34 = vadd.f32 %v941_v29, %v940_v25  ;;  %v745_v36 = vadd.f32 %v744_v30, %v743_v24  ;;  %v1169_v37 = vpop.f32.mrf.mxu0  ;;  %v1770_v28 = vpop.f32.mrf.mxu1 }
  0xff   :  { %v943_v41 = vsel %vm630_vm2, %v855_v32, 0.0  ;;  %661 = vst.msk [vmem:[%s1979_s2 + $0xf0] sm:$0xff] %vm630_vm2, %v1169_v37  ;;  %v860_v1 = vmul.f32 %v1169_v37, %v1169_v37  ;;  %v754_v13 = vsel %vm630_vm2, %v1169_v37, 0.0  ;;  %690 = vst.msk [vmem:[%s1979_s2 + $0x1d8] sm:$0xff] %vm630_vm2, %v1770_v28 }
 0x100   :  { %v747_v44 = vadd.f32 %v746_v39, %v745_v36  ;;  %v944_v46 = vadd.f32 %v943_v41, %v942_v34  ;;  %v487_v47 = vpop.f32.mrf.mxu0  ;;  %v758_v34 = vsel %vm630_vm2, %v1451_v10, 0.0  ;;  %v863_v36 = vmul.f32 %v1477_v23, %v1477_v23  ;;  %v1782_v37 = vpop.f32.mrf.mxu1 }
 0x101   :  { %659 = vst.msk [vmem:[%s1979_s2 + $0xe0] sm:$0xff] %vm630_vm2, %v487_v47  ;;  %v858_v52 = vmul.f32 %v487_v47, %v487_v47  ;;  %v750_v58 = vsel %vm630_vm2, %v487_v47, 0.0  ;;  %v953_v24 = vsel %vm630_vm2, %v860_v1, 0.0  ;;  %688 = vst.msk [vmem:[%s1979_s2 + $0x1c8] sm:$0xff] %vm630_vm2, %v1782_v37  ;;  %v864_v41 = vmul.f32 %v1438_v3, %v1438_v3 }
 0x102   :  { %v946_v54 = vadd.f32 %v945_v48, %v944_v46  ;;  %v749_v55 = vadd.f32 %v748_v49, %v747_v44  ;;  %v1170_v56 = vpop.f32.mrf.mxu0  ;;  %v957_v44 = vsel %vm630_vm2, %v862_v26, 0.0  ;;  %v760_v10 = vsel %vm630_vm2, %v1477_v23, 0.0  ;;  %v1794_v46 = vpop.f32.mrf.mxu1 }
 0x103   :  { %662 = vst.msk [vmem:[%s1979_s2 + $0xf8] sm:$0xff] %vm630_vm2, %v1170_v56  ;;  %v949_v4 = vsel %vm630_vm2, %v858_v52, 0.0  ;;  %v861_v15 = vmul.f32 %v1170_v56, %v1170_v56  ;;  %v756_v25 = vsel %vm630_vm2, %v1170_v56, 0.0  ;;  %693 = vst.msk [vmem:[%s1979_s2 + $0x1f0] sm:$0xff] %vm630_vm2, %v1794_v46  ;;  %v762_v49 = vsel %vm630_vm2, %v1438_v3, 0.0 }
 0x104   :  { %v751_v62 = vadd.f32 %v750_v58, %v749_v55  ;;  %v948_v63 = vadd.f32 %v947_v57, %v946_v54  ;;  %v490_v0 = vpop.f32.mrf.mxu0  ;;  %v865_v52 = vmul.f32 %v1464_v17, %v1464_v17  ;;  %v959_v54 = vsel %vm630_vm2, %v863_v36, 0.0  ;;  %v1806_v55 = vpop.f32.mrf.mxu1 }
 0x105   :  { %660 = vst.msk [vmem:[%s1979_s2 + $0xe8] sm:$0xff] %vm630_vm2, %v490_v0  ;;  %v752_v6 = vsel %vm630_vm2, %v490_v0, 0.0  ;;  %v859_v7 = vmul.f32 %v490_v0, %v490_v0  ;;  %v955_v32 = vsel %vm630_vm2, %v861_v15, 0.0  ;;  %691 = vst.msk [vmem:[%s1979_s2 + $0x1e0] sm:$0xff] %vm630_vm2, %v1806_v55  ;;  %v961_v57 = vsel %vm630_vm2, %v864_v41, 0.0 }
 0x106   :  { %v950_v9 = vadd.f32 %v949_v4, %v948_v63  ;;  %v753_v12 = vadd.f32 %v752_v6, %v751_v62  ;;  %v764_v3 = vsel %vm630_vm2, %v1464_v17, 0.0  ;;  %v866_v58 = vmul.f32 %v1503_v38, %v1503_v38  ;;  %v1818_v62 = vpop.f32.mrf.mxu1 }
 0x107   :  { %v951_v16 = vsel %vm630_vm2, %v859_v7, 0.0  ;;  %694 = vst.msk [vmem:[%s1979_s2 + $0x1f8] sm:$0xff] %vm630_vm2, %v1818_v62  ;;  %v963_v1 = vsel %vm630_vm2, %v865_v52, 0.0  ;;  %v766_v4 = vsel %vm630_vm2, %v1503_v38, 0.0  ;;  %v867_v17 = vmul.f32 %v1529_v51, %v1529_v51 }
 0x108   :  { %v755_v20 = vadd.f32 %v754_v13, %v753_v12  ;;  %v952_v21 = vadd.f32 %v951_v16, %v950_v9  ;;  %v1830_v6 = vpop.f32.mrf.mxu1  ;;  %v868_v12 = vmul.f32 %v1490_v31, %v1490_v31  ;;  %v965_v13 = vsel %vm630_vm2, %v866_v58, 0.0 }
 0x109   :  { %692 = vst.msk [vmem:[%s1979_s2 + $0x1e8] sm:$0xff] %vm630_vm2, %v1830_v6  ;;  %v768_v38 = vsel %vm630_vm2, %v1529_v51, 0.0  ;;  %v870_v51 = vmul.f32 %v1555_v2, %v1555_v2 }
 0x10a   :  { %v757_v29 = vadd.f32 %v756_v25, %v755_v20  ;;  %v954_v30 = vadd.f32 %v953_v24, %v952_v21  ;;  %v770_v20 = vsel %vm630_vm2, %v1490_v31, 0.0  ;;  %v869_v21 = vmul.f32 %v1516_v45, %v1516_v45 }
 0x10b   :  { %v967_v24 = vsel %vm630_vm2, %v867_v17, 0.0  ;;  %v774_v31 = vsel %vm630_vm2, %v1555_v2, 0.0  ;;  %v873_v2 = vmul.f32 %v1568_v11, %v1568_v11  ;;  %v876_v17 = vmul.f32 %v1594_v27, %v1594_v27 }
 0x10c   :  { %v956_v39 = vadd.f32 %v955_v32, %v954_v30  ;;  %v759_v40 = vadd.f32 %v758_v34, %v757_v29  ;;  %v969_v29 = vsel %vm630_vm2, %v868_v12, 0.0  ;;  %v772_v30 = vsel %vm630_vm2, %v1516_v45, 0.0 }
 0x10d   :  { %v971_v36 = vsel %vm630_vm2, %v869_v21, 0.0  ;;  %v973_v45 = vsel %vm630_vm2, %v870_v51, 0.0  ;;  %v788_v21 = vsel %vm630_vm2, %v1620_v43, 0.0 }
 0x10e   :  { %v761_v47 = vadd.f32 %v760_v10, %v759_v40  ;;  %v958_v48 = vadd.f32 %v957_v44, %v956_v39  ;;  %v871_v39 = vmul.f32 %v1581_v18, %v1581_v18  ;;  %v872_v44 = vmul.f32 %v1542_v59, %v1542_v59 }
 0x10f   :  { %v776_v10 = vsel %vm630_vm2, %v1581_v18, 0.0  ;;  %v874_v18 = vmul.f32 %v1607_v35, %v1607_v35 }
 0x110   :  { %v763_v23 = vadd.f32 %v762_v49, %v761_v47  ;;  %v960_v56 = vadd.f32 %v959_v54, %v958_v48  ;;  %v778_v49 = vsel %vm630_vm2, %v1542_v59, 0.0  ;;  %v975_v52 = vsel %vm630_vm2, %v871_v39, 0.0 }
 0x111   :  { %v782_v59 = vsel %vm630_vm2, %v1607_v35, 0.0  ;;  %v877_v35 = vmul.f32 %v1620_v43, %v1620_v43  ;;  %v794_v39 = vsel %vm630_vm2, %v1646_v60, 0.0 }
 0x112   :  { %v962_v63 = vadd.f32 %v961_v57, %v960_v56  ;;  %v765_v0 = vadd.f32 %v764_v3, %v763_v23  ;;  %v977_v56 = vsel %vm630_vm2, %v872_v44, 0.0  ;;  %v780_v57 = vsel %vm630_vm2, %v1568_v11, 0.0 }
 0x113   :  { %v981_v11 = vsel %vm630_vm2, %v874_v18, 0.0 }
 0x114   :  { %v767_v7 = vadd.f32 %v766_v4, %v765_v0  ;;  %v964_v9 = vadd.f32 %v963_v1, %v962_v63  ;;  %v979_v63 = vsel %vm630_vm2, %v873_v2, 0.0  ;;  %v875_v0 = vmul.f32 %v1633_v50, %v1633_v50 }
 0x115   :  { %v883_v2 = vmul.f32 %v1737_v61, %v1737_v61 }
 0x116   :  { %v966_v15 = vadd.f32 %v965_v13, %v964_v9  ;;  %v769_v16 = vadd.f32 %v768_v38, %v767_v7  ;;  %v784_v7 = vsel %vm630_vm2, %v1633_v50, 0.0  ;;  %v786_v13 = vsel %vm630_vm2, %v1594_v27, 0.0 }
 0x117   :  { %v983_v38 = vsel %vm630_vm2, %v875_v0, 0.0  ;;  %v878_v50 = vmul.f32 %v1659_v5, %v1659_v5  ;;  %v790_v27 = vsel %vm630_vm2, %v1659_v5, 0.0  ;;  %v881_v5 = vmul.f32 %v1672_v14, %v1672_v14 }
 0x118   :  { %v771_v25 = vadd.f32 %v770_v20, %v769_v16  ;;  %v968_v26 = vadd.f32 %v967_v24, %v966_v15  ;;  %v985_v20 = vsel %vm630_vm2, %v876_v17, 0.0 }
 0x119   :  { %v989_v43 = vsel %vm630_vm2, %v878_v50, 0.0 }
 0x11a   :  { %v970_v32 = vadd.f32 %v969_v29, %v968_v26  ;;  %v773_v34 = vadd.f32 %v772_v30, %v771_v25  ;;  %v987_v26 = vsel %vm630_vm2, %v877_v35, 0.0  ;;  %v879_v29 = vmul.f32 %v1685_v22, %v1685_v22 }
 0x11b   :  { %v808_v35 = vsel %vm630_vm2, %v1782_v37, 0.0 }
 0x11c   :  { %v775_v40 = vadd.f32 %v774_v31, %v773_v34  ;;  %v972_v41 = vadd.f32 %v971_v36, %v970_v32  ;;  %v880_v32 = vmul.f32 %v1646_v60, %v1646_v60  ;;  %v792_v34 = vsel %vm630_vm2, %v1685_v22, 0.0 }
 0x11d   :  { %v882_v22 = vmul.f32 %v1711_v42, %v1711_v42  ;;  %v798_v60 = vsel %vm630_vm2, %v1711_v42, 0.0  ;;  %v885_v42 = vmul.f32 %v1724_v53, %v1724_v53 }
 0x11e   :  { %v974_v47 = vadd.f32 %v973_v45, %v972_v41  ;;  %v777_v48 = vadd.f32 %v776_v10, %v775_v40  ;;  %v991_v40 = vsel %vm630_vm2, %v879_v29, 0.0  ;;  %v993_v45 = vsel %vm630_vm2, %v880_v32, 0.0 }
 0x11f   :  { %v796_v10 = vsel %vm630_vm2, %v1672_v14, 0.0  ;;  %v997_v14 = vsel %vm630_vm2, %v882_v22, 0.0 }
 0x120   :  { %v779_v54 = vadd.f32 %v778_v49, %v777_v48  ;;  %v976_v23 = vadd.f32 %v975_v52, %v974_v47  ;;  %v995_v49 = vsel %vm630_vm2, %v881_v5, 0.0 }
 0x122   :  { %v978_v3 = vadd.f32 %v977_v56, %v976_v23  ;;  %v781_v58 = vadd.f32 %v780_v57, %v779_v54  ;;  %v884_v23 = vmul.f32 %v1698_v33, %v1698_v33  ;;  %v800_v56 = vsel %vm630_vm2, %v1737_v61, 0.0 }
 0x123   :  { %v886_v61 = vmul.f32 %v1759_v19, %v1759_v19 }
 0x124   :  { %v783_v1 = vadd.f32 %v782_v59, %v781_v58  ;;  %v980_v4 = vadd.f32 %v979_v63, %v978_v3  ;;  %v802_v3 = vsel %vm630_vm2, %v1698_v33, 0.0  ;;  %v999_v58 = vsel %vm630_vm2, %v883_v2, 0.0 }
 0x125   :  { %v1001_v0 = vsel %vm630_vm2, %v884_v23, 0.0  ;;  %v806_v33 = vsel %vm630_vm2, %v1759_v19, 0.0  ;;  %v889_v19 = vmul.f32 %v1770_v28, %v1770_v28 }
 0x126   :  { %v982_v9 = vadd.f32 %v981_v11, %v980_v4  ;;  %v785_v12 = vadd.f32 %v784_v7, %v783_v1  ;;  %v804_v1 = vsel %vm630_vm2, %v1724_v53, 0.0  ;;  %v1003_v11 = vsel %vm630_vm2, %v885_v42, 0.0 }
 0x127   :  { %v887_v7 = vmul.f32 %v1782_v37, %v1782_v37  ;;  %v1005_v53 = vsel %vm630_vm2, %v886_v61, 0.0  ;;  %v890_v37 = vmul.f32 %v1806_v55, %v1806_v55  ;;  %v1011_v29 = vsel %vm630_vm2, %v889_v19, 0.0 }
 0x128   :  { %v787_v15 = vadd.f32 %v786_v13, %v785_v12  ;;  %v984_v16 = vadd.f32 %v983_v38, %v982_v9  ;;  %v888_v13 = vmul.f32 %v1750_v8, %v1750_v8 }
 0x12a   :  { %v986_v24 = vadd.f32 %v985_v20, %v984_v16  ;;  %v789_v25 = vadd.f32 %v788_v21, %v787_v15  ;;  %v810_v16 = vsel %vm630_vm2, %v1750_v8, 0.0  ;;  %v1007_v20 = vsel %vm630_vm2, %v887_v7, 0.0 }
 0x12b   :  { %v814_v8 = vsel %vm630_vm2, %v1806_v55, 0.0  ;;  %v893_v55 = vmul.f32 %v1818_v62, %v1818_v62 }
 0x12c   :  { %v791_v30 = vadd.f32 %v790_v27, %v789_v25  ;;  %v988_v51 = vadd.f32 %v987_v26, %v986_v24  ;;  %v1009_v24 = vsel %vm630_vm2, %v888_v13, 0.0  ;;  %v812_v25 = vsel %vm630_vm2, %v1770_v28, 0.0 }
 0x12d   :  { %v1013_v28 = vsel %vm630_vm2, %v890_v37, 0.0 }
 0x12e   :  { %v990_v36 = vadd.f32 %v989_v43, %v988_v51  ;;  %v793_v31 = vadd.f32 %v792_v34, %v791_v30  ;;  %v891_v30 = vmul.f32 %v1830_v6, %v1830_v6  ;;  %v892_v43 = vmul.f32 %v1794_v46, %v1794_v46 }
 0x12f   :  { %v816_v34 = vsel %vm630_vm2, %v1830_v6, 0.0  ;;  %v1019_v6 = vsel %vm630_vm2, %v893_v55, 0.0 }
 0x130   :  { %v795_v41 = vadd.f32 %v794_v39, %v793_v31  ;;  %v992_v44 = vadd.f32 %v991_v40, %v990_v36  ;;  %v818_v39 = vsel %vm630_vm2, %v1794_v46, 0.0  ;;  %v1015_v5 = vsel %vm630_vm2, %v891_v30, 0.0 }
 0x132   :  { %v994_v47 = vadd.f32 %v993_v45, %v992_v44  ;;  %v797_v48 = vadd.f32 %v796_v10, %v795_v41  ;;  %v1017_v44 = vsel %vm630_vm2, %v892_v43, 0.0  ;;  %v820_v45 = vsel %vm630_vm2, %v1818_v62, 0.0 }
 0x134   :  { %v799_v52 = vadd.f32 %v798_v60, %v797_v48  ;;  %v996_v54 = vadd.f32 %v995_v49, %v994_v47 }
 0x136   :  { %v998_v57 = vadd.f32 %v997_v14, %v996_v54  ;;  %v801_v18 = vadd.f32 %v800_v56, %v799_v52 }
 0x138   :  { %v803_v63 = vadd.f32 %v802_v3, %v801_v18  ;;  %v1000_v59 = vadd.f32 %v999_v58, %v998_v57 }
 0x13a   :  { %v1002_v4 = vadd.f32 %v1001_v0, %v1000_v59  ;;  %v805_v17 = vadd.f32 %v804_v1, %v803_v63 }
 0x13c   :  { %v807_v9 = vadd.f32 %v806_v33, %v805_v17  ;;  %v1004_v12 = vadd.f32 %v1003_v11, %v1002_v4 }
 0x13e   :  { %v1006_v38 = vadd.f32 %v1005_v53, %v1004_v12  ;;  %v809_v15 = vadd.f32 %v808_v35, %v807_v9 }
 0x140   :  { %v811_v21 = vadd.f32 %v810_v16, %v809_v15  ;;  %v1008_v50 = vadd.f32 %v1007_v20, %v1006_v38 }
 0x142   :  { %v1010_v26 = vadd.f32 %v1009_v24, %v1008_v50  ;;  %v813_v27 = vadd.f32 %v812_v25, %v811_v21 }
 0x144   :  { %v815_v51 = vadd.f32 %v814_v8, %v813_v27  ;;  %v1012_v32 = vadd.f32 %v1011_v29, %v1010_v26 }
 0x146   :  { %v1014_v36 = vadd.f32 %v1013_v28, %v1012_v32  ;;  %v817_v31 = vadd.f32 %v816_v34, %v815_v51 }
 0x148   :  { %v819_v40 = vadd.f32 %v818_v39, %v817_v31  ;;  %v1016_v41 = vadd.f32 %v1015_v5, %v1014_v36 }
 0x14a   :  { %v821_v10 = vadd.f32 %v820_v45, %v819_v40  ;;  %v1018_v22 = vadd.f32 %v1017_v44, %v1016_v41 }
 0x14c   :  { %v822_v47 = vrot.slane %v821_v10, 4  ;;  %v1020_v48 = vadd.f32 %v1019_v6, %v1018_v22 }
 0x14e   :  { %v823_v49 = vadd.f32 %v822_v47, %v821_v10  ;;  %v1021_v46 = vrot.slane %v1020_v48, 4 }
 0x150   :  { %v824_v60 = vrot.slane %v823_v49, 2  ;;  %v1022_v2 = vadd.f32 %v1021_v46, %v1020_v48 }
 0x152   :  { %v825_v52 = vadd.f32 %v824_v60, %v823_v49  ;;  %v1023_v54 = vrot.slane %v1022_v2, 2 }
 0x154   :  { %v826_v23 = vrot.slane %v825_v52, 1  ;;  %v1024_v14 = vadd.f32 %v1023_v54, %v1022_v2 }
 0x156   :  { %v827_v56 = vadd.f32 %v826_v23, %v825_v52  ;;  %v1025_v57 = vrot.slane %v1024_v14, 1 }
 0x158   :  { %829 = vst.msk [vmem:[%s1980_s3] sm:$0x1] %vm828_vm3, %v827_v56  ;;  %v1026_v62 = vadd.f32 %v1025_v57, %v1024_v14 }
 0x15a   :  { %1027 = vst.msk [vmem:[%s1981_s4] sm:$0x1] %vm828_vm3, %v1026_v62 }

// kernel: bottleneck_forward.7
= control target key start
LH: loop header
LB: loop body
LE: loop exit
PB: predicated region body
PF: predicated region fallthrough
CT: control target
= control target key end

     0   :  { %vm133_vm0 = vcmask 1041408   ;;  %vm108_vm1 = vcmask 31744   ;;  %vm234_vm2 = vcmask 130048   ;;  %vm288_vm3 = vcmask 122880   ;;  %s641_s3 = inlined_call_operand.vmem [shape: bf16[4,16], index: 3, kind: input, shape index: {}]   ;;  %s642_s0 = inlined_call_operand.vmem [shape: f32[128,4], index: 0, kind: input, shape index: {}]   ;;  %s643_s1 = inlined_call_operand.vmem [shape: f32[1,4], index: 1, kind: input, shape index: {}]   ;;  %s644_s2 = inlined_call_operand.vmem [shape: f32[1,4], index: 2, kind: input, shape index: {}]   ;;  %s645_s4 = inlined_call_operand.vmem [shape: f32[128,16], index: 4, kind: output, shape index: {0}]   ;;  %s646_s5 = inlined_call_operand.vmem [shape: f32[1,1,16], index: 5, kind: output, shape index: {1}]   ;;  %s647_s6 = inlined_call_operand.vmem [shape: f32[1,1,16], index: 6, kind: output, shape index: {2}]  }
   0x1   :  { %v107_v0 = vld [vmem:[%s641_s3] sm:$0x3]  ;;  %v22_v2 = vld [vmem:[%s642_s0 + $0x8] sm:$0xff]  ;;  %v23_v6 = vld [vmem:[%s642_s0 + $0x10] sm:$0xff] }
   0x2   :  { %v21_v1 = vld [vmem:[%s642_s0] sm:$0xff]  ;;  %395 = vmatprep.subr.msk.bf16.mxu0 %vm133_vm0, %v107_v0  ;;  %v135_v3 = vsel %vm133_vm0, %v107_v0, 0  ;;  %396 = vmatprep.subr.msk.bf16.mxu1 %vm133_vm0, %v107_v0  ;;  %v24_v9 = vld [vmem:[%s642_s0 + $0x18] sm:$0xff]  ;;  %v26_v12 = vld [vmem:[%s642_s0 + $0x28] sm:$0xff] }
   0x3   :  { %v444_v4 = vld [vmem:[%s643_s1] ss:$0 sm:$0xff]  ;;  %376 = vmatpush3.bf16.msra.mxu0 %v135_v3  ;;  %394 = vmatpush3.bf16.msra.mxu1 %v135_v3  ;;  %v27_v16 = vld [vmem:[%s642_s0 + $0x30] sm:$0xff]  ;;  %v28_v17 = vld [vmem:[%s642_s0 + $0x38] sm:$0xff] }
   0x4   :  { %v449_v5 = vld [vmem:[%s644_s2] ss:$0 sm:$0xff]  ;;  %v44_v7 = vmul.f32 %v444_v4, %v21_v1  ;;  %v45_v8 = vmul.f32 %v444_v4, %v22_v2  ;;  %v46_v10 = vmul.f32 %v444_v4, %v23_v6  ;;  %v47_v13 = vmul.f32 %v444_v4, %v24_v9  ;;  %v30_v27 = vld [vmem:[%s642_s0 + $0x48] sm:$0xff]  ;;  %v31_v32 = vld [vmem:[%s642_s0 + $0x50] sm:$0xff] }
   0x5   :  { %v25_v11 = vld [vmem:[%s642_s0 + $0x20] sm:$0xff]  ;;  %v49_v15 = vmul.f32 %v444_v4, %v26_v12  ;;  %v50_v21 = vmul.f32 %v444_v4, %v27_v16  ;;  %v51_v25 = vmul.f32 %v444_v4, %v28_v17  ;;  %v32_v37 = vld [vmem:[%s642_s0 + $0x58] sm:$0xff]  ;;  %v53_v41 = vmul.f32 %v444_v4, %v30_v27  ;;  %v34_v42 = vld [vmem:[%s642_s0 + $0x68] sm:$0xff] }
   0x6   :  { %v48_v14 = vmul.f32 %v444_v4, %v25_v11  ;;  %v67_v18 = vadd.f32 %v449_v5, %v44_v7  ;;  %v68_v19 = vadd.f32 %v449_v5, %v45_v8  ;;  %v69_v20 = vadd.f32 %v449_v5, %v46_v10  ;;  %v29_v26 = vld [vmem:[%s642_s0 + $0x40] sm:$0xff]  ;;  %v35_v43 = vld [vmem:[%s642_s0 + $0x70] sm:$0xff]  ;;  %v36_v52 = vld [vmem:[%s642_s0 + $0x78] sm:$0xff] }
   0x7   :  { %v70_v22 = vadd.f32 %v449_v5, %v47_v13  ;;  %v72_v24 = vadd.f32 %v449_v5, %v49_v15  ;;  %v73_v31 = vadd.f32 %v449_v5, %v50_v21  ;;  %v74_v36 = vadd.f32 %v449_v5, %v51_v25  ;;  %v33_v38 = vld [vmem:[%s642_s0 + $0x60] sm:$0xff] }
   0x8   :  { %v71_v23 = vadd.f32 %v449_v5, %v48_v14  ;;  %v83_v28 = vmax.f32 %v67_v18, 0.0  ;;  %v84_v29 = vmax.f32 %v68_v19, 0.0  ;;  %v85_v30 = vmax.f32 %v69_v20, 0.0 }
   0x9   :  { %v86_v33 = vmax.f32 %v70_v22, 0.0  ;;  %v88_v35 = vmax.f32 %v72_v24, 0.0  ;;  %v52_v40 = vmul.f32 %v444_v4, %v29_v26  ;;  %v89_v46 = vmax.f32 %v73_v31, 0.0 }
   0xa   :  { %v87_v34 = vmax.f32 %v71_v23, 0.0  ;;  %v99_v39 = vpack.c.bf16 %v84_v29, %v83_v28  ;;  %v54_v47 = vmul.f32 %v444_v4, %v31_v32  ;;  %v76_v49 = vadd.f32 %v449_v5, %v53_v41 }
   0xb   :  { %v100_v44 = vpack.c.bf16 %v86_v33, %v85_v30  ;;  %v75_v48 = vadd.f32 %v449_v5, %v52_v40  ;;  %v55_v50 = vmul.f32 %v444_v4, %v32_v37  ;;  %v56_v51 = vmul.f32 %v444_v4, %v33_v38 }
   0xc   :  { %v101_v45 = vpack.c.bf16 %v88_v35, %v87_v34  ;;  %377 = vmatprep.mubr.msk.bf16.mxu0 %vm108_vm1, %v99_v39  ;;  %v90_v53 = vmax.f32 %v74_v36, 0.0  ;;  %v77_v54 = vadd.f32 %v449_v5, %v54_v47  ;;  %v57_v55 = vmul.f32 %v444_v4, %v34_v42 }
   0xd   :  { %378 = vmatmul.mubr.msk.bf16.vlgmr.msra.gmra.mxu0 %vm108_vm1, %v100_v44  ;;  %v58_v56 = vmul.f32 %v444_v4, %v35_v43  ;;  %v91_v57 = vmax.f32 %v75_v48, 0.0  ;;  %v92_v58 = vmax.f32 %v76_v49, 0.0  ;;  %v78_v59 = vadd.f32 %v449_v5, %v55_v50 }
   0xe   :  { %381 = vmatprep.mubr.msk.bf16.mxu0 %vm108_vm1, %v101_v45  ;;  %v79_v60 = vadd.f32 %v449_v5, %v56_v51  ;;  %v93_v61 = vmax.f32 %v77_v54, 0.0  ;;  %v80_v62 = vadd.f32 %v449_v5, %v57_v55  ;;  %v59_v63 = vmul.f32 %v444_v4, %v36_v52 }
   0xf   :  { %v103_v0 = vpack.c.bf16 %v92_v58, %v91_v57  ;;  %v94_v1 = vmax.f32 %v78_v59, 0.0  ;;  %v81_v3 = vadd.f32 %v449_v5, %v58_v56  ;;  %v102_v6 = vpack.c.bf16 %v90_v53, %v89_v46 }
  0x10   :  { %v95_v2 = vmax.f32 %v79_v60, 0.0  ;;  %v96_v7 = vmax.f32 %v80_v62, 0.0  ;;  %v82_v8 = vadd.f32 %v449_v5, %v59_v63 }
  0x11   :  { %385 = vmatprep.mubr.msk.bf16.mxu1 %vm108_vm1, %v103_v0  ;;  %v104_v9 = vpack.c.bf16 %v94_v1, %v93_v61  ;;  %v97_v11 = vmax.f32 %v81_v3, 0.0 }
  0x12   :  { %v105_v10 = vpack.c.bf16 %v96_v7, %v95_v2  ;;  %v98_v12 = vmax.f32 %v82_v8, 0.0 }
  0x13   :  { %386 = vmatmul.mubr.msk.bf16.vlgmr.msra.gmra.mxu1 %vm108_vm1, %v104_v9 }
  0x14   :  { %389 = vmatprep.mubr.msk.bf16.mxu1 %vm108_vm1, %v105_v10  ;;  %v106_v4 = vpack.c.bf16 %v98_v12, %v97_v11 }
  0x15   :  { %382 = vmatmul.mubr.msk.bf16.gmra.mxu0 %vm108_vm1, %v102_v6 }
  0x1b   :  { %390 = vmatmul.mubr.msk.bf16.gmra.mxu1 %vm108_vm1, %v106_v4 }
  0xcd   :  { %v379_v13 = vpop.f32.mrf.mxu0 }
  0xce   :  { %237 = vst.msk [vmem:[%s645_s4 + $0x10] sm:$0xff] %vm234_vm2, %v379_v13  ;;  %v292_v17 = vmul.f32 %v379_v13, %v379_v13  ;;  %v254_v24 = vsel %vm234_vm2, %v379_v13, 0.0 }
  0xcf   :  { %v171_v5 = vpop.f32.mrf.mxu0 }
  0xd0   :  { %235 = vst.msk [vmem:[%s645_s4] sm:$0xff] %vm234_vm2, %v171_v5  ;;  %v290_v15 = vmul.f32 %v171_v5, %v171_v5  ;;  %v251_v18 = vsel %vm234_vm2, %v171_v5, 0.0  ;;  %v309_v32 = vsel %vm234_vm2, %v292_v17, 0.0 }
  0xd1   :  { %v380_v14 = vpop.f32.mrf.mxu0 }
  0xd2   :  { %238 = vst.msk [vmem:[%s645_s4 + $0x18] sm:$0xff] %vm234_vm2, %v380_v14  ;;  %v306_v25 = vsel %vm234_vm2, %v290_v15, 0.0  ;;  %v293_v26 = vmul.f32 %v380_v14, %v380_v14  ;;  %v256_v33 = vsel %vm234_vm2, %v380_v14, 0.0 }
  0xd3   :  { %v174_v16 = vpop.f32.mrf.mxu0  ;;  %v551_v21 = vpop.f32.mrf.mxu1 }
  0xd4   :  { %236 = vst.msk [vmem:[%s645_s4 + $0x8] sm:$0xff] %vm234_vm2, %v174_v16  ;;  %v252_v19 = vsel %vm234_vm2, %v174_v16, 0.0  ;;  %v291_v20 = vmul.f32 %v174_v16, %v174_v16  ;;  %245 = vst.msk [vmem:[%s645_s4 + $0x50] sm:$0xff] %vm234_vm2, %v551_v21  ;;  %v311_v39 = vsel %vm234_vm2, %v293_v26, 0.0  ;;  %v300_v8 = vmul.f32 %v551_v21, %v551_v21 }
  0xd5   :  { %v253_v22 = vadd.f32 %v252_v19, %v251_v18  ;;  %v383_v23 = vpop.f32.mrf.mxu0  ;;  %v203_v28 = vpop.f32.mrf.mxu1  ;;  %v270_v4 = vsel %vm234_vm2, %v551_v21, 0.0 }
  0xd6   :  { %v307_v27 = vsel %vm234_vm2, %v291_v20, 0.0  ;;  %241 = vst.msk [vmem:[%s645_s4 + $0x30] sm:$0xff] %vm234_vm2, %v383_v23  ;;  %243 = vst.msk [vmem:[%s645_s4 + $0x40] sm:$0xff] %vm234_vm2, %v203_v28  ;;  %v296_v45 = vmul.f32 %v383_v23, %v383_v23  ;;  %v262_v52 = vsel %vm234_vm2, %v383_v23, 0.0  ;;  %v298_v60 = vmul.f32 %v203_v28, %v203_v28 }
  0xd7   :  { %v255_v29 = vadd.f32 %v254_v24, %v253_v22  ;;  %v308_v30 = vadd.f32 %v307_v27, %v306_v25  ;;  %v187_v31 = vpop.f32.mrf.mxu0  ;;  %v388_v35 = vpop.f32.mrf.mxu1  ;;  %v266_v1 = vsel %vm234_vm2, %v203_v28, 0.0  ;;  %v325_v16 = vsel %vm234_vm2, %v300_v8, 0.0 }
  0xd8   :  { %239 = vst.msk [vmem:[%s645_s4 + $0x20] sm:$0xff] %vm234_vm2, %v187_v31  ;;  %v294_v34 = vmul.f32 %v187_v31, %v187_v31  ;;  %246 = vst.msk [vmem:[%s645_s4 + $0x58] sm:$0xff] %vm234_vm2, %v388_v35  ;;  %v258_v40 = vsel %vm234_vm2, %v187_v31, 0.0  ;;  %v317_v58 = vsel %vm234_vm2, %v296_v45, 0.0  ;;  %v321_v9 = vsel %vm234_vm2, %v298_v60, 0.0 }
  0xd9   :  { %v310_v36 = vadd.f32 %v309_v32, %v308_v30  ;;  %v257_v37 = vadd.f32 %v256_v33, %v255_v29  ;;  %v384_v38 = vpop.f32.mrf.mxu0  ;;  %v206_v41 = vpop.f32.mrf.mxu1  ;;  %v301_v13 = vmul.f32 %v388_v35, %v388_v35  ;;  %v272_v17 = vsel %vm234_vm2, %v388_v35, 0.0 }
  0xda   :  { %242 = vst.msk [vmem:[%s645_s4 + $0x38] sm:$0xff] %vm234_vm2, %v384_v38  ;;  %244 = vst.msk [vmem:[%s645_s4 + $0x48] sm:$0xff] %vm234_vm2, %v206_v41  ;;  %v313_v46 = vsel %vm234_vm2, %v294_v34, 0.0  ;;  %v297_v53 = vmul.f32 %v384_v38, %v384_v38  ;;  %v264_v59 = vsel %vm234_vm2, %v384_v38, 0.0  ;;  %v299_v2 = vmul.f32 %v206_v41, %v206_v41 }
  0xdb   :  { %v259_v42 = vadd.f32 %v258_v40, %v257_v37  ;;  %v312_v43 = vadd.f32 %v311_v39, %v310_v36  ;;  %v190_v44 = vpop.f32.mrf.mxu0  ;;  %v391_v49 = vpop.f32.mrf.mxu1  ;;  %v268_v10 = vsel %vm234_vm2, %v206_v41, 0.0  ;;  %v327_v22 = vsel %vm234_vm2, %v301_v13, 0.0 }
  0xdc   :  { %240 = vst.msk [vmem:[%s645_s4 + $0x28] sm:$0xff] %vm234_vm2, %v190_v44  ;;  %v260_v47 = vsel %vm234_vm2, %v190_v44, 0.0  ;;  %v295_v48 = vmul.f32 %v190_v44, %v190_v44  ;;  %249 = vst.msk [vmem:[%s645_s4 + $0x70] sm:$0xff] %vm234_vm2, %v391_v49  ;;  %v319_v0 = vsel %vm234_vm2, %v297_v53, 0.0  ;;  %v323_v5 = vsel %vm234_vm2, %v299_v2, 0.0 }
  0xdd   :  { %v314_v50 = vadd.f32 %v313_v46, %v312_v43  ;;  %v261_v51 = vadd.f32 %v260_v47, %v259_v42  ;;  %v219_v55 = vpop.f32.mrf.mxu1  ;;  %v304_v21 = vmul.f32 %v391_v49, %v391_v49  ;;  %v278_v31 = vsel %vm234_vm2, %v391_v49, 0.0 }
  0xde   :  { %v315_v54 = vsel %vm234_vm2, %v295_v48, 0.0  ;;  %247 = vst.msk [vmem:[%s645_s4 + $0x60] sm:$0xff] %vm234_vm2, %v219_v55  ;;  %v302_v18 = vmul.f32 %v219_v55, %v219_v55  ;;  %v274_v23 = vsel %vm234_vm2, %v219_v55, 0.0 }
  0xdf   :  { %v263_v56 = vadd.f32 %v262_v52, %v261_v51  ;;  %v316_v57 = vadd.f32 %v315_v54, %v314_v50  ;;  %v392_v61 = vpop.f32.mrf.mxu1  ;;  %v333_v36 = vsel %vm234_vm2, %v304_v21, 0.0 }
  0xe0   :  { %250 = vst.msk [vmem:[%s645_s4 + $0x78] sm:$0xff] %vm234_vm2, %v392_v61  ;;  %v329_v27 = vsel %vm234_vm2, %v302_v18, 0.0  ;;  %v305_v32 = vmul.f32 %v392_v61, %v392_v61  ;;  %v280_v37 = vsel %vm234_vm2, %v392_v61, 0.0 }
  0xe1   :  { %v265_v62 = vadd.f32 %v264_v59, %v263_v56  ;;  %v318_v63 = vadd.f32 %v317_v58, %v316_v57  ;;  %v222_v3 = vpop.f32.mrf.mxu1 }
  0xe2   :  { %248 = vst.msk [vmem:[%s645_s4 + $0x68] sm:$0xff] %vm234_vm2, %v222_v3  ;;  %v303_v24 = vmul.f32 %v222_v3, %v222_v3  ;;  %v276_v28 = vsel %vm234_vm2, %v222_v3, 0.0  ;;  %v335_v40 = vsel %vm234_vm2, %v305_v32, 0.0 }
  0xe3   :  { %v320_v6 = vadd.f32 %v319_v0, %v318_v63  ;;  %v267_v7 = vadd.f32 %v266_v1, %v265_v62 }
  0xe4   :  { %v331_v33 = vsel %vm234_vm2, %v303_v24, 0.0 }
  0xe5   :  { %v269_v11 = vadd.f32 %v268_v10, %v267_v7  ;;  %v322_v12 = vadd.f32 %v321_v9, %v320_v6 }
  0xe7   :  { %v271_v14 = vadd.f32 %v270_v4, %v269_v11  ;;  %v324_v15 = vadd.f32 %v323_v5, %v322_v12 }
  0xe9   :  { %v326_v19 = vadd.f32 %v325_v16, %v324_v15  ;;  %v273_v20 = vadd.f32 %v272_v17, %v271_v14 }
  0xeb   :  { %v275_v25 = vadd.f32 %v274_v23, %v273_v20  ;;  %v328_v26 = vadd.f32 %v327_v22, %v326_v19 }
  0xed   :  { %v330_v29 = vadd.f32 %v329_v27, %v328_v26  ;;  %v277_v30 = vadd.f32 %v276_v28, %v275_v25 }
  0xef   :  { %v279_v34 = vadd.f32 %v278_v31, %v277_v30  ;;  %v332_v35 = vadd.f32 %v331_v33, %v330_v29 }
  0xf1   :  { %v281_v38 = vadd.f32 %v280_v37, %v279_v34  ;;  %v334_v39 = vadd.f32 %v333_v36, %v332_v35 }
  0xf3   :  { %v282_v41 = vrot.slane %v281_v38, 4  ;;  %v336_v42 = vadd.f32 %v335_v40, %v334_v39 }
  0xf5   :  { %v283_v43 = vadd.f32 %v282_v41, %v281_v38  ;;  %v337_v44 = vrot.slane %v336_v42, 4 }
  0xf7   :  { %v284_v45 = vrot.slane %v283_v43, 2  ;;  %v338_v46 = vadd.f32 %v337_v44, %v336_v42 }
  0xf9   :  { %v285_v47 = vadd.f32 %v284_v45, %v283_v43  ;;  %v339_v48 = vrot.slane %v338_v46, 2 }
  0xfb   :  { %v286_v49 = vrot.slane %v285_v47, 1  ;;  %v340_v50 = vadd.f32 %v339_v48, %v338_v46 }
  0xfd   :  { %v287_v51 = vadd.f32 %v286_v49, %v285_v47  ;;  %v341_v52 = vrot.slane %v340_v50, 1 }
  0xff   :  { %289 = vst.msk [vmem:[%s646_s5] sm:$0x1] %vm288_vm3, %v287_v51  ;;  %v342_v53 = vadd.f32 %v341_v52, %v340_v50 }
 0x101   :  { %343 = vst.msk [vmem:[%s647_s6] sm:$0x1] %vm288_vm3, %v342_v53 }

// kernel: bottleneck_forward.8
= control target key start
LH: loop header
LB: loop body
LE: loop exit
PB: predicated region body
PF: predicated region fallthrough
CT: control target
= control target key end

     0   :  { %vm97_vm0 = vcmask 1043456   ;;  %vm72_vm1 = vcmask 64512   ;;  %vm198_vm2 = vcmask 130048   ;;  %vm252_vm3 = vcmask 122880   ;;  %s555_s1 = inlined_call_operand.vmem [shape: bf16[8,16], index: 1, kind: input, shape index: {}]   ;;  %s556_s0 = inlined_call_operand.vmem [shape: bf16[128,8], index: 0, kind: input, shape index: {}]   ;;  %s557_s2 = inlined_call_operand.vmem [shape: f32[128,16], index: 2, kind: output, shape index: {0}]   ;;  %s558_s3 = inlined_call_operand.vmem [shape: f32[1,1,16], index: 3, kind: output, shape index: {1}]   ;;  %s559_s4 = inlined_call_operand.vmem [shape: f32[1,1,16], index: 4, kind: output, shape index: {2}]  }
   0x1   :  { %v31_v0 = vld [vmem:[%s555_s1] sm:$0xf]  ;;  %v368_v3 = vld [vmem:[%s556_s0 + $0x8] sm:$0xff]   ;;  %v369_v4 = vld [vmem:[%s556_s0 + $0x10] sm:$0xff]  }
   0x2   :  { %365 = vmatprep.subr.msk.bf16.mxu0 %vm97_vm0, %v31_v0  ;;  %v99_v1 = vsel %vm97_vm0, %v31_v0, 0  ;;  %v367_v2 = vld [vmem:[%s556_s0] sm:$0xff]   ;;  %366 = vmatprep.subr.msk.bf16.mxu1 %vm97_vm0, %v31_v0  ;;  %v372_v6 = vld [vmem:[%s556_s0 + $0x28] sm:$0xff]   ;;  %v373_v7 = vld [vmem:[%s556_s0 + $0x30] sm:$0xff]  }
   0x3   :  { %346 = vmatpush3.bf16.msra.mxu0 %v99_v1  ;;  %364 = vmatpush3.bf16.msra.mxu1 %v99_v1  ;;  %v371_v5 = vld [vmem:[%s556_s0 + $0x20] sm:$0xff]   ;;  %v370_v8 = vld [vmem:[%s556_s0 + $0x18] sm:$0xff]  }
   0x4   :  { %347 = vmatprep.mubr.msk.bf16.mxu0 %vm72_vm1, %v367_v2  ;;  %355 = vmatprep.mubr.msk.bf16.mxu1 %vm72_vm1, %v371_v5  ;;  %v374_v9 = vld [vmem:[%s556_s0 + $0x38] sm:$0xff]  }
   0x6   :  { %348 = vmatmul.mubr.msk.bf16.vlgmr.msra.gmra.mxu0 %vm72_vm1, %v368_v3  ;;  %356 = vmatmul.mubr.msk.bf16.vlgmr.msra.gmra.mxu1 %vm72_vm1, %v372_v6 }
   0x7   :  { %351 = vmatprep.mubr.msk.bf16.mxu0 %vm72_vm1, %v369_v4  ;;  %359 = vmatprep.mubr.msk.bf16.mxu1 %vm72_vm1, %v373_v7 }
   0xe   :  { %352 = vmatmul.mubr.msk.bf16.gmra.mxu0 %vm72_vm1, %v370_v8  ;;  %360 = vmatmul.mubr.msk.bf16.gmra.mxu1 %vm72_vm1, %v374_v9 }
  0xc6   :  { %v349_v10 = vpop.f32.mrf.mxu0  ;;  %v443_v12 = vpop.f32.mrf.mxu1 }
  0xc7   :  { %201 = vst.msk [vmem:[%s557_s2 + $0x10] sm:$0xff] %vm198_vm2, %v349_v10  ;;  %209 = vst.msk [vmem:[%s557_s2 + $0x50] sm:$0xff] %vm198_vm2, %v443_v12  ;;  %v256_v17 = vmul.f32 %v349_v10, %v349_v10  ;;  %v218_v24 = vsel %vm198_vm2, %v349_v10, 0.0  ;;  %v264_v4 = vmul.f32 %v443_v12, %v443_v12  ;;  %v234_v9 = vsel %vm198_vm2, %v443_v12, 0.0 }
  0xc8   :  { %v135_v11 = vpop.f32.mrf.mxu0  ;;  %v167_v15 = vpop.f32.mrf.mxu1 }
  0xc9   :  { %199 = vst.msk [vmem:[%s557_s2] sm:$0xff] %vm198_vm2, %v135_v11  ;;  %v254_v14 = vmul.f32 %v135_v11, %v135_v11  ;;  %207 = vst.msk [vmem:[%s557_s2 + $0x40] sm:$0xff] %vm198_vm2, %v167_v15  ;;  %v215_v18 = vsel %vm198_vm2, %v135_v11, 0.0  ;;  %v273_v32 = vsel %vm198_vm2, %v256_v17, 0.0  ;;  %v262_v60 = vmul.f32 %v167_v15, %v167_v15 }
  0xca   :  { %v350_v13 = vpop.f32.mrf.mxu0  ;;  %v464_v21 = vpop.f32.mrf.mxu1  ;;  %v230_v0 = vsel %vm198_vm2, %v167_v15, 0.0  ;;  %v289_v15 = vsel %vm198_vm2, %v264_v4, 0.0 }
  0xcb   :  { %202 = vst.msk [vmem:[%s557_s2 + $0x18] sm:$0xff] %vm198_vm2, %v350_v13  ;;  %210 = vst.msk [vmem:[%s557_s2 + $0x58] sm:$0xff] %vm198_vm2, %v464_v21  ;;  %v270_v25 = vsel %vm198_vm2, %v254_v14, 0.0  ;;  %v257_v26 = vmul.f32 %v350_v13, %v350_v13  ;;  %v220_v33 = vsel %vm198_vm2, %v350_v13, 0.0  ;;  %v285_v5 = vsel %vm198_vm2, %v262_v60, 0.0 }
  0xcc   :  { %v138_v16 = vpop.f32.mrf.mxu0  ;;  %v170_v28 = vpop.f32.mrf.mxu1  ;;  %v265_v10 = vmul.f32 %v464_v21, %v464_v21 }
  0xcd   :  { %200 = vst.msk [vmem:[%s557_s2 + $0x8] sm:$0xff] %vm198_vm2, %v138_v16  ;;  %v216_v19 = vsel %vm198_vm2, %v138_v16, 0.0  ;;  %v255_v20 = vmul.f32 %v138_v16, %v138_v16  ;;  %208 = vst.msk [vmem:[%s557_s2 + $0x48] sm:$0xff] %vm198_vm2, %v170_v28  ;;  %v275_v39 = vsel %vm198_vm2, %v257_v26, 0.0  ;;  %v263_v1 = vmul.f32 %v170_v28, %v170_v28 }
  0xce   :  { %v217_v22 = vadd.f32 %v216_v19, %v215_v18  ;;  %v353_v23 = vpop.f32.mrf.mxu0  ;;  %v488_v35 = vpop.f32.mrf.mxu1  ;;  %v232_v6 = vsel %vm198_vm2, %v170_v28, 0.0  ;;  %v236_v16 = vsel %vm198_vm2, %v464_v21, 0.0 }
  0xcf   :  { %v271_v27 = vsel %vm198_vm2, %v255_v20, 0.0  ;;  %205 = vst.msk [vmem:[%s557_s2 + $0x30] sm:$0xff] %vm198_vm2, %v353_v23  ;;  %213 = vst.msk [vmem:[%s557_s2 + $0x70] sm:$0xff] %vm198_vm2, %v488_v35  ;;  %v260_v45 = vmul.f32 %v353_v23, %v353_v23  ;;  %v226_v52 = vsel %vm198_vm2, %v353_v23, 0.0  ;;  %v287_v11 = vsel %vm198_vm2, %v263_v1, 0.0 }
  0xd0   :  { %v219_v29 = vadd.f32 %v218_v24, %v217_v22  ;;  %v272_v30 = vadd.f32 %v271_v27, %v270_v25  ;;  %v151_v31 = vpop.f32.mrf.mxu0  ;;  %v183_v41 = vpop.f32.mrf.mxu1  ;;  %v291_v20 = vsel %vm198_vm2, %v265_v10, 0.0  ;;  %v268_v25 = vmul.f32 %v488_v35, %v488_v35 }
  0xd1   :  { %203 = vst.msk [vmem:[%s557_s2 + $0x20] sm:$0xff] %vm198_vm2, %v151_v31  ;;  %v258_v34 = vmul.f32 %v151_v31, %v151_v31  ;;  %v222_v40 = vsel %vm198_vm2, %v151_v31, 0.0  ;;  %211 = vst.msk [vmem:[%s557_s2 + $0x60] sm:$0xff] %vm198_vm2, %v183_v41  ;;  %v281_v58 = vsel %vm198_vm2, %v260_v45, 0.0  ;;  %v266_v17 = vmul.f32 %v183_v41, %v183_v41 }
  0xd2   :  { %v274_v36 = vadd.f32 %v273_v32, %v272_v30  ;;  %v221_v37 = vadd.f32 %v220_v33, %v219_v29  ;;  %v354_v38 = vpop.f32.mrf.mxu0  ;;  %v362_v49 = vpop.f32.mrf.mxu1  ;;  %v238_v22 = vsel %vm198_vm2, %v183_v41, 0.0  ;;  %v242_v21 = vsel %vm198_vm2, %v488_v35, 0.0 }
  0xd3   :  { %206 = vst.msk [vmem:[%s557_s2 + $0x38] sm:$0xff] %vm198_vm2, %v354_v38  ;;  %v277_v46 = vsel %vm198_vm2, %v258_v34, 0.0  ;;  %214 = vst.msk [vmem:[%s557_s2 + $0x78] sm:$0xff] %vm198_vm2, %v362_v49  ;;  %v261_v53 = vmul.f32 %v354_v38, %v354_v38  ;;  %v228_v59 = vsel %vm198_vm2, %v354_v38, 0.0  ;;  %v293_v26 = vsel %vm198_vm2, %v266_v17, 0.0 }
  0xd4   :  { %v223_v42 = vadd.f32 %v222_v40, %v221_v37  ;;  %v276_v43 = vadd.f32 %v275_v39, %v274_v36  ;;  %v154_v44 = vpop.f32.mrf.mxu0  ;;  %v186_v55 = vpop.f32.mrf.mxu1  ;;  %v269_v30 = vmul.f32 %v362_v49, %v362_v49  ;;  %v297_v34 = vsel %vm198_vm2, %v268_v25, 0.0 }
  0xd5   :  { %204 = vst.msk [vmem:[%s557_s2 + $0x28] sm:$0xff] %vm198_vm2, %v154_v44  ;;  %v224_v47 = vsel %vm198_vm2, %v154_v44, 0.0  ;;  %v259_v48 = vmul.f32 %v154_v44, %v154_v44  ;;  %212 = vst.msk [vmem:[%s557_s2 + $0x68] sm:$0xff] %vm198_vm2, %v186_v55  ;;  %v283_v63 = vsel %vm198_vm2, %v261_v53, 0.0  ;;  %v267_v12 = vmul.f32 %v186_v55, %v186_v55 }
  0xd6   :  { %v278_v50 = vadd.f32 %v277_v46, %v276_v43  ;;  %v225_v51 = vadd.f32 %v224_v47, %v223_v42  ;;  %v240_v27 = vsel %vm198_vm2, %v186_v55, 0.0  ;;  %v244_v36 = vsel %vm198_vm2, %v362_v49, 0.0 }
  0xd7   :  { %v279_v54 = vsel %vm198_vm2, %v259_v48, 0.0  ;;  %v295_v31 = vsel %vm198_vm2, %v267_v12, 0.0  ;;  %v299_v39 = vsel %vm198_vm2, %v269_v30, 0.0 }
  0xd8   :  { %v227_v56 = vadd.f32 %v226_v52, %v225_v51  ;;  %v280_v57 = vadd.f32 %v279_v54, %v278_v50 }
  0xda   :  { %v229_v61 = vadd.f32 %v228_v59, %v227_v56  ;;  %v282_v62 = vadd.f32 %v281_v58, %v280_v57 }
  0xdc   :  { %v284_v2 = vadd.f32 %v283_v63, %v282_v62  ;;  %v231_v3 = vadd.f32 %v230_v0, %v229_v61 }
  0xde   :  { %v233_v7 = vadd.f32 %v232_v6, %v231_v3  ;;  %v286_v8 = vadd.f32 %v285_v5, %v284_v2 }
  0xe0   :  { %v235_v13 = vadd.f32 %v234_v9, %v233_v7  ;;  %v288_v14 = vadd.f32 %v287_v11, %v286_v8 }
  0xe2   :  { %v290_v18 = vadd.f32 %v289_v15, %v288_v14  ;;  %v237_v19 = vadd.f32 %v236_v16, %v235_v13 }
  0xe4   :  { %v239_v23 = vadd.f32 %v238_v22, %v237_v19  ;;  %v292_v24 = vadd.f32 %v291_v20, %v290_v18 }
  0xe6   :  { %v294_v28 = vadd.f32 %v293_v26, %v292_v24  ;;  %v241_v29 = vadd.f32 %v240_v27, %v239_v23 }
  0xe8   :  { %v243_v32 = vadd.f32 %v242_v21, %v241_v29  ;;  %v296_v33 = vadd.f32 %v295_v31, %v294_v28 }
  0xea   :  { %v245_v37 = vadd.f32 %v244_v36, %v243_v32  ;;  %v298_v38 = vadd.f32 %v297_v34, %v296_v33 }
  0xec   :  { %v246_v40 = vrot.slane %v245_v37, 4  ;;  %v300_v41 = vadd.f32 %v299_v39, %v298_v38 }
  0xee   :  { %v247_v42 = vadd.f32 %v246_v40, %v245_v37  ;;  %v301_v43 = vrot.slane %v300_v41, 4 }
  0xf0   :  { %v248_v44 = vrot.slane %v247_v42, 2  ;;  %v302_v45 = vadd.f32 %v301_v43, %v300_v41 }
  0xf2   :  { %v249_v35 = vadd.f32 %v248_v44, %v247_v42  ;;  %v303_v46 = vrot.slane %v302_v45, 2 }
  0xf4   :  { %v250_v47 = vrot.slane %v249_v35, 1  ;;  %v304_v48 = vadd.f32 %v303_v46, %v302_v45 }
  0xf6   :  { %v251_v50 = vadd.f32 %v250_v47, %v249_v35  ;;  %v305_v51 = vrot.slane %v304_v48, 1 }
  0xf8   :  { %253 = vst.msk [vmem:[%s558_s3] sm:$0x1] %vm252_vm3, %v251_v50  ;;  %v306_v49 = vadd.f32 %v305_v51, %v304_v48 }
  0xfa   :  { %307 = vst.msk [vmem:[%s559_s4] sm:$0x1] %vm252_vm3, %v306_v49 }

// kernel: bottleneck_forward.6
= control target key start
LH: loop header
LB: loop body
LE: loop exit
PB: predicated region body
PF: predicated region fallthrough
CT: control target
= control target key end

     0   :  { %s1503_s15 = smov 0   ;;  %s1867_s0 = inlined_call_operand.vmem [shape: bf16[2,4,9,9,4], index: 0, kind: input, shape index: {}]   ;;  %s1868_s1 = inlined_call_operand.vmem [shape: bf16[36,4], index: 1, kind: input, shape index: {}]   ;;  %s1869_s2 = inlined_call_operand.vmem [shape: f32[2,64,4], index: 2, kind: output, shape index: {0}]   ;;  %s1870_s3 = inlined_call_operand.vmem [shape: f32[2,1,4], index: 3, kind: output, shape index: {1}]   ;;  %s1871_s4 = inlined_call_operand.vmem [shape: f32[2,1,4], index: 4, kind: output, shape index: {2}]  }
   0x1 LB: > { %s1294_s16 = sadd.s32 4294967295, %s1468_s15   ;;  %p1298_p0 = scmp.ge.s32.totalorder %s1468_s15, 1  ;;  %s1468_s15 = sphi %s1503_s15, %s15_s15  }
   0x2   : > { %p167_p1 = scmp.lt.s32.totalorder %s1468_s15, 3 }
   0x4   : > { %p168_p2 = pnand %p1298_p0, %p167_p1 }
   0x5   : > { %p199_p3 = scmp.lt.s32.totalorder (!%p168_p2), %s1294_s16, 1  ;;  %s1470_s21 = smov (!%p168_p2), 4  }
   0x6   : > { %171 = sbr.rel (%p168_p2) target bundleno = 484 (0x1e4), region = 28  ;;  %s1471_s22 = smov (!%p168_p2), 12  }
   0x7   : > { %s1472_s23 = smov (!%p168_p2), 8   ;;  %s1473_s24 = smov (!%p168_p2), 16  }
   0x8   : > { %s1474_s25 = smov (!%p168_p2), 20   ;;  %s1475_s26 = smov (!%p168_p2), 24  }
   0x9   : > { %s1476_s27 = smov (!%p168_p2), 28   ;;  %s1477_s28 = smov (!%p168_p2), 32  }
   0xb   : > { %s1875_s16 = smov (!%p199_p3, %s1294_s16), 1  ;;  %vm299_vm0 = vsmask.f32 3328  ;;  %vm300_vm1 = vsmask.f32 7440  ;;  %vm217_vm3 = vcmask 27648  }
   0xc   : > { %s1438_s17 = smul.u32 288, %s1875_s16  ;;  %vm1539_vm2 = vmor %vm299_vm0, %vm300_vm1  ;;  %vm1058_vm4 = vcmask 1041408   ;;  %vm246_vm5 = vcmask 60448   ;;  %vm319_vm6 = vcmask 93248   ;;  %vm467_vm7 = vcmask 126048   ;;  %s1408_s9 = sshll.u32 %s1875_s16, 6 }
   0xd   : > { %vm524_vm8 = vcmask 158848   ;;  %vm594_vm9 = vcmask 191648   ;;  %vm741_vm10 = vcmask 224448   ;;  %vm791_vm11 = vcmask 257248   ;;  %s1822_s12 = scalar_lea.vmem %s1869_s2, %s1408_s9 }
   0xe   : > { %s1517_s20 = scalar_lea.vmem %s1867_s0, %s1438_s17  ;;  %vm855_vm12 = vcmask 290048   ;;  %vm1045_vm13 = vcmask 293888   ;;  %vm1127_vm14 = vcmask 31744   ;;  %s211_s17 = scalar_lea.vmem %s1870_s3, %s1875_s16  ;;  %vm1157_vm15 = vcmask 24576  }
   0xf   : > { %v1311_v0 = vld [vmem:[%s1517_s20 + $0x58] sm:$0xf]  ;;  %v1309_v1 = vld [vmem:[%s1517_s20 + $0x48] sm:$0xf]  ;;  %v1312_v2 = vld [vmem:[%s1517_s20 + $0x60] sm:$0xf] }
  0x10   : > { %258 = vrot.lane.b32.xlu1 %v1311_v0, %s1470_s21  ;;  %243 = vrot.lane.b32.xlu0 %v1309_v1, %s1470_s21  ;;  %v1310_v3 = vld [vmem:[%s1517_s20 + $0x50] sm:$0xf]  ;;  %v1317_v4 = vld [vmem:[%s1517_s20 + $0x8] sm:$0xf] }
  0x11   : > { %v1318_v5 = vld [vmem:[%s1517_s20 + $0xc] sm:$0x1]  ;;  %v324_v6 = vshrl.u32 %v1317_v4, 16  ;;  %v327_v7 = vshll.u32 %v1317_v4, 16  ;;  %v297_v9 = vld [vmem:[%s1517_s20] sm:$0xf] }
  0x12   : > { %v333_v8 = vshll.u32 %v1318_v5, 16  ;;  %v1332_v10 = vld [vmem:[%s1517_s20 + $0x98] sm:$0xf]  ;;  %v1331_v11 = vld [vmem:[%s1517_s20 + $0x90] sm:$0xf]  ;;  %v303_v13 = vshrl.u32 %v297_v9, 16 }
  0x13   : > { %v298_v12 = vld [vmem:[%s1517_s20 + $0x4] sm:$0x1]  ;;  %v306_v14 = vshll.u32 %v297_v9, 16  ;;  %v1321_v15 = vld [vmem:[%s1517_s20 + $0x18] sm:$0xf]  ;;  %v326_v16 = vrot.slane %v324_v6, 4 }
  0x14   : > { %265 = vrot.lane.b32.xlu1 %v1312_v2, %s1470_s21  ;;  %251 = vrot.lane.b32.xlu0 %v1310_v3, %s1470_s21  ;;  %v329_v17 = vrot.slane %v327_v7, 5  ;;  %v335_v18 = vrot.slane %v333_v8, 5  ;;  %v312_v19 = vshll.u32 %v298_v12, 16  ;;  %v1322_v20 = vld [vmem:[%s1517_s20 + $0x1c] sm:$0x1]  ;;  %v305_v21 = vrot.slane %v303_v13, 4 }
  0x15   : > { %v308_v22 = vrot.slane %v306_v14, 5  ;;  %v364_v23 = vshrl.u32 %v1321_v15, 16  ;;  %v367_v24 = vshll.u32 %v1321_v15, 16  ;;  %v1319_v25 = vld [vmem:[%s1517_s20 + $0x10] sm:$0xf]  ;;  %v373_v28 = vshll.u32 %v1322_v20, 16 }
  0x16   : > { %v330_v26 = vor.u32 %v329_v17, %v326_v16  ;;  %v314_v27 = vrot.slane %v312_v19, 5  ;;  %v1320_v29 = vld [vmem:[%s1517_s20 + $0x14] sm:$0x1]  ;;  %v344_v30 = vshrl.u32 %v1319_v25, 16  ;;  %v347_v35 = vshll.u32 %v1319_v25, 16 }
  0x17   : > { %v309_v32 = vor.u32 %v308_v22, %v305_v21  ;;  %v366_v33 = vrot.slane %v364_v23, 4  ;;  %v369_v34 = vrot.slane %v367_v24, 5  ;;  %v353_v38 = vshll.u32 %v1320_v29, 16  ;;  %v1349_v48 = vld [vmem:[%s1517_s20 + $0x98] sm:$0xf] }
  0x18   : > { %472 = vrot.lane.b32.xlu1 %v1332_v10, %s1471_s22  ;;  %464 = vrot.lane.b32.xlu0 %v1331_v11, %s1471_s22  ;;  %v331_v36 = vrot.slane %v330_v26, 4  ;;  %v346_v37 = vrot.slane %v344_v30, 4  ;;  %v375_v41 = vrot.slane %v373_v28, 5  ;;  %v349_v42 = vrot.slane %v347_v35, 5  ;;  %v1347_v51 = vld [vmem:[%s1517_s20 + $0x90] sm:$0xf] }
  0x19   : > { %v310_v39 = vrot.slane %v309_v32, 4  ;;  %v370_v40 = vor.u32 %v369_v34, %v366_v33  ;;  %v355_v47 = vrot.slane %v353_v38, 5  ;;  %v599_v49 = vshrl.u32 %v1349_v48, 16  ;;  %v1353_v56 = vld [vmem:[%s1517_s20 + $0xa8] sm:$0xf] }
  0x1a   : > { %v336_v43 = vsel %vm1539_vm2, %v331_v36, %v335_v18  ;;  %v350_v46 = vor.u32 %v349_v42, %v346_v37  ;;  %v602_v50 = vshll.u32 %v1349_v48, 16  ;;  %v578_v54 = vshrl.u32 %v1347_v51, 16  ;;  %v1334_v58 = vld [vmem:[%s1517_s20 + $0xa8] sm:$0xf]  ;;  %v1333_v59 = vld [vmem:[%s1517_s20 + $0xa0] sm:$0xf] }
  0x1b   : > { %v315_v44 = vsel %vm1539_vm2, %v310_v39, %v314_v27  ;;  %v371_v45 = vrot.slane %v370_v40, 4  ;;  %v581_v55 = vshll.u32 %v1347_v51, 16  ;;  %v1350_v60 = vld [vmem:[%s1517_s20 + $0x9c] sm:$0x1]  ;;  %v601_v61 = vrot.slane %v599_v49, 4 }
  0x1c   : > { %337 = vrot.lane.b32.xlu1 %v336_v43, %s1472_s23  ;;  %316 = vrot.lane.b32.xlu0 %v315_v44, %s1472_s23  ;;  %v351_v53 = vrot.slane %v350_v46, 4  ;;  %v604_v62 = vrot.slane %v602_v50, 5  ;;  %v580_v63 = vrot.slane %v578_v54, 4  ;;  %v1351_v1 = vld [vmem:[%s1517_s20 + $0xa0] sm:$0xf]  ;;  %v639_v3 = vshrl.u32 %v1353_v56, 16 }
  0x1d   : > { %v376_v52 = vsel %vm1539_vm2, %v371_v45, %v375_v41  ;;  %v583_v0 = vrot.slane %v581_v55, 5  ;;  %v1348_v2 = vld [vmem:[%s1517_s20 + $0x94] sm:$0x1]  ;;  %v642_v4 = vshll.u32 %v1353_v56, 16  ;;  %v619_v5 = vshrl.u32 %v1351_v1, 16 }
  0x1e   : > { %v356_v57 = vsel %vm1539_vm2, %v351_v53, %v355_v47  ;;  %v622_v6 = vshll.u32 %v1351_v1, 16  ;;  %v1340_v7 = vld [vmem:[%s1517_s20 + $0xe0] sm:$0xf]  ;;  %v1339_v8 = vld [vmem:[%s1517_s20 + $0xd8] sm:$0xf]  ;;  %v605_v9 = vor.u32 %v604_v62, %v601_v61  ;;  %v608_v10 = vshll.u32 %v1350_v60, 16 }
  0x1f   : > { %v584_v11 = vor.u32 %v583_v0, %v580_v63  ;;  %v587_v12 = vshll.u32 %v1348_v2, 16  ;;  %v1354_v13 = vld [vmem:[%s1517_s20 + $0xac] sm:$0x1]  ;;  %v641_v14 = vrot.slane %v639_v3, 4  ;;  %v644_v15 = vrot.slane %v642_v4, 5 }
  0x20   : > { %377 = vrot.lane.b32.xlu1 %v376_v52, %s1472_s23  ;;  %357 = vrot.lane.b32.xlu0 %v356_v57, %s1472_s23  ;;  %v621_v16 = vrot.slane %v619_v5, 4  ;;  %v624_v17 = vrot.slane %v622_v6, 5  ;;  %v1352_v18 = vld [vmem:[%s1517_s20 + $0xa4] sm:$0x1]  ;;  %v606_v19 = vrot.slane %v605_v9, 4  ;;  %v610_v20 = vrot.slane %v608_v10, 5 }
  0x21   : > { %v589_v21 = vrot.slane %v587_v12, 5  ;;  %v648_v22 = vshll.u32 %v1354_v13, 16  ;;  %v1342_v23 = vld [vmem:[%s1517_s20 + $0xf0] sm:$0xf]  ;;  %v1341_v24 = vld [vmem:[%s1517_s20 + $0xe8] sm:$0xf]  ;;  %v645_v26 = vor.u32 %v644_v15, %v641_v14 }
  0x22   : > { %v585_v25 = vrot.slane %v584_v11, 4  ;;  %v625_v27 = vor.u32 %v624_v17, %v621_v16  ;;  %v628_v28 = vshll.u32 %v1352_v18, 16  ;;  %v611_v29 = vsel %vm1539_vm2, %v606_v19, %v610_v20  ;;  %v1381_v38 = vld [vmem:[%s1517_s20 + $0x10] sm:$0xf]  ;;  %v1379_v39 = vld [vmem:[%s1517_s20 + $0x8] sm:$0xf] }
  0x23   : > { %v650_v30 = vrot.slane %v648_v22, 5  ;;  %v646_v33 = vrot.slane %v645_v26, 4  ;;  %v860_v40 = vshrl.u32 %v1381_v38, 16  ;;  %v863_v41 = vshll.u32 %v1381_v38, 16  ;;  %v1364_v42 = vld [vmem:[%s1517_s20 + $0x10] sm:$0xf] }
  0x24   : > { %486 = vrot.lane.b32.xlu1 %v1334_v58, %s1471_s22  ;;  %479 = vrot.lane.b32.xlu0 %v1333_v59, %s1471_s22  ;;  %v590_v32 = vsel %vm1539_vm2, %v585_v25, %v589_v21  ;;  %v626_v34 = vrot.slane %v625_v27, 4  ;;  %v630_v35 = vrot.slane %v628_v28, 5  ;;  %v1363_v43 = vld [vmem:[%s1517_s20 + $0x8] sm:$0xf]  ;;  %v839_v44 = vshrl.u32 %v1379_v39, 16 }
  0x25   : > { %v651_v36 = vsel %vm1539_vm2, %v646_v33, %v650_v30  ;;  %v842_v45 = vshll.u32 %v1379_v39, 16  ;;  %v1366_v46 = vld [vmem:[%s1517_s20 + $0x20] sm:$0xf]  ;;  %v1365_v47 = vld [vmem:[%s1517_s20 + $0x18] sm:$0xf]  ;;  %v862_v48 = vrot.slane %v860_v40, 4 }
  0x26   : > { %v631_v37 = vsel %vm1539_vm2, %v626_v34, %v630_v35  ;;  %v865_v49 = vrot.slane %v863_v41, 5  ;;  %v1385_v50 = vld [vmem:[%s1517_s20 + $0x20] sm:$0xf]  ;;  %v1383_v51 = vld [vmem:[%s1517_s20 + $0x18] sm:$0xf]  ;;  %v841_v54 = vrot.slane %v839_v44, 4 }
  0x27   : > { %v1382_v52 = vld [vmem:[%s1517_s20 + $0x14] sm:$0x1]  ;;  %v1380_v53 = vld [vmem:[%s1517_s20 + $0xc] sm:$0x1]  ;;  %v844_v55 = vrot.slane %v842_v45, 5  ;;  %v900_v56 = vshrl.u32 %v1385_v50, 16 }
  0x28   : > { %529 = vrot.lane.b32.xlu1 %v1340_v7, %s1473_s24  ;;  %521 = vrot.lane.b32.xlu0 %v1339_v8, %s1473_s24  ;;  %v903_v57 = vshll.u32 %v1385_v50, 16  ;;  %v880_v58 = vshrl.u32 %v1383_v51, 16  ;;  %v883_v59 = vshll.u32 %v1383_v51, 16  ;;  %v866_v60 = vor.u32 %v865_v49, %v862_v48  ;;  %v1372_v63 = vld [vmem:[%s1517_s20 + $0x58] sm:$0xf] }
  0x29   : > { %v869_v61 = vshll.u32 %v1382_v52, 16  ;;  %v848_v62 = vshll.u32 %v1380_v53, 16  ;;  %v1371_v0 = vld [vmem:[%s1517_s20 + $0x50] sm:$0xf]  ;;  %v845_v1 = vor.u32 %v844_v55, %v841_v54  ;;  %v1386_v2 = vld [vmem:[%s1517_s20 + $0x24] sm:$0x1] }
  0x2a   : > { %v1384_v3 = vld [vmem:[%s1517_s20 + $0x1c] sm:$0x1]  ;;  %v1374_v4 = vld [vmem:[%s1517_s20 + $0x68] sm:$0xf]  ;;  %v902_v5 = vrot.slane %v900_v56, 4  ;;  %v905_v6 = vrot.slane %v903_v57, 5 }
  0x2b   : > { %v882_v7 = vrot.slane %v880_v58, 4  ;;  %v885_v8 = vrot.slane %v883_v59, 5  ;;  %v1373_v9 = vld [vmem:[%s1517_s20 + $0x60] sm:$0xf]  ;;  %v867_v10 = vrot.slane %v866_v60, 4  ;;  %v871_v11 = vrot.slane %v869_v61, 5 }
  0x2c   : > { %543 = vrot.lane.b32.xlu1 %v1342_v23, %s1473_s24  ;;  %536 = vrot.lane.b32.xlu0 %v1341_v24, %s1473_s24  ;;  %v850_v12 = vrot.slane %v848_v62, 5  ;;  %v909_v13 = vshll.u32 %v1386_v2, 16  ;;  %v846_v14 = vrot.slane %v845_v1, 4  ;;  %v889_v15 = vshll.u32 %v1384_v3, 16  ;;  %v1325_v16 = vld [vmem:[%s1517_s20 + $0x28] sm:$0xf] }
  0x2d   : > { %v1323_v17 = vld [vmem:[%s1517_s20 + $0x20] sm:$0xf]  ;;  %v906_v18 = vor.u32 %v905_v6, %v902_v5  ;;  %v886_v19 = vor.u32 %v885_v8, %v882_v7  ;;  %v404_v20 = vshrl.u32 %v1325_v16, 16  ;;  %v407_v21 = vshll.u32 %v1325_v16, 16  ;;  %v1303_v28 = vld [vmem:[%s1517_s20 + $0x10] sm:$0xf] }
  0x2e   : > { %v384_v22 = vshrl.u32 %v1323_v17, 16  ;;  %v387_v23 = vshll.u32 %v1323_v17, 16  ;;  %v872_v24 = vsel %vm1539_vm2, %v867_v10, %v871_v11  ;;  %v851_v25 = vsel %vm1539_vm2, %v846_v14, %v850_v12  ;;  %v1329_v30 = vld [vmem:[%s1517_s20 + $0x38] sm:$0xf]  ;;  %224 = vst.msk [vmem:[#allocation2 + $0x8] sm:$0xf] %vm217_vm3, %v1303_v28 }
  0x2f   : > { %v911_v26 = vrot.slane %v909_v13, 5  ;;  %v891_v27 = vrot.slane %v889_v15, 5  ;;  %v216_v33 = vld [vmem:[%s1517_s20] sm:$0xf]  ;;  %v1314_v34 = vld [vmem:[%s1517_s20 + $0x70] sm:$0xf] }
  0x30   : > { %612 = vrot.lane.b32.xlu1 %v611_v29, %s1474_s25  ;;  %591 = vrot.lane.b32.xlu0 %v590_v32, %s1474_s25  ;;  %v1326_v29 = vld [vmem:[%s1517_s20 + $0x2c] sm:$0x1]  ;;  %v1327_v32 = vld [vmem:[%s1517_s20 + $0x30] sm:$0xf]  ;;  %v907_v35 = vrot.slane %v906_v18, 4  ;;  %v406_v39 = vrot.slane %v404_v20, 4 }
  0x31   : > { %218 = vst.msk [vmem:[#allocation2] sm:$0xf] %vm217_vm3, %v216_v33  ;;  %v1304_v38 = vld [vmem:[%s1517_s20 + $0x18] sm:$0xf]  ;;  %v409_v40 = vrot.slane %v407_v21, 5  ;;  %v386_v41 = vrot.slane %v384_v22, 4 }
  0x32   : > { %227 = vst.msk [vmem:[#allocation2 + $0xc] sm:$0xf] %vm217_vm3, %v1304_v38  ;;  %v1313_v44 = vld [vmem:[%s1517_s20 + $0x68] sm:$0xf]  ;;  %v444_v45 = vshrl.u32 %v1329_v30, 16  ;;  %v427_v48 = vshll.u32 %v1327_v32, 16  ;;  %v912_v49 = vsel %vm1539_vm2, %v907_v35, %v911_v26 }
  0x33   : > { %v413_v50 = vshll.u32 %v1326_v29, 16  ;;  %v410_v53 = vor.u32 %v409_v40, %v406_v39  ;;  %v1330_v55 = vld [vmem:[%s1517_s20 + $0x3c] sm:$0x1]  ;;  %v1328_v60 = vld [vmem:[%s1517_s20 + $0x34] sm:$0x1]  ;;  %v1456_v11 = vld [vmem:[%s1868_s1 + $0x8] sm:$0xff]  }
  0x34   : > { %652 = vrot.lane.b32.xlu1 %v651_v36, %s1474_s25  ;;  %632 = vrot.lane.b32.xlu0 %v631_v37, %s1474_s25  ;;  %v887_v36 = vrot.slane %v886_v19, 4  ;;  %v1324_v37 = vld [vmem:[%s1517_s20 + $0x24] sm:$0x1]  ;;  %v446_v56 = vrot.slane %v444_v45, 4  ;;  %v429_v59 = vrot.slane %v427_v48, 5  ;;  %v433_v8 = vshll.u32 %v1328_v60, 16 }
  0x35   : > { %v393_v51 = vshll.u32 %v1324_v37, 16  ;;  %v1316_v61 = vld [vmem:[%s1517_s20 + $0x80] sm:$0xf]  ;;  %v1315_v62 = vld [vmem:[%s1517_s20 + $0x78] sm:$0xf]  ;;  %v411_v2 = vrot.slane %v410_v53, 4 }
  0x36   : > { %v892_v52 = vsel %vm1539_vm2, %v887_v36, %v891_v27  ;;  %v1306_v1 = vld [vmem:[%s1517_s20 + $0x28] sm:$0xf]  ;;  %v1305_v5 = vld [vmem:[%s1517_s20 + $0x20] sm:$0xf]  ;;  %v1308_v10 = vld [vmem:[%s1517_s20 + $0x38] sm:$0xf] }
  0x37   : > { %233 = vst.msk [vmem:[#allocation2 + $0x14] sm:$0xf] %vm217_vm3, %v1306_v1  ;;  %230 = vst.msk [vmem:[#allocation2 + $0x10] sm:$0xf] %vm217_vm3, %v1305_v5  ;;  %v1307_v12 = vld [vmem:[%s1517_s20 + $0x30] sm:$0xf] }
  0x38   : > { %745 = vrot.lane.b32.xlu1 %v1364_v42, %s1475_s26  ;;  %738 = vrot.lane.b32.xlu0 %v1363_v43, %s1475_s26  ;;  %v389_v42 = vrot.slane %v387_v23, 5  ;;  %v1302_v43 = vld [vmem:[%s1517_s20 + $0x8] sm:$0xf]  ;;  %239 = vst.msk [vmem:[#allocation2 + $0x1c] sm:$0xf] %vm217_vm3, %v1308_v10  ;;  %v435_v19 = vrot.slane %v433_v8, 5 }
  0x39   : > { %221 = vst.msk [vmem:[#allocation2 + $0x4] sm:$0xf] %vm217_vm3, %v1302_v43  ;;  %236 = vst.msk [vmem:[#allocation2 + $0x18] sm:$0xf] %vm217_vm3, %v1307_v12  ;;  %v1458_v20 = vld [vmem:[%s1868_s1] sm:$0xff]  }
  0x3a   : > { %v390_v54 = vor.u32 %v389_v42, %v386_v41  ;;  %v1357_v23 = vld [vmem:[%s1517_s20 + $0xb8] sm:$0xf]  ;;  %v1335_v29 = vld [vmem:[%s1517_s20 + $0xb0] sm:$0xf]  ;;  %v1359_v33 = vld [vmem:[%s1517_s20 + $0xc0] sm:$0xf] }
  0x3b   : > { %v679_v26 = vshrl.u32 %v1357_v23, 16  ;;  %v682_v27 = vshll.u32 %v1357_v23, 16  ;;  %v1337_v35 = vld [vmem:[%s1517_s20 + $0xc0] sm:$0xf]  ;;  %v1358_v36 = vld [vmem:[%s1517_s20 + $0xbc] sm:$0x1] }
  0x3c   : > { %757 = vrot.lane.b32.xlu1 %v1366_v46, %s1475_s26  ;;  %751 = vrot.lane.b32.xlu0 %v1365_v47, %s1475_s26  ;;  %v447_v46 = vshll.u32 %v1329_v30, 16  ;;  %v424_v47 = vshrl.u32 %v1327_v32, 16  ;;  %v391_v3 = vrot.slane %v390_v54, 4  ;;  %v1361_v32 = vld [vmem:[%s1517_s20 + $0xc8] sm:$0xf]  ;;  %v702_v45 = vshll.u32 %v1359_v33, 16 }
  0x3d   : > { %v681_v37 = vrot.slane %v679_v26, 4  ;;  %v684_v38 = vrot.slane %v682_v27, 5  ;;  %v719_v40 = vshrl.u32 %v1361_v32, 16  ;;  %v1356_v41 = vld [vmem:[%s1517_s20 + $0xb4] sm:$0x1]  ;;  %v722_v43 = vshll.u32 %v1361_v32, 16 }
  0x3e   : > { %v449_v57 = vrot.slane %v447_v46, 5  ;;  %v426_v58 = vrot.slane %v424_v47, 4  ;;  %v1344_v46 = vld [vmem:[%s1517_s20 + $0x100] sm:$0xf]  ;;  %v1343_v47 = vld [vmem:[%s1517_s20 + $0xf8] sm:$0xf] }
  0x3f   : > { %v685_v48 = vor.u32 %v684_v38, %v681_v37  ;;  %v1362_v53 = vld [vmem:[%s1517_s20 + $0xcc] sm:$0x1]  ;;  %v724_v54 = vrot.slane %v722_v43, 5  ;;  %v1389_v12 = vld [vmem:[%s1517_s20 + $0x30] sm:$0xf] }
  0x40   : > { %795 = vrot.lane.b32.xlu1 %v1372_v63, %s1476_s27  ;;  %788 = vrot.lane.b32.xlu0 %v1371_v0, %s1476_s27  ;;  %v415_v63 = vrot.slane %v413_v50, 5  ;;  %v395_v0 = vrot.slane %v393_v51, 5  ;;  %v450_v6 = vor.u32 %v449_v57, %v446_v56  ;;  %v430_v7 = vor.u32 %v429_v59, %v426_v58  ;;  %v1360_v57 = vld [vmem:[%s1517_s20 + $0xc4] sm:$0x1]  ;;  %v1369_v23 = vld [vmem:[%s1517_s20 + $0x38] sm:$0xf] }
  0x41   : > { %v668_v50 = vshll.u32 %v1356_v41, 16  ;;  %v721_v51 = vrot.slane %v719_v40, 4  ;;  %v704_v56 = vrot.slane %v702_v45, 5  ;;  %v686_v58 = vrot.slane %v685_v48, 4  ;;  %v1394_v41 = vld [vmem:[%s1517_s20 + $0x44] sm:$0x1] }
  0x42   : > { %v416_v14 = vsel %vm1539_vm2, %v411_v2, %v415_v63  ;;  %v396_v16 = vsel %vm1539_vm2, %v391_v3, %v395_v0  ;;  %v451_v17 = vrot.slane %v450_v6, 4  ;;  %v431_v18 = vrot.slane %v430_v7, 4  ;;  %v1345_v63 = vld [vmem:[%s1517_s20 + $0x108] sm:$0xf] }
  0x43   : > { %v670_v60 = vrot.slane %v668_v50, 5  ;;  %v725_v1 = vor.u32 %v724_v54, %v721_v51  ;;  %v708_v3 = vshll.u32 %v1360_v57, 16  ;;  %v989_v50 = vshll.u32 %v1394_v41, 16  ;;  %v1378_v51 = vld [vmem:[%s1517_s20 + $0x88] sm:$0xf] }
  0x44   : > { %807 = vrot.lane.b32.xlu1 %v1374_v4, %s1476_s27  ;;  %801 = vrot.lane.b32.xlu0 %v1373_v9, %s1476_s27  ;;  %v453_v4 = vshll.u32 %v1330_v55, 16  ;;  %v1455_v9 = vld [vmem:[%s1868_s1 + $0x10] ss:$0 sps:$4 sm:$0x33]   ;;  %v436_v22 = vsel %vm1539_vm2, %v431_v18, %v435_v19  ;;  %v1367_v19 = vld [vmem:[%s1517_s20 + $0x28] sm:$0xf] }
  0x45   : > { %1436 = vmatprep.subr.msk.bf16.mxu0 %vm1058_vm4, %v1455_v9  ;;  %v1060_v13 = vsel %vm1058_vm4, %v1455_v9, 0  ;;  %1437 = vmatprep.subr.msk.bf16.mxu1 %vm1058_vm4, %v1455_v9  ;;  %v726_v7 = vrot.slane %v725_v1, 4  ;;  %v710_v9 = vrot.slane %v708_v3, 5  ;;  %v1368_v18 = vld [vmem:[%s1517_s20 + $0x30] sm:$0xf] }
  0x46   : > { %v455_v15 = vrot.slane %v453_v4, 5  ;;  %1417 = vmatpush3.bf16.msra.mxu0 %v1060_v13  ;;  %1433 = vmatpush3.bf16.msra.mxu1 %v1060_v13  ;;  %v1387_v13 = vld [vmem:[%s1517_s20 + $0x28] sm:$0xf] }
  0x47   : > { %1418 = vmatprep.subr.bf16.mxu0 %v1456_v11  ;;  %1431 = vmatprep.subr.bf16.mxu1 %v1456_v11 }
  0x48   : > { %873 = vrot.lane.b32.xlu1 %v872_v24, %s1477_s28  ;;  %852 = vrot.lane.b32.xlu0 %v851_v25, %s1477_s28  ;;  %v456_v21 = vsel %vm1539_vm2, %v451_v17, %v455_v15  ;;  %v1355_v24 = vld [vmem:[%s1517_s20 + $0xb0] sm:$0xf]  ;;  %v1336_v25 = vld [vmem:[%s1517_s20 + $0xb8] sm:$0xf]  ;;  %v943_v15 = vshll.u32 %v1389_v12, 16  ;;  %v923_v17 = vshll.u32 %v1387_v13, 16 }
  0x49   : > { %v659_v28 = vshrl.u32 %v1355_v24, 16  ;;  %v662_v30 = vshll.u32 %v1355_v24, 16  ;;  %v1390_v24 = vld [vmem:[%s1517_s20 + $0x34] sm:$0x1] }
  0x4a   : > { %1419 = vmatpush3.bf16.msra.mxu0 %v1456_v11  ;;  %1434 = vmatpush3.bf16.msra.mxu1 %v1456_v11  ;;  %v945_v26 = vrot.slane %v943_v15, 5  ;;  %v949_v38 = vshll.u32 %v1390_v24, 16 }
  0x4b   : > { %1420 = vmatprep.subr.bf16.mxu0 %v1458_v20  ;;  %1432 = vmatprep.subr.bf16.mxu1 %v1458_v20  ;;  %v661_v39 = vrot.slane %v659_v28, 4  ;;  %v664_v42 = vrot.slane %v662_v30, 5  ;;  %v925_v28 = vrot.slane %v923_v17, 5 }
  0x4c   : > { %279 = vrot.lane.b32.xlu1 %v1314_v34, %s1470_s21  ;;  %272 = vrot.lane.b32.xlu0 %v1313_v44, %s1470_s21  ;;  %v1338_v34 = vld [vmem:[%s1517_s20 + $0xc8] sm:$0xf]  ;;  %v699_v44 = vshrl.u32 %v1359_v33, 16  ;;  %v951_v48 = vrot.slane %v949_v38, 5 }
  0x4e   : > { %1421 = vmatpush3.bf16.msra.mxu0 %v1458_v20  ;;  %1435 = vmatpush3.bf16.msra.mxu1 %v1458_v20  ;;  %v701_v55 = vrot.slane %v699_v44, 4  ;;  %v1393_v20 = vld [vmem:[%s1517_s20 + $0x40] sm:$0xf] }
  0x4f   : > { %v980_v30 = vshrl.u32 %v1393_v20, 16  ;;  %v983_v32 = vshll.u32 %v1393_v20, 16 }
  0x50   : > { %913 = vrot.lane.b32.xlu1 %v912_v49, %s1477_s28  ;;  %893 = vrot.lane.b32.xlu0 %v892_v52, %s1477_s28  ;;  %v688_v49 = vshll.u32 %v1358_v36, 16  ;;  %v665_v52 = vor.u32 %v664_v42, %v661_v39  ;;  %v705_v2 = vor.u32 %v704_v56, %v701_v55  ;;  %v1375_v36 = vld [vmem:[%s1517_s20 + $0x70] sm:$0xf] }
  0x51   : > { %v982_v42 = vrot.slane %v980_v30, 4  ;;  %v985_v43 = vrot.slane %v983_v32, 5 }
  0x52   : > { %v690_v59 = vrot.slane %v688_v49, 5  ;;  %v666_v0 = vrot.slane %v665_v52, 4  ;;  %v706_v8 = vrot.slane %v705_v2, 4  ;;  %v1377_v52 = vld [vmem:[%s1517_s20 + $0x80] sm:$0xf] }
  0x53   : > { %v986_v54 = vor.u32 %v985_v43, %v982_v42 }
  0x54   : > { %293 = vrot.lane.b32.xlu1 %v1316_v61, %s1470_s21  ;;  %286 = vrot.lane.b32.xlu0 %v1315_v62, %s1470_s21  ;;  %v728_v61 = vshll.u32 %v1362_v53, 16  ;;  %v1346_v62 = vld [vmem:[%s1517_s20 + $0x110] sm:$0xf]  ;;  %v691_v4 = vsel %vm1539_vm2, %v686_v58, %v690_v59  ;;  %v671_v6 = vsel %vm1539_vm2, %v666_v0, %v670_v60  ;;  %v711_v11 = vsel %vm1539_vm2, %v706_v8, %v710_v9 }
  0x55   : > { %v991_v60 = vrot.slane %v989_v50, 5 }
  0x56   : > { %v730_v5 = vrot.slane %v728_v61, 5 }
  0x58   : > { %417 = vrot.lane.b32.xlu1 %v416_v14, %s1472_s23  ;;  %397 = vrot.lane.b32.xlu0 %v396_v16, %s1472_s23  ;;  %v731_v10 = vsel %vm1539_vm2, %v726_v7, %v730_v5  ;;  %v940_v14 = vshrl.u32 %v1389_v12, 16  ;;  %v920_v16 = vshrl.u32 %v1387_v13, 16 }
  0x5a   : > { %v922_v27 = vrot.slane %v920_v16, 4 }
  0x5c   : > { %457 = vrot.lane.b32.xlu1 %v456_v21, %s1472_s23  ;;  %437 = vrot.lane.b32.xlu0 %v436_v22, %s1472_s23  ;;  %v1391_v21 = vld [vmem:[%s1517_s20 + $0x38] sm:$0xf]  ;;  %v1370_v22 = vld [vmem:[%s1517_s20 + $0x40] sm:$0xf]  ;;  %v926_v39 = vor.u32 %v925_v28, %v922_v27 }
  0x5d   : > { %v960_v33 = vshrl.u32 %v1391_v21, 16 }
  0x5e   : > { %v927_v53 = vrot.slane %v926_v39, 4 }
  0x5f   : > { %v962_v44 = vrot.slane %v960_v33, 4 }
  0x60   : > { %500 = vrot.lane.b32.xlu1 %v1336_v25, %s1471_s22  ;;  %493 = vrot.lane.b32.xlu0 %v1335_v29, %s1471_s22  ;;  %v942_v25 = vrot.slane %v940_v14, 4  ;;  %v1388_v29 = vld [vmem:[%s1517_s20 + $0x2c] sm:$0x1] }
  0x61   : > { %v929_v40 = vshll.u32 %v1388_v29, 16 }
  0x62   : > { %v946_v37 = vor.u32 %v945_v26, %v942_v25 }
  0x63   : > { %v931_v49 = vrot.slane %v929_v40, 5 }
  0x64   : > { %514 = vrot.lane.b32.xlu1 %v1338_v34, %s1471_s22  ;;  %507 = vrot.lane.b32.xlu0 %v1337_v35, %s1471_s22  ;;  %v963_v34 = vshll.u32 %v1391_v21, 16  ;;  %v1376_v35 = vld [vmem:[%s1517_s20 + $0x78] sm:$0xf] }
  0x65   : > { %v932_v61 = vsel %vm1539_vm2, %v927_v53, %v931_v49 }
  0x66   : > { %v965_v45 = vrot.slane %v963_v34, 5 }
  0x68   : > { %557 = vrot.lane.b32.xlu1 %v1344_v46, %s1473_s24  ;;  %550 = vrot.lane.b32.xlu0 %v1343_v47, %s1473_s24  ;;  %v1392_v46 = vld [vmem:[%s1517_s20 + $0x3c] sm:$0x1]  ;;  %v947_v47 = vrot.slane %v946_v37, 4  ;;  %v966_v55 = vor.u32 %v965_v45, %v962_v44  ;;  %s214_s20 = scalar_lea.vmem %s1871_s4, %s1875_s16 }
  0x69   : > { %v969_v56 = vshll.u32 %v1392_v46, 16 }
  0x6a   : > { %v952_v59 = vsel %vm1539_vm2, %v947_v47, %v951_v48 }
  0x6b   : > { %v971_v0 = vrot.slane %v969_v56, 5 }
  0x6c   : > { %571 = vrot.lane.b32.xlu1 %v1346_v62, %s1473_s24  ;;  %564 = vrot.lane.b32.xlu0 %v1345_v63, %s1473_s24  ;;  %v987_v62 = vrot.slane %v986_v54, 4  ;;  %v967_v63 = vrot.slane %v966_v55, 4 }
  0x6e   : > { %v992_v3 = vsel %vm1539_vm2, %v987_v62, %v991_v60 }
  0x70   : > { %692 = vrot.lane.b32.xlu1 %v691_v4, %s1474_s25  ;;  %672 = vrot.lane.b32.xlu0 %v671_v6, %s1474_s25  ;;  %v972_v4 = vsel %vm1539_vm2, %v967_v63, %v971_v0 }
  0x74   : > { %732 = vrot.lane.b32.xlu1 %v731_v10, %s1474_s25  ;;  %712 = vrot.lane.b32.xlu0 %v711_v11, %s1474_s25 }
  0x78   : > { %769 = vrot.lane.b32.xlu1 %v1368_v18, %s1475_s26  ;;  %763 = vrot.lane.b32.xlu0 %v1367_v19, %s1475_s26 }
  0x7c   : > { %782 = vrot.lane.b32.xlu1 %v1370_v22, %s1475_s26  ;;  %775 = vrot.lane.b32.xlu0 %v1369_v23, %s1475_s26 }
  0x80   : > { %819 = vrot.lane.b32.xlu1 %v1376_v35, %s1476_s27  ;;  %813 = vrot.lane.b32.xlu0 %v1375_v36, %s1476_s27 }
  0x82   : > { %v259_v57 = vpop.permute.xlu1 %258  ;;  %v244_v58 = vpop.permute.xlu0 %243 }
  0x83   : > { %261 = vst.msk [vmem:[#allocation2 + $0x8] sm:$0xf] %vm246_vm5, %v259_v57  ;;  %247 = vst.msk [vmem:[#allocation2] sm:$0xf] %vm246_vm5, %v244_v58 }
  0x84   : > { %832 = vrot.lane.b32.xlu1 %v1378_v51, %s1476_s27  ;;  %825 = vrot.lane.b32.xlu0 %v1377_v52, %s1476_s27 }
  0x86   : > { %v266_v1 = vpop.permute.xlu1 %265  ;;  %v252_v2 = vpop.permute.xlu0 %251 }
  0x87   : > { %268 = vst.msk [vmem:[#allocation2 + $0xc] sm:$0xf] %vm246_vm5, %v266_v1  ;;  %254 = vst.msk [vmem:[#allocation2 + $0x4] sm:$0xf] %vm246_vm5, %v252_v2 }
  0x88   : > { %953 = vrot.lane.b32.xlu1 %v952_v59, %s1477_s28  ;;  %933 = vrot.lane.b32.xlu0 %v932_v61, %s1477_s28 }
  0x8a   : > { %v473_v5 = vpop.permute.xlu1 %472  ;;  %v465_v6 = vpop.permute.xlu0 %464 }
  0x8c   : > { %993 = vrot.lane.b32.xlu1 %v992_v3, %s1477_s28  ;;  %973 = vrot.lane.b32.xlu0 %v972_v4, %s1477_s28 }
  0x8e   : > { %v338_v7 = vpop.permute.xlu1 %337  ;;  %v317_v8 = vpop.permute.xlu0 %316 }
  0x8f   : > { %340 = vst.msk [vmem:[#allocation2 + $0x4] sm:$0xf] %vm319_vm6, %v338_v7  ;;  %320 = vst.msk [vmem:[#allocation2] sm:$0xf] %vm319_vm6, %v317_v8 }
  0x90   : > { %468 = vst.msk [vmem:[#allocation2] sm:$0xf] %vm467_vm7, %v465_v6  ;;  %475 = vst.msk [vmem:[#allocation2 + $0x4] sm:$0xf] %vm467_vm7, %v473_v5 }
  0x92   : > { %v378_v31 = vpop.permute.xlu1 %377  ;;  %v358_v9 = vpop.permute.xlu0 %357 }
  0x93   : > { %380 = vst.msk [vmem:[#allocation2 + $0xc] sm:$0xf] %vm319_vm6, %v378_v31  ;;  %360 = vst.msk [vmem:[#allocation2 + $0x8] sm:$0xf] %vm319_vm6, %v358_v9 }
  0x96   : > { %v487_v10 = vpop.permute.xlu1 %486  ;;  %v480_v11 = vpop.permute.xlu0 %479 }
  0x97   : > { %489 = vst.msk [vmem:[#allocation2 + $0xc] sm:$0xf] %vm467_vm7, %v487_v10  ;;  %482 = vst.msk [vmem:[#allocation2 + $0x8] sm:$0xf] %vm467_vm7, %v480_v11 }
  0x9a   : > { %v530_v12 = vpop.permute.xlu1 %529  ;;  %v522_v13 = vpop.permute.xlu0 %521 }
  0x9b   : > { %532 = vst.msk [vmem:[#allocation2 + $0x4] sm:$0xf] %vm524_vm8, %v530_v12  ;;  %525 = vst.msk [vmem:[#allocation2] sm:$0xf] %vm524_vm8, %v522_v13 }
  0x9e   : > { %v544_v14 = vpop.permute.xlu1 %543  ;;  %v537_v15 = vpop.permute.xlu0 %536 }
  0x9f   : > { %546 = vst.msk [vmem:[#allocation2 + $0xc] sm:$0xf] %vm524_vm8, %v544_v14  ;;  %539 = vst.msk [vmem:[#allocation2 + $0x8] sm:$0xf] %vm524_vm8, %v537_v15 }
  0xa2   : > { %v613_v16 = vpop.permute.xlu1 %612  ;;  %v592_v17 = vpop.permute.xlu0 %591 }
  0xa3   : > { %615 = vst.msk [vmem:[#allocation2 + $0x4] sm:$0xf] %vm594_vm9, %v613_v16  ;;  %595 = vst.msk [vmem:[#allocation2] sm:$0xf] %vm594_vm9, %v592_v17 }
  0xa6   : > { %v653_v18 = vpop.permute.xlu1 %652  ;;  %v633_v19 = vpop.permute.xlu0 %632 }
  0xa7   : > { %655 = vst.msk [vmem:[#allocation2 + $0xc] sm:$0xf] %vm594_vm9, %v653_v18  ;;  %635 = vst.msk [vmem:[#allocation2 + $0x8] sm:$0xf] %vm594_vm9, %v633_v19 }
  0xaa   : > { %v746_v20 = vpop.permute.xlu1 %745  ;;  %v739_v21 = vpop.permute.xlu0 %738 }
  0xab   : > { %748 = vst.msk [vmem:[#allocation2 + $0x4] sm:$0xf] %vm741_vm10, %v746_v20  ;;  %742 = vst.msk [vmem:[#allocation2] sm:$0xf] %vm741_vm10, %v739_v21 }
  0xae   : > { %v758_v22 = vpop.permute.xlu1 %757  ;;  %v752_v23 = vpop.permute.xlu0 %751 }
  0xaf   : > { %760 = vst.msk [vmem:[#allocation2 + $0xc] sm:$0xf] %vm741_vm10, %v758_v22  ;;  %754 = vst.msk [vmem:[#allocation2 + $0x8] sm:$0xf] %vm741_vm10, %v752_v23 }
  0xb2   : > { %v796_v24 = vpop.permute.xlu1 %795  ;;  %v789_v25 = vpop.permute.xlu0 %788 }
  0xb3   : > { %798 = vst.msk [vmem:[#allocation2 + $0x4] sm:$0xf] %vm791_vm11, %v796_v24  ;;  %792 = vst.msk [vmem:[#allocation2] sm:$0xf] %vm791_vm11, %v789_v25 }
  0xb6   : > { %v808_v26 = vpop.permute.xlu1 %807  ;;  %v802_v27 = vpop.permute.xlu0 %801 }
  0xb7   : > { %810 = vst.msk [vmem:[#allocation2 + $0xc] sm:$0xf] %vm791_vm11, %v808_v26  ;;  %804 = vst.msk [vmem:[#allocation2 + $0x8] sm:$0xf] %vm791_vm11, %v802_v27 }
  0xba   : > { %v874_v28 = vpop.permute.xlu1 %873  ;;  %v853_v29 = vpop.permute.xlu0 %852 }
  0xbb   : > { %876 = vst.msk [vmem:[#allocation2 + $0x4] sm:$0xf] %vm855_vm12, %v874_v28  ;;  %856 = vst.msk [vmem:[#allocation2] sm:$0xf] %vm855_vm12, %v853_v29 }
  0xbe   : > { %v280_v30 = vpop.permute.xlu1 %279  ;;  %v273_v32 = vpop.permute.xlu0 %272 }
  0xbf   : > { %282 = vst.msk [vmem:[#allocation2 + $0x14] sm:$0xf] %vm246_vm5, %v280_v30  ;;  %275 = vst.msk [vmem:[#allocation2 + $0x10] sm:$0xf] %vm246_vm5, %v273_v32 }
  0xc2   : > { %v914_v33 = vpop.permute.xlu1 %913  ;;  %v894_v34 = vpop.permute.xlu0 %893  ;;  %v1457_v35 = vld [vmem:[#allocation2] sm:$0xff]  }
  0xc3   : > { %916 = vst.msk [vmem:[#allocation2 + $0xc] sm:$0xf] %vm855_vm12, %v914_v33  ;;  %896 = vst.msk [vmem:[#allocation2 + $0x8] sm:$0xf] %vm855_vm12, %v894_v34  ;;  %1422 = vmatprep.mubr.msk.bf16.mxu0 %vm1045_vm13, %v1457_v35 }
  0xc6   : > { %v294_v36 = vpop.permute.xlu1 %293  ;;  %v287_v37 = vpop.permute.xlu0 %286 }
  0xc7   : > { %296 = vst.msk [vmem:[#allocation2 + $0x1c] sm:$0xf] %vm246_vm5, %v294_v36  ;;  %289 = vst.msk [vmem:[#allocation2 + $0x18] sm:$0xf] %vm246_vm5, %v287_v37 }
  0xca   : > { %v418_v38 = vpop.permute.xlu1 %417  ;;  %v398_v39 = vpop.permute.xlu0 %397  ;;  %v1459_v40 = vld [vmem:[#allocation2 + $0x8] sm:$0xff]  }
  0xcb   : > { %420 = vst.msk [vmem:[#allocation2 + $0x14] sm:$0xf] %vm319_vm6, %v418_v38  ;;  %400 = vst.msk [vmem:[#allocation2 + $0x10] sm:$0xf] %vm319_vm6, %v398_v39  ;;  %1423 = vmatmul.mubr.msk.bf16.vlgmr.msra.gmra.mxu0 %vm1045_vm13, %v1459_v40 }
  0xce   : > { %v458_v41 = vpop.permute.xlu1 %457  ;;  %v438_v42 = vpop.permute.xlu0 %437 }
  0xcf   : > { %460 = vst.msk [vmem:[#allocation2 + $0x1c] sm:$0xf] %vm319_vm6, %v458_v41  ;;  %440 = vst.msk [vmem:[#allocation2 + $0x18] sm:$0xf] %vm319_vm6, %v438_v42 }
  0xd2   : > { %v501_v43 = vpop.permute.xlu1 %500  ;;  %v494_v44 = vpop.permute.xlu0 %493 }
  0xd3   : > { %503 = vst.msk [vmem:[#allocation2 + $0x14] sm:$0xf] %vm467_vm7, %v501_v43  ;;  %496 = vst.msk [vmem:[#allocation2 + $0x10] sm:$0xf] %vm467_vm7, %v494_v44 }
  0xd6   : > { %v515_v45 = vpop.permute.xlu1 %514  ;;  %v508_v46 = vpop.permute.xlu0 %507 }
  0xd7   : > { %517 = vst.msk [vmem:[#allocation2 + $0x1c] sm:$0xf] %vm467_vm7, %v515_v45  ;;  %510 = vst.msk [vmem:[#allocation2 + $0x18] sm:$0xf] %vm467_vm7, %v508_v46 }
  0xda   : > { %v558_v47 = vpop.permute.xlu1 %557  ;;  %v551_v48 = vpop.permute.xlu0 %550 }
  0xdb   : > { %560 = vst.msk [vmem:[#allocation2 + $0x14] sm:$0xf] %vm524_vm8, %v558_v47  ;;  %553 = vst.msk [vmem:[#allocation2 + $0x10] sm:$0xf] %vm524_vm8, %v551_v48 }
  0xde   : > { %v572_v49 = vpop.permute.xlu1 %571  ;;  %v565_v50 = vpop.permute.xlu0 %564 }
  0xdf   : > { %574 = vst.msk [vmem:[#allocation2 + $0x1c] sm:$0xf] %vm524_vm8, %v572_v49  ;;  %567 = vst.msk [vmem:[#allocation2 + $0x18] sm:$0xf] %vm524_vm8, %v565_v50 }
  0xe2   : > { %v693_v51 = vpop.permute.xlu1 %692  ;;  %v673_v52 = vpop.permute.xlu0 %672 }
  0xe3   : > { %695 = vst.msk [vmem:[#allocation2 + $0x14] sm:$0xf] %vm594_vm9, %v693_v51  ;;  %675 = vst.msk [vmem:[#allocation2 + $0x10] sm:$0xf] %vm594_vm9, %v673_v52 }
  0xe6   : > { %v733_v53 = vpop.permute.xlu1 %732  ;;  %v713_v54 = vpop.permute.xlu0 %712 }
  0xe7   : > { %735 = vst.msk [vmem:[#allocation2 + $0x1c] sm:$0xf] %vm594_vm9, %v733_v53  ;;  %715 = vst.msk [vmem:[#allocation2 + $0x18] sm:$0xf] %vm594_vm9, %v713_v54 }
  0xea   : > { %v770_v55 = vpop.permute.xlu1 %769  ;;  %v764_v56 = vpop.permute.xlu0 %763 }
  0xeb   : > { %772 = vst.msk [vmem:[#allocation2 + $0x14] sm:$0xf] %vm741_vm10, %v770_v55  ;;  %766 = vst.msk [vmem:[#allocation2 + $0x10] sm:$0xf] %vm741_vm10, %v764_v56 }
  0xee   : > { %v783_v57 = vpop.permute.xlu1 %782  ;;  %v776_v58 = vpop.permute.xlu0 %775 }
  0xef   : > { %785 = vst.msk [vmem:[#allocation2 + $0x1c] sm:$0xf] %vm741_vm10, %v783_v57  ;;  %778 = vst.msk [vmem:[#allocation2 + $0x18] sm:$0xf] %vm741_vm10, %v776_v58 }
  0xf2   : > { %v820_v59 = vpop.permute.xlu1 %819  ;;  %v814_v60 = vpop.permute.xlu0 %813 }
  0xf3   : > { %822 = vst.msk [vmem:[#allocation2 + $0x14] sm:$0xf] %vm791_vm11, %v820_v59  ;;  %816 = vst.msk [vmem:[#allocation2 + $0x10] sm:$0xf] %vm791_vm11, %v814_v60 }
  0xf6   : > { %v833_v61 = vpop.permute.xlu1 %832  ;;  %v826_v62 = vpop.permute.xlu0 %825 }
  0xf7   : > { %835 = vst.msk [vmem:[#allocation2 + $0x1c] sm:$0xf] %vm791_vm11, %v833_v61  ;;  %828 = vst.msk [vmem:[#allocation2 + $0x18] sm:$0xf] %vm791_vm11, %v826_v62 }
  0xfa   : > { %v954_v63 = vpop.permute.xlu1 %953  ;;  %v934_v0 = vpop.permute.xlu0 %933 }
  0xfb   : > { %956 = vst.msk [vmem:[#allocation2 + $0x14] sm:$0xf] %vm855_vm12, %v954_v63  ;;  %936 = vst.msk [vmem:[#allocation2 + $0x10] sm:$0xf] %vm855_vm12, %v934_v0 }
  0xfe   : > { %v994_v1 = vpop.permute.xlu1 %993  ;;  %v974_v2 = vpop.permute.xlu0 %973 }
  0xff   : > { %996 = vst.msk [vmem:[#allocation2 + $0x1c] sm:$0xf] %vm855_vm12, %v994_v1  ;;  %976 = vst.msk [vmem:[#allocation2 + $0x18] sm:$0xf] %vm855_vm12, %v974_v2 }
 0x102   : > { %v1460_v3 = vld [vmem:[#allocation2 + $0x10] sm:$0xff]  }
 0x103   : > { %1426 = vmatprep.mubr.msk.bf16.mxu1 %vm1045_vm13, %v1460_v3 }
 0x106   : > { %v1461_v4 = vld [vmem:[#allocation2 + $0x18] sm:$0xff]  }
 0x107   : > { %1427 = vmatmul.mubr.msk.bf16.vlgmr.msra.gmra.mxu1 %vm1045_vm13, %v1461_v4 }
 0x18b   : > { %v1424_v5 = vpop.f32.mrf.mxu0 }
 0x18c   : > { %1130 = vst.msk [vmem:[%s1822_s12 + $0x10] sm:$0xff] %vm1127_vm14, %v1424_v5  ;;  %v1161_v14 = vmul.f32 %v1424_v5, %v1424_v5  ;;  %v1139_v17 = vsel %vm1127_vm14, %v1424_v5, 0.0 }
 0x18d   : > { %v1096_v6 = vpop.f32.mrf.mxu0 }
 0x18e   : > { %1128 = vst.msk [vmem:[%s1822_s12] sm:$0xff] %vm1127_vm14, %v1096_v6  ;;  %v1159_v9 = vmul.f32 %v1096_v6, %v1096_v6  ;;  %v1136_v11 = vsel %vm1127_vm14, %v1096_v6, 0.0  ;;  %v1170_v20 = vsel %vm1127_vm14, %v1161_v14, 0.0 }
 0x18f   : > { %v1425_v7 = vpop.f32.mrf.mxu0 }
 0x190   : > { %1131 = vst.msk [vmem:[%s1822_s12 + $0x18] sm:$0xff] %vm1127_vm14, %v1425_v7  ;;  %v1167_v15 = vsel %vm1127_vm14, %v1159_v9, 0.0  ;;  %v1162_v21 = vmul.f32 %v1425_v7, %v1425_v7  ;;  %v1141_v24 = vsel %vm1127_vm14, %v1425_v7, 0.0 }
 0x191   : > { %v1099_v8 = vpop.f32.mrf.mxu0 }
 0x192   : > { %1129 = vst.msk [vmem:[%s1822_s12 + $0x8] sm:$0xff] %vm1127_vm14, %v1099_v8  ;;  %v1160_v31 = vmul.f32 %v1099_v8, %v1099_v8  ;;  %v1137_v10 = vsel %vm1127_vm14, %v1099_v8, 0.0  ;;  %v1172_v29 = vsel %vm1127_vm14, %v1162_v21, 0.0 }
 0x193   : > { %v1138_v13 = vadd.f32 %v1137_v10, %v1136_v11 }
 0x194   : > { %v1168_v12 = vsel %vm1127_vm14, %v1160_v31, 0.0 }
 0x195   : > { %v1169_v16 = vadd.f32 %v1168_v12, %v1167_v15  ;;  %v1140_v18 = vadd.f32 %v1139_v17, %v1138_v13 }
 0x197   : > { %v1171_v22 = vadd.f32 %v1170_v20, %v1169_v16  ;;  %v1142_v27 = vadd.f32 %v1141_v24, %v1140_v18 }
 0x199   : > { %v1173_v33 = vadd.f32 %v1172_v29, %v1171_v22 }
 0x1c7   : > { %v1428_v19 = vpop.f32.mrf.mxu1 }
 0x1c8   : > { %1134 = vst.msk [vmem:[%s1822_s12 + $0x30] sm:$0xff] %vm1127_vm14, %v1428_v19  ;;  %v1165_v35 = vmul.f32 %v1428_v19, %v1428_v19  ;;  %v1147_v40 = vsel %vm1127_vm14, %v1428_v19, 0.0 }
 0x1c9   : > { %v1112_v23 = vpop.f32.mrf.mxu1 }
 0x1ca   : > { %1132 = vst.msk [vmem:[%s1822_s12 + $0x20] sm:$0xff] %vm1127_vm14, %v1112_v23  ;;  %v1143_v25 = vsel %vm1127_vm14, %v1112_v23, 0.0  ;;  %v1163_v26 = vmul.f32 %v1112_v23, %v1112_v23  ;;  %v1178_v45 = vsel %vm1127_vm14, %v1165_v35, 0.0 }
 0x1cb   : > { %v1429_v28 = vpop.f32.mrf.mxu1  ;;  %v1144_v32 = vadd.f32 %v1143_v25, %v1142_v27 }
 0x1cc   : > { %v1174_v30 = vsel %vm1127_vm14, %v1163_v26, 0.0  ;;  %1135 = vst.msk [vmem:[%s1822_s12 + $0x38] sm:$0xff] %vm1127_vm14, %v1429_v28  ;;  %v1166_v41 = vmul.f32 %v1429_v28, %v1429_v28  ;;  %v1149_v46 = vsel %vm1127_vm14, %v1429_v28, 0.0 }
 0x1cd   : > { %v1115_v34 = vpop.f32.mrf.mxu1  ;;  %v1175_v38 = vadd.f32 %v1174_v30, %v1173_v33 }
 0x1ce   : > { %1133 = vst.msk [vmem:[%s1822_s12 + $0x28] sm:$0xff] %vm1127_vm14, %v1115_v34  ;;  %v1145_v36 = vsel %vm1127_vm14, %v1115_v34, 0.0  ;;  %v1164_v37 = vmul.f32 %v1115_v34, %v1115_v34  ;;  %v1180_v49 = vsel %vm1127_vm14, %v1166_v41, 0.0 }
 0x1cf   : > { %v1146_v39 = vadd.f32 %v1145_v36, %v1144_v32 }
 0x1d0   : > { %v1176_v42 = vsel %vm1127_vm14, %v1164_v37, 0.0 }
 0x1d1   : > { %v1148_v43 = vadd.f32 %v1147_v40, %v1146_v39  ;;  %v1177_v44 = vadd.f32 %v1176_v42, %v1175_v38 }
 0x1d3   : > { %v1150_v47 = vadd.f32 %v1149_v46, %v1148_v43  ;;  %v1179_v48 = vadd.f32 %v1178_v45, %v1177_v44 }
 0x1d5   : > { %v1151_v50 = vrot.slane %v1150_v47, 4  ;;  %v1181_v51 = vadd.f32 %v1180_v49, %v1179_v48 }
 0x1d7   : > { %v1152_v52 = vadd.f32 %v1151_v50, %v1150_v47  ;;  %v1182_v53 = vrot.slane %v1181_v51, 4 }
 0x1d9   : > { %v1153_v54 = vrot.slane %v1152_v52, 2  ;;  %v1183_v55 = vadd.f32 %v1182_v53, %v1181_v51 }
 0x1db   : > { %v1154_v56 = vadd.f32 %v1153_v54, %v1152_v52  ;;  %v1184_v57 = vrot.slane %v1183_v55, 2 }
 0x1dd   : > { %v1155_v58 = vrot.slane %v1154_v56, 1  ;;  %v1185_v59 = vadd.f32 %v1184_v57, %v1183_v55 }
 0x1df   : > { %v1156_v60 = vadd.f32 %v1155_v58, %v1154_v56  ;;  %v1186_v61 = vrot.slane %v1185_v59, 1 }
 0x1e1   : > { %1158 = vst.msk [vmem:[%s211_s17] sm:$0x1] %vm1157_vm15, %v1156_v60  ;;  %v1187_v62 = vadd.f32 %v1186_v61, %v1185_v59 }
 0x1e3   : > { %1188 = vst.msk [vmem:[%s214_s20] sm:$0x1] %vm1157_vm15, %v1187_v62 }
 0x1e4 PF: > { %s15_s15 = sadd.s32 1, %s1468_s15  }
 0x1e5   : > { %p12_p4 = scmp.ge.s32.totalorder %s15_s15, 4  }
 0x1e7   :  { %14 = sbr.rel (!%p12_p4) target bundleno = 1 (0x1), region = 115 }

// kernel: bottleneck_forward.9
= control target key start
LH: loop header
LB: loop body
LE: loop exit
PB: predicated region body
PF: predicated region fallthrough
CT: control target
= control target key end

     0   :  { %vm180_vm0 = vcmask 130048   ;;  %s479_s0 = inlined_call_operand.vmem [shape: f32[128,16], index: 0, kind: input, shape index: {}]   ;;  %s480_s1 = inlined_call_operand.vmem [shape: f32[1,16], index: 1, kind: input, shape index: {}]   ;;  %s481_s2 = inlined_call_operand.vmem [shape: f32[1,16], index: 2, kind: input, shape index: {}]   ;;  %s482_s3 = inlined_call_operand.vmem [shape: f32[128,16], index: 3, kind: input, shape index: {}]   ;;  %s483_s4 = inlined_call_operand.vmem [shape: f32[1,16], index: 4, kind: input, shape index: {}]   ;;  %s484_s5 = inlined_call_operand.vmem [shape: f32[1,16], index: 5, kind: input, shape index: {}]   ;;  %s485_s6 = inlined_call_operand.hbm [shape: f32[128,16], index: 6, kind: output, shape index: {}]  }
   0x1   :  { %v24_v0 = vld [vmem:[%s479_s0] sm:$0xff]  ;;  %v25_v8 = vld [vmem:[%s479_s0 + $0x8] sm:$0xff]  ;;  %v26_v10 = vld [vmem:[%s479_s0 + $0x10] sm:$0xff] }
   0x2   :  { %v286_v1 = vld [vmem:[%s480_s1] ss:$0 sm:$0xff]  ;;  %v87_v9 = vld [vmem:[%s482_s3 + $0x8] sm:$0xff]  ;;  %v88_v15 = vld [vmem:[%s482_s3 + $0x10] sm:$0xff] }
   0x3   :  { %v291_v2 = vld [vmem:[%s481_s2] ss:$0 sm:$0xff]  ;;  %v47_v3 = vmul.f32 %v286_v1, %v24_v0  ;;  %v48_v12 = vmul.f32 %v286_v1, %v25_v8  ;;  %v49_v14 = vmul.f32 %v286_v1, %v26_v10  ;;  %v27_v16 = vld [vmem:[%s479_s0 + $0x18] sm:$0xff]  ;;  %v29_v24 = vld [vmem:[%s479_s0 + $0x28] sm:$0xff] }
   0x4   :  { %v86_v4 = vld [vmem:[%s482_s3] sm:$0xff]  ;;  %v89_v17 = vld [vmem:[%s482_s3 + $0x18] sm:$0xff]  ;;  %v50_v20 = vmul.f32 %v286_v1, %v27_v16  ;;  %v91_v29 = vld [vmem:[%s482_s3 + $0x28] sm:$0xff]  ;;  %v52_v38 = vmul.f32 %v286_v1, %v29_v24 }
   0x5   :  { %v300_v5 = vld [vmem:[%s483_s4] ss:$0 sm:$0xff]  ;;  %v70_v11 = vadd.f32 %v291_v2, %v47_v3  ;;  %v71_v25 = vadd.f32 %v291_v2, %v48_v12  ;;  %v72_v27 = vadd.f32 %v291_v2, %v49_v14  ;;  %v30_v34 = vld [vmem:[%s479_s0 + $0x30] sm:$0xff]  ;;  %v31_v44 = vld [vmem:[%s479_s0 + $0x38] sm:$0xff] }
   0x6   :  { %v305_v6 = vld [vmem:[%s484_s5] ss:$0 sm:$0xff]  ;;  %v109_v7 = vmul.f32 %v300_v5, %v86_v4  ;;  %v110_v13 = vmul.f32 %v300_v5, %v87_v9  ;;  %v111_v19 = vmul.f32 %v300_v5, %v88_v15  ;;  %v112_v21 = vmul.f32 %v300_v5, %v89_v17  ;;  %v92_v39 = vld [vmem:[%s482_s3 + $0x30] sm:$0xff]  ;;  %v93_v45 = vld [vmem:[%s482_s3 + $0x38] sm:$0xff] }
   0x7   :  { %v28_v22 = vld [vmem:[%s479_s0 + $0x20] sm:$0xff]  ;;  %v73_v32 = vadd.f32 %v291_v2, %v50_v20  ;;  %v114_v43 = vmul.f32 %v300_v5, %v91_v29  ;;  %v75_v48 = vadd.f32 %v291_v2, %v52_v38  ;;  %v53_v49 = vmul.f32 %v286_v1, %v30_v34  ;;  %v33_v56 = vld [vmem:[%s479_s0 + $0x48] sm:$0xff]  ;;  %v34_v4 = vld [vmem:[%s479_s0 + $0x50] sm:$0xff] }
   0x8   :  { %v132_v18 = vadd.f32 %v305_v6, %v109_v7  ;;  %v90_v23 = vld [vmem:[%s482_s3 + $0x20] sm:$0xff]  ;;  %v133_v26 = vadd.f32 %v305_v6, %v110_v13  ;;  %v51_v28 = vmul.f32 %v286_v1, %v28_v22  ;;  %v134_v31 = vadd.f32 %v305_v6, %v111_v19  ;;  %v95_v3 = vld [vmem:[%s482_s3 + $0x48] sm:$0xff] }
   0x9   :  { %v135_v33 = vadd.f32 %v305_v6, %v112_v21  ;;  %v113_v37 = vmul.f32 %v300_v5, %v90_v23  ;;  %v32_v50 = vld [vmem:[%s479_s0 + $0x40] sm:$0xff]  ;;  %v137_v54 = vadd.f32 %v305_v6, %v114_v43  ;;  %v115_v55 = vmul.f32 %v300_v5, %v92_v39 }
   0xa   :  { %v148_v30 = vadd.f32 %v132_v18, %v70_v11  ;;  %v149_v35 = vadd.f32 %v133_v26, %v71_v25  ;;  %v74_v36 = vadd.f32 %v291_v2, %v51_v28  ;;  %v150_v41 = vadd.f32 %v134_v31, %v72_v27  ;;  %v94_v51 = vld [vmem:[%s482_s3 + $0x40] sm:$0xff] }
   0xb   :  { %v151_v42 = vadd.f32 %v135_v33, %v73_v32  ;;  %v136_v47 = vadd.f32 %v305_v6, %v113_v37  ;;  %v76_v58 = vadd.f32 %v291_v2, %v53_v49  ;;  %v54_v59 = vmul.f32 %v286_v1, %v31_v44 }
   0xc   :  { %v164_v40 = vmax.f32 %v148_v30, 0.0  ;;  %v165_v46 = vmax.f32 %v149_v35, 0.0  ;;  %v166_v52 = vmax.f32 %v150_v41, 0.0  ;;  %v116_v60 = vmul.f32 %v300_v5, %v93_v45 }
   0xd   :  { %v167_v53 = vmax.f32 %v151_v42, 0.0  ;;  %v152_v57 = vadd.f32 %v136_v47, %v74_v36  ;;  %v153_v61 = vadd.f32 %v137_v54, %v75_v48  ;;  %v138_v62 = vadd.f32 %v305_v6, %v115_v55 }
   0xe   :  { %181 = vst.msk [vmem:[#allocation2] sm:$0xff] %vm180_vm0, %v164_v40  ;;  %182 = vst.msk [vmem:[#allocation2 + $0x8] sm:$0xff] %vm180_vm0, %v165_v46  ;;  %v55_v63 = vmul.f32 %v286_v1, %v32_v50  ;;  %v117_v0 = vmul.f32 %v300_v5, %v94_v51 }
   0xf   :  { %183 = vst.msk [vmem:[#allocation2 + $0x10] sm:$0xff] %vm180_vm0, %v166_v52  ;;  %184 = vst.msk [vmem:[#allocation2 + $0x18] sm:$0xff] %vm180_vm0, %v167_v53 }
  0x10   :  { %11 = vsyncpa [#allocation3], 0  ;;  %v168_v7 = vmax.f32 %v152_v57, 0.0  ;;  %v77_v8 = vadd.f32 %v291_v2, %v54_v59  ;;  %v139_v9 = vadd.f32 %v305_v6, %v116_v60  ;;  %v56_v10 = vmul.f32 %v286_v1, %v33_v56  ;;  %v96_v11 = vld [vmem:[%s482_s3 + $0x50] sm:$0xff]  ;;  %v35_v12 = vld [vmem:[%s479_s0 + $0x58] sm:$0xff] }
  0x11   :  { %v169_v13 = vmax.f32 %v153_v61, 0.0  ;;  %v154_v14 = vadd.f32 %v138_v62, %v76_v58  ;;  %v78_v15 = vadd.f32 %v291_v2, %v55_v63  ;;  %v140_v16 = vadd.f32 %v305_v6, %v117_v0  ;;  %v97_v17 = vld [vmem:[%s482_s3 + $0x58] sm:$0xff]  ;;  %v36_v22 = vld [vmem:[%s479_s0 + $0x60] sm:$0xff]  ;;  %v37_v28 = vld [vmem:[%s479_s0 + $0x68] sm:$0xff] }
  0x12   :  { %185 = vst.msk [vmem:[#allocation2 + $0x20] sm:$0xff] %vm180_vm0, %v168_v7  ;;  %v155_v18 = vadd.f32 %v139_v9, %v77_v8  ;;  %v79_v19 = vadd.f32 %v291_v2, %v56_v10  ;;  %v118_v20 = vmul.f32 %v300_v5, %v95_v3  ;;  %v57_v21 = vmul.f32 %v286_v1, %v34_v4  ;;  %v98_v27 = vld [vmem:[%s482_s3 + $0x60] sm:$0xff]  ;;  %v99_v33 = vld [vmem:[%s482_s3 + $0x68] sm:$0xff]  ;;  %v38_v34 = vld [vmem:[%s479_s0 + $0x70] sm:$0xff] }
  0x13   :  { %186 = vst.msk [vmem:[#allocation2 + $0x28] sm:$0xff] %vm180_vm0, %v169_v13  ;;  %v170_v23 = vmax.f32 %v154_v14, 0.0  ;;  %v156_v24 = vadd.f32 %v140_v16, %v78_v15  ;;  %v119_v25 = vmul.f32 %v300_v5, %v96_v11  ;;  %v58_v26 = vmul.f32 %v286_v1, %v35_v12  ;;  %v100_v43 = vld [vmem:[%s482_s3 + $0x70] sm:$0xff]  ;;  %v39_v48 = vld [vmem:[%s479_s0 + $0x78] sm:$0xff]  ;;  %s242_s0 = smov [#allocation2]  }
  0x14   :  { %v171_v29 = vmax.f32 %v155_v18, 0.0  ;;  %v141_v30 = vadd.f32 %v305_v6, %v118_v20  ;;  %v80_v31 = vadd.f32 %v291_v2, %v57_v21  ;;  %v120_v32 = vmul.f32 %v300_v5, %v97_v17  ;;  %v101_v49 = vld [vmem:[%s482_s3 + $0x78] sm:$0xff]  ;;  %s202_s3 = sshll.u32 %s242_s0, 4  ;;  %s203_s3 = int_to_ptr.vmem [resolvable:$true] %s202_s3 }
  0x15   :  { %187 = vst.msk [vmem:[#allocation2 + $0x30] sm:$0xff] %vm180_vm0, %v170_v23  ;;  %v172_v35 = vmax.f32 %v156_v24, 0.0  ;;  %v142_v36 = vadd.f32 %v305_v6, %v119_v25  ;;  %v81_v37 = vadd.f32 %v291_v2, %v58_v26  ;;  %v59_v38 = vmul.f32 %v286_v1, %v36_v22  ;;  %s220_s11 = scalar_lea.vmem %s203_s3, 2048  ;;  %p225_p1 = scmp.lt.s32.totalorder %s203_s3, %s203_s3 }
  0x16   :  { %188 = vst.msk [vmem:[#allocation2 + $0x38] sm:$0xff] %vm180_vm0, %v171_v29  ;;  %v157_v39 = vadd.f32 %v141_v30, %v79_v19  ;;  %v143_v40 = vadd.f32 %v305_v6, %v120_v32  ;;  %v121_v41 = vmul.f32 %v300_v5, %v98_v27  ;;  %v60_v42 = vmul.f32 %v286_v1, %v37_v28  ;;  %p221_p0 = scmp.ne.s32.totalorder %s203_s3, %s220_s11  ;;  %p226_p2 = scmp.lt.s32.totalorder %s220_s11, %s220_s11 }
  0x17   :  { %189 = vst.msk [vmem:[#allocation2 + $0x40] sm:$0xff] %vm180_vm0, %v172_v35  ;;  %v158_v44 = vadd.f32 %v142_v36, %v80_v31  ;;  %v82_v45 = vadd.f32 %v291_v2, %v59_v38  ;;  %v122_v46 = vmul.f32 %v300_v5, %v99_v33  ;;  %v61_v47 = vmul.f32 %v286_v1, %v38_v34 }
  0x18   :  { %v173_v50 = vmax.f32 %v157_v39, 0.0  ;;  %v159_v51 = vadd.f32 %v143_v40, %v81_v37  ;;  %v144_v52 = vadd.f32 %v305_v6, %v121_v41  ;;  %v83_v53 = vadd.f32 %v291_v2, %v60_v42  ;;  %p227_p3 = por %p226_p2, %p225_p1 }
  0x19   :  { %v174_v54 = vmax.f32 %v158_v44, 0.0  ;;  %v145_v55 = vadd.f32 %v305_v6, %v122_v46  ;;  %v84_v56 = vadd.f32 %v291_v2, %v61_v47  ;;  %v123_v57 = vmul.f32 %v300_v5, %v100_v43 }
  0x1a   :  { %190 = vst.msk [vmem:[#allocation2 + $0x48] sm:$0xff] %vm180_vm0, %v173_v50  ;;  %v175_v58 = vmax.f32 %v159_v51, 0.0  ;;  %v160_v59 = vadd.f32 %v144_v52, %v82_v45  ;;  %v62_v60 = vmul.f32 %v286_v1, %v39_v48  ;;  %v124_v61 = vmul.f32 %v300_v5, %v101_v49  ;;  %p228_p4 = pnand %p227_p3, %p221_p0 }
  0x1b   :  { %191 = vst.msk [vmem:[#allocation2 + $0x50] sm:$0xff] %vm180_vm0, %v174_v54  ;;  %v161_v62 = vadd.f32 %v145_v55, %v83_v53  ;;  %v146_v63 = vadd.f32 %v305_v6, %v123_v57 }
  0x1c   :  { %192 = vst.msk [vmem:[#allocation2 + $0x58] sm:$0xff] %vm180_vm0, %v175_v58  ;;  %v176_v0 = vmax.f32 %v160_v59, 0.0  ;;  %v85_v3 = vadd.f32 %v291_v2, %v62_v60  ;;  %v147_v4 = vadd.f32 %v305_v6, %v124_v61 }
  0x1d   :  { %v177_v7 = vmax.f32 %v161_v62, 0.0  ;;  %v162_v8 = vadd.f32 %v146_v63, %v84_v56 }
  0x1e   :  { %193 = vst.msk [vmem:[#allocation2 + $0x60] sm:$0xff] %vm180_vm0, %v176_v0  ;;  %v163_v1 = vadd.f32 %v147_v4, %v85_v3 }
  0x1f   :  { %194 = vst.msk [vmem:[#allocation2 + $0x68] sm:$0xff] %vm180_vm0, %v177_v7  ;;  %v178_v5 = vmax.f32 %v162_v8, 0.0 }
  0x20   :  { %v179_v9 = vmax.f32 %v163_v1, 0.0 }
  0x21   :  { %195 = vst.msk [vmem:[#allocation2 + $0x70] sm:$0xff] %vm180_vm0, %v178_v5 }
  0x22   :  { %196 = vst.msk [vmem:[#allocation2 + $0x78] sm:$0xff] %vm180_vm0, %v179_v9 }
  0x23   :  { %231 = shalt.err (!%p228_p4)
}
  0x24   :  { %s243_s12 = smov 128   ;;  %s244_s4 = smov 8  }
  0x25   :  { %208 = dma.vmem_to_hbm [thread:$0]  %s203_s3, 2048, %s485_s6, [#allocation3], %s243_s12, %s243_s12, %s244_s4  }
  0x26   :  { %240 = dma.done.wait [#allocation3], 2048  }
  0x27   :  { %241 = vsyncadd [#allocation3], 4294965248 }
  0x28   :  { %212 = vsyncpa [#allocation3], 1 }

</bundles_post_ra>
